<compile_context>
chip_gen: v7x
topology: tpu7x:2x2x1
jax: 0.10.0
libtpu: 0.0.40
codegen_flags: <defaults>
</compile_context>

<pallas_src>
import math

import jax
import jax.numpy as jnp
from jax.experimental import pallas as pl
from jax.experimental.pallas import tpu as pltpu

LEAKY_SLOPE = 0.2
BN_EPS = 0.8  # nn.BatchNorm1d(out_feat, 0.8) -> second positional arg is eps


def _generator_kernel(z_ref, w1_ref, b1_ref, w2_ref, p2_ref, w3_ref, p3_ref,
                      w4_ref, p4_ref, w5_ref, b5_ref, o_ref):
    """Entire generator forward in a single kernel invocation."""

    def dense(x, w_ref, bias):
        # (B, Fin) @ (Fin, Fout) on the MXU bf16 path, f32 accumulation (VPU add).
        return jnp.dot(x.astype(jnp.bfloat16), w_ref[...],
                       preferred_element_type=jnp.float32) + bias

    def leaky(y):
        return jnp.where(y >= 0.0, y, LEAKY_SLOPE * y)

    def batchnorm(y, gamma, beta):
        # Training-mode BatchNorm1d over the batch axis, biased var, eps=0.8.
        # Batch-axis reductions go to the XLU; rsqrt goes to the EUP.
        mean = jnp.mean(y, axis=0, keepdims=True)
        var = jnp.mean(jnp.square(y - mean), axis=0, keepdims=True)
        return (y - mean) * jax.lax.rsqrt(var + BN_EPS) * gamma + beta

    x = z_ref[...].astype(jnp.float32)

    # Block 1: Linear + LeakyReLU (no BatchNorm).
    x = leaky(dense(x, w1_ref, b1_ref[...]))

    # Blocks 2-4: Linear + BatchNorm1d(0.8) + LeakyReLU.
    for w_ref, p_ref in ((w2_ref, p2_ref), (w3_ref, p3_ref), (w4_ref, p4_ref)):
        p = p_ref[...]                       # (3, Fout) = [bias; gamma; beta]
        y = dense(x, w_ref, p[0:1, :])
        x = leaky(batchnorm(y, p[1:2, :], p[2:3, :]))

    # Final: Linear + Tanh.
    o_ref[...] = jnp.tanh(dense(x, w5_ref, b5_ref[...])).astype(o_ref.dtype)


def init_generator_params(key, latent_dim, img_shape):
    """Deterministic PyTorch-style uniform init.  Weights in bf16; bias and
    BatchNorm affine params packed per layer into one small f32 array."""
    c, h, w = img_shape
    dims = [latent_dim, 128, 256, 512, 1024, c * h * w]
    normalize = [False, True, True, True, False]
    params = []
    for i in range(len(dims) - 1):
        fan_in, fan_out = dims[i], dims[i + 1]
        key, kw, kb = jax.random.split(key, 3)
        bound = 1.0 / math.sqrt(fan_in)
        W = jax.random.uniform(kw, (fan_in, fan_out), jnp.float32, -bound, bound)
        b = jax.random.uniform(kb, (1, fan_out), jnp.float32, -bound, bound)
        if normalize[i]:
            # Pack [bias; gamma; beta] -> single (3, Fout) parameter DMA.
            p = jnp.concatenate(
                [b,
                 jnp.ones((1, fan_out), jnp.float32),
                 jnp.zeros((1, fan_out), jnp.float32)], axis=0)
        else:
            p = b
        params.append((W.astype(jnp.bfloat16), p))
    return params


def generator_forward(z, params, img_shape):
    c, h, w = img_shape
    B = z.shape[0]
    out_feat = c * h * w

    flat = [z]
    in_specs = [pl.BlockSpec(z.shape, lambda: (0, 0))]
    for W, p in params:
        flat += [W, p]
        in_specs += [pl.BlockSpec(W.shape, lambda: (0, 0)),
                     pl.BlockSpec(p.shape, lambda: (0, 0))]

    # Advisory cost hint for XLA's scheduler.
    dims = [z.shape[1]] + [W.shape[1] for W, _ in params]
    flops = 2 * B * sum(fi * fo for fi, fo in zip(dims[:-1], dims[1:]))
    bytes_accessed = (sum(int(x.size) * x.dtype.itemsize for x in flat)
                      + B * out_feat * 4)
    cost = pl.CostEstimate(flops=flops,
                           transcendentals=B * out_feat + 3 * 1024,
                           bytes_accessed=bytes_accessed)

    img_flat = pl.pallas_call(
        _generator_kernel,
        out_shape=jax.ShapeDtypeStruct((B, out_feat), jnp.float32),
        in_specs=in_specs,
        out_specs=pl.BlockSpec((B, out_feat), lambda: (0, 0)),
        compiler_params=pltpu.CompilerParams(
            vmem_limit_bytes=32 * 1024 * 1024),
        cost_estimate=cost,
    )(*flat)

    # Reshape to NCHW, matching img.view(B, C, H, W).
    return img_flat.reshape(B, c, h, w)


def generator_reference(z, params, img_shape):
    """Pure-JAX reference of the same forward (for correctness checking)."""
    c, h, w = img_shape
    x = z.astype(jnp.float32)
    n = len(params)
    for i, (W, p) in enumerate(params):
        Wf = W.astype(jnp.float32)
        xb = x.astype(jnp.bfloat16).astype(jnp.float32)
        y = jnp.dot(xb, Wf) + p[0:1, :]
        if p.shape[0] == 3:  # BN block
            mean = jnp.mean(y, axis=0, keepdims=True)
            var = jnp.mean(jnp.square(y - mean), axis=0, keepdims=True)
            y = (y - mean) * jax.lax.rsqrt(var + BN_EPS) * p[1:2, :] + p[2:3, :]
            x = jnp.where(y >= 0.0, y, LEAKY_SLOPE * y)
        elif i == n - 1:
            x = jnp.tanh(y)
        else:
            x = jnp.where(y >= 0.0, y, LEAKY_SLOPE * y)
    return x.reshape(z.shape[0], c, h, w)


if __name__ == "__main__":
    latent_dim = 32
    img_shape = (1, 16, 16)   # out_feat = 256, lane-dense multiple of 128
    batch = 8                 # small test batch (>1 so BatchNorm is meaningful)

    key = jax.random.PRNGKey(0)
    key, kz = jax.random.split(key)
    z = jax.random.normal(kz, (batch, latent_dim), jnp.float32)
    params = init_generator_params(key, latent_dim, img_shape)

    img = generator_forward(z, params, img_shape)
    img = jax.block_until_ready(img)

    assert img.shape == (batch,) + img_shape, img.shape
    assert bool(jnp.all(jnp.isfinite(img)))
    # Tanh output range sanity check.
    assert float(jnp.max(jnp.abs(img))) <= 1.0 + 1e-5

    # Numerical check against a pure-JAX reference (bf16-matmul tolerance).
    ref = generator_reference(z, params, img_shape)
    assert bool(jnp.allclose(img, ref, atol=2e-2, rtol=2e-2)), (
        float(jnp.max(jnp.abs(img - ref))))

    print("KERNEL_OK")
</pallas_src>

<mosaic_0001>
module attributes {stable_mosaic.version = 11 : i64} {
  func.func @_generator_kernel(%arg0: memref<8x32xf32, #tpu.memory_space<vmem>>, %arg1: memref<32x128xbf16, #tpu.memory_space<vmem>>, %arg2: memref<1x128xf32, #tpu.memory_space<vmem>>, %arg3: memref<128x256xbf16, #tpu.memory_space<vmem>>, %arg4: memref<3x256xf32, #tpu.memory_space<vmem>>, %arg5: memref<256x512xbf16, #tpu.memory_space<vmem>>, %arg6: memref<3x512xf32, #tpu.memory_space<vmem>>, %arg7: memref<512x1024xbf16, #tpu.memory_space<vmem>>, %arg8: memref<3x1024xf32, #tpu.memory_space<vmem>>, %arg9: memref<1024x256xbf16, #tpu.memory_space<vmem>>, %arg10: memref<1x256xf32, #tpu.memory_space<vmem>>, %arg11: memref<8x256xf32, #tpu.memory_space<vmem>>) attributes {dimension_semantics = [], scalar_prefetch = 0 : i64, scratch_operands = 0 : i64, tpu.core_type = #tpu.core_type<tc>} {
    %c0 = arith.constant 0 : index
    %c0_0 = arith.constant 0 : index
    %0 = vector.load %arg0[%c0, %c0_0] : memref<8x32xf32, #tpu.memory_space<vmem>>, vector<8x32xf32>
    %c0_1 = arith.constant 0 : index
    %c0_2 = arith.constant 0 : index
    %1 = vector.load %arg2[%c0_1, %c0_2] : memref<1x128xf32, #tpu.memory_space<vmem>>, vector<1x128xf32>
    %2 = arith.truncf %0 : vector<8x32xf32> to vector<8x32xbf16>
    %c0_3 = arith.constant 0 : index
    %c0_4 = arith.constant 0 : index
    %3 = vector.load %arg1[%c0_3, %c0_4] : memref<32x128xbf16, #tpu.memory_space<vmem>>, vector<32x128xbf16>
    %cst = arith.constant dense<0.000000e+00> : vector<8x128xf32>
    %4 = tpu.matmul %2, %3, %cst {dimension_numbers = #tpu.dot_dimension_numbers<[1], [0], [0], [1], [0, 0, 1, 1], [], []>} : vector<8x32xbf16>, vector<32x128xbf16>, vector<8x128xf32> -> vector<8x128xf32>
    %5 = vector.broadcast %1 : vector<1x128xf32> to vector<8x128xf32>
    %6 = arith.addf %4, %5 : vector<8x128xf32>
    %cst_5 = arith.constant 0.000000e+00 : f32
    %7 = vector.broadcast %cst_5 : f32 to vector<8x128xf32>
    %8 = arith.cmpf oge, %6, %7 : vector<8x128xf32>
    %cst_6 = arith.constant 2.000000e-01 : f32
    %9 = vector.broadcast %cst_6 : f32 to vector<8x128xf32>
    %10 = arith.mulf %9, %6 : vector<8x128xf32>
    %11 = arith.select %8, %6, %10 : vector<8x128xi1>, vector<8x128xf32>
    %c0_7 = arith.constant 0 : index
    %c0_8 = arith.constant 0 : index
    %12 = vector.load %arg4[%c0_7, %c0_8] : memref<3x256xf32, #tpu.memory_space<vmem>>, vector<3x256xf32>
    %13 = vector.extract_strided_slice %12 {offsets = [0, 0], sizes = [1, 256], strides = [1, 1]} : vector<3x256xf32> to vector<1x256xf32>
    %14 = arith.truncf %11 : vector<8x128xf32> to vector<8x128xbf16>
    %c0_9 = arith.constant 0 : index
    %c0_10 = arith.constant 0 : index
    %15 = vector.load %arg3[%c0_9, %c0_10] : memref<128x256xbf16, #tpu.memory_space<vmem>>, vector<128x256xbf16>
    %cst_11 = arith.constant dense<0.000000e+00> : vector<8x256xf32>
    %16 = tpu.matmul %14, %15, %cst_11 {dimension_numbers = #tpu.dot_dimension_numbers<[1], [0], [0], [1], [0, 0, 1, 1], [], []>} : vector<8x128xbf16>, vector<128x256xbf16>, vector<8x256xf32> -> vector<8x256xf32>
    %17 = vector.broadcast %13 : vector<1x256xf32> to vector<8x256xf32>
    %18 = arith.addf %16, %17 : vector<8x256xf32>
    %19 = vector.extract_strided_slice %12 {offsets = [1, 0], sizes = [1, 256], strides = [1, 1]} : vector<3x256xf32> to vector<1x256xf32>
    %20 = vector.extract_strided_slice %12 {offsets = [2, 0], sizes = [1, 256], strides = [1, 1]} : vector<3x256xf32> to vector<1x256xf32>
    %cst_12 = arith.constant dense<0.000000e+00> : vector<256xf32>
    %21 = vector.multi_reduction <add>, %18, %cst_12 [0] : vector<8x256xf32> to vector<256xf32>
    %22 = vector.shape_cast %21 : vector<256xf32> to vector<1x256xf32>
    %cst_13 = arith.constant 8.000000e+00 : f32
    %23 = vector.broadcast %cst_13 : f32 to vector<1x256xf32>
    %24 = arith.divf %22, %23 : vector<1x256xf32>
    %25 = vector.broadcast %24 : vector<1x256xf32> to vector<8x256xf32>
    %26 = arith.subf %18, %25 : vector<8x256xf32>
    %27 = arith.mulf %26, %26 : vector<8x256xf32>
    %cst_14 = arith.constant dense<0.000000e+00> : vector<256xf32>
    %28 = vector.multi_reduction <add>, %27, %cst_14 [0] : vector<8x256xf32> to vector<256xf32>
    %29 = vector.shape_cast %28 : vector<256xf32> to vector<1x256xf32>
    %cst_15 = arith.constant 8.000000e+00 : f32
    %30 = vector.broadcast %cst_15 : f32 to vector<1x256xf32>
    %31 = arith.divf %29, %30 : vector<1x256xf32>
    %32 = vector.broadcast %24 : vector<1x256xf32> to vector<8x256xf32>
    %33 = arith.subf %18, %32 : vector<8x256xf32>
    %cst_16 = arith.constant 8.000000e-01 : f32
    %34 = vector.broadcast %cst_16 : f32 to vector<1x256xf32>
    %35 = arith.addf %31, %34 : vector<1x256xf32>
    %36 = math.rsqrt %35 : vector<1x256xf32>
    %37 = vector.broadcast %36 : vector<1x256xf32> to vector<8x256xf32>
    %38 = arith.mulf %33, %37 : vector<8x256xf32>
    %39 = vector.broadcast %19 : vector<1x256xf32> to vector<8x256xf32>
    %40 = arith.mulf %38, %39 : vector<8x256xf32>
    %41 = vector.broadcast %20 : vector<1x256xf32> to vector<8x256xf32>
    %42 = arith.addf %40, %41 : vector<8x256xf32>
    %cst_17 = arith.constant 0.000000e+00 : f32
    %43 = vector.broadcast %cst_17 : f32 to vector<8x256xf32>
    %44 = arith.cmpf oge, %42, %43 : vector<8x256xf32>
    %cst_18 = arith.constant 2.000000e-01 : f32
    %45 = vector.broadcast %cst_18 : f32 to vector<8x256xf32>
    %46 = arith.mulf %45, %42 : vector<8x256xf32>
    %47 = arith.select %44, %42, %46 : vector<8x256xi1>, vector<8x256xf32>
    %c0_19 = arith.constant 0 : index
    %c0_20 = arith.constant 0 : index
    %48 = vector.load %arg6[%c0_19, %c0_20] : memref<3x512xf32, #tpu.memory_space<vmem>>, vector<3x512xf32>
    %49 = vector.extract_strided_slice %48 {offsets = [0, 0], sizes = [1, 512], strides = [1, 1]} : vector<3x512xf32> to vector<1x512xf32>
    %50 = arith.truncf %47 : vector<8x256xf32> to vector<8x256xbf16>
    %c0_21 = arith.constant 0 : index
    %c0_22 = arith.constant 0 : index
    %51 = vector.load %arg5[%c0_21, %c0_22] : memref<256x512xbf16, #tpu.memory_space<vmem>>, vector<256x512xbf16>
    %cst_23 = arith.constant dense<0.000000e+00> : vector<8x512xf32>
    %52 = tpu.matmul %50, %51, %cst_23 {dimension_numbers = #tpu.dot_dimension_numbers<[1], [0], [0], [1], [0, 0, 1, 1], [], []>} : vector<8x256xbf16>, vector<256x512xbf16>, vector<8x512xf32> -> vector<8x512xf32>
    %53 = vector.broadcast %49 : vector<1x512xf32> to vector<8x512xf32>
    %54 = arith.addf %52, %53 : vector<8x512xf32>
    %55 = vector.extract_strided_slice %48 {offsets = [1, 0], sizes = [1, 512], strides = [1, 1]} : vector<3x512xf32> to vector<1x512xf32>
    %56 = vector.extract_strided_slice %48 {offsets = [2, 0], sizes = [1, 512], strides = [1, 1]} : vector<3x512xf32> to vector<1x512xf32>
    %cst_24 = arith.constant dense<0.000000e+00> : vector<512xf32>
    %57 = vector.multi_reduction <add>, %54, %cst_24 [0] : vector<8x512xf32> to vector<512xf32>
    %58 = vector.shape_cast %57 : vector<512xf32> to vector<1x512xf32>
    %cst_25 = arith.constant 8.000000e+00 : f32
    %59 = vector.broadcast %cst_25 : f32 to vector<1x512xf32>
    %60 = arith.divf %58, %59 : vector<1x512xf32>
    %61 = vector.broadcast %60 : vector<1x512xf32> to vector<8x512xf32>
    %62 = arith.subf %54, %61 : vector<8x512xf32>
    %63 = arith.mulf %62, %62 : vector<8x512xf32>
    %cst_26 = arith.constant dense<0.000000e+00> : vector<512xf32>
    %64 = vector.multi_reduction <add>, %63, %cst_26 [0] : vector<8x512xf32> to vector<512xf32>
    %65 = vector.shape_cast %64 : vector<512xf32> to vector<1x512xf32>
    %cst_27 = arith.constant 8.000000e+00 : f32
    %66 = vector.broadcast %cst_27 : f32 to vector<1x512xf32>
    %67 = arith.divf %65, %66 : vector<1x512xf32>
    %68 = vector.broadcast %60 : vector<1x512xf32> to vector<8x512xf32>
    %69 = arith.subf %54, %68 : vector<8x512xf32>
    %cst_28 = arith.constant 8.000000e-01 : f32
    %70 = vector.broadcast %cst_28 : f32 to vector<1x512xf32>
    %71 = arith.addf %67, %70 : vector<1x512xf32>
    %72 = math.rsqrt %71 : vector<1x512xf32>
    %73 = vector.broadcast %72 : vector<1x512xf32> to vector<8x512xf32>
    %74 = arith.mulf %69, %73 : vector<8x512xf32>
    %75 = vector.broadcast %55 : vector<1x512xf32> to vector<8x512xf32>
    %76 = arith.mulf %74, %75 : vector<8x512xf32>
    %77 = vector.broadcast %56 : vector<1x512xf32> to vector<8x512xf32>
    %78 = arith.addf %76, %77 : vector<8x512xf32>
    %cst_29 = arith.constant 0.000000e+00 : f32
    %79 = vector.broadcast %cst_29 : f32 to vector<8x512xf32>
    %80 = arith.cmpf oge, %78, %79 : vector<8x512xf32>
    %cst_30 = arith.constant 2.000000e-01 : f32
    %81 = vector.broadcast %cst_30 : f32 to vector<8x512xf32>
    %82 = arith.mulf %81, %78 : vector<8x512xf32>
    %83 = arith.select %80, %78, %82 : vector<8x512xi1>, vector<8x512xf32>
    %c0_31 = arith.constant 0 : index
    %c0_32 = arith.constant 0 : index
    %84 = vector.load %arg8[%c0_31, %c0_32] : memref<3x1024xf32, #tpu.memory_space<vmem>>, vector<3x1024xf32>
    %85 = vector.extract_strided_slice %84 {offsets = [0, 0], sizes = [1, 1024], strides = [1, 1]} : vector<3x1024xf32> to vector<1x1024xf32>
    %86 = arith.truncf %83 : vector<8x512xf32> to vector<8x512xbf16>
    %c0_33 = arith.constant 0 : index
    %c0_34 = arith.constant 0 : index
    %87 = vector.load %arg7[%c0_33, %c0_34] : memref<512x1024xbf16, #tpu.memory_space<vmem>>, vector<512x1024xbf16>
    %cst_35 = arith.constant dense<0.000000e+00> : vector<8x1024xf32>
    %88 = tpu.matmul %86, %87, %cst_35 {dimension_numbers = #tpu.dot_dimension_numbers<[1], [0], [0], [1], [0, 0, 1, 1], [], []>} : vector<8x512xbf16>, vector<512x1024xbf16>, vector<8x1024xf32> -> vector<8x1024xf32>
    %89 = vector.broadcast %85 : vector<1x1024xf32> to vector<8x1024xf32>
    %90 = arith.addf %88, %89 : vector<8x1024xf32>
    %91 = vector.extract_strided_slice %84 {offsets = [1, 0], sizes = [1, 1024], strides = [1, 1]} : vector<3x1024xf32> to vector<1x1024xf32>
    %92 = vector.extract_strided_slice %84 {offsets = [2, 0], sizes = [1, 1024], strides = [1, 1]} : vector<3x1024xf32> to vector<1x1024xf32>
    %cst_36 = arith.constant dense<0.000000e+00> : vector<1024xf32>
    %93 = vector.multi_reduction <add>, %90, %cst_36 [0] : vector<8x1024xf32> to vector<1024xf32>
    %94 = vector.shape_cast %93 : vector<1024xf32> to vector<1x1024xf32>
    %cst_37 = arith.constant 8.000000e+00 : f32
    %95 = vector.broadcast %cst_37 : f32 to vector<1x1024xf32>
    %96 = arith.divf %94, %95 : vector<1x1024xf32>
    %97 = vector.broadcast %96 : vector<1x1024xf32> to vector<8x1024xf32>
    %98 = arith.subf %90, %97 : vector<8x1024xf32>
    %99 = arith.mulf %98, %98 : vector<8x1024xf32>
    %cst_38 = arith.constant dense<0.000000e+00> : vector<1024xf32>
    %100 = vector.multi_reduction <add>, %99, %cst_38 [0] : vector<8x1024xf32> to vector<1024xf32>
    %101 = vector.shape_cast %100 : vector<1024xf32> to vector<1x1024xf32>
    %cst_39 = arith.constant 8.000000e+00 : f32
    %102 = vector.broadcast %cst_39 : f32 to vector<1x1024xf32>
    %103 = arith.divf %101, %102 : vector<1x1024xf32>
    %104 = vector.broadcast %96 : vector<1x1024xf32> to vector<8x1024xf32>
    %105 = arith.subf %90, %104 : vector<8x1024xf32>
    %cst_40 = arith.constant 8.000000e-01 : f32
    %106 = vector.broadcast %cst_40 : f32 to vector<1x1024xf32>
    %107 = arith.addf %103, %106 : vector<1x1024xf32>
    %108 = math.rsqrt %107 : vector<1x1024xf32>
    %109 = vector.broadcast %108 : vector<1x1024xf32> to vector<8x1024xf32>
    %110 = arith.mulf %105, %109 : vector<8x1024xf32>
    %111 = vector.broadcast %91 : vector<1x1024xf32> to vector<8x1024xf32>
    %112 = arith.mulf %110, %111 : vector<8x1024xf32>
    %113 = vector.broadcast %92 : vector<1x1024xf32> to vector<8x1024xf32>
    %114 = arith.addf %112, %113 : vector<8x1024xf32>
    %cst_41 = arith.constant 0.000000e+00 : f32
    %115 = vector.broadcast %cst_41 : f32 to vector<8x1024xf32>
    %116 = arith.cmpf oge, %114, %115 : vector<8x1024xf32>
    %cst_42 = arith.constant 2.000000e-01 : f32
    %117 = vector.broadcast %cst_42 : f32 to vector<8x1024xf32>
    %118 = arith.mulf %117, %114 : vector<8x1024xf32>
    %119 = arith.select %116, %114, %118 : vector<8x1024xi1>, vector<8x1024xf32>
    %c0_43 = arith.constant 0 : index
    %c0_44 = arith.constant 0 : index
    %120 = vector.load %arg10[%c0_43, %c0_44] : memref<1x256xf32, #tpu.memory_space<vmem>>, vector<1x256xf32>
    %121 = arith.truncf %119 : vector<8x1024xf32> to vector<8x1024xbf16>
    %c0_45 = arith.constant 0 : index
    %c0_46 = arith.constant 0 : index
    %122 = vector.load %arg9[%c0_45, %c0_46] : memref<1024x256xbf16, #tpu.memory_space<vmem>>, vector<1024x256xbf16>
    %cst_47 = arith.constant dense<0.000000e+00> : vector<8x256xf32>
    %123 = tpu.matmul %121, %122, %cst_47 {dimension_numbers = #tpu.dot_dimension_numbers<[1], [0], [0], [1], [0, 0, 1, 1], [], []>} : vector<8x1024xbf16>, vector<1024x256xbf16>, vector<8x256xf32> -> vector<8x256xf32>
    %124 = vector.broadcast %120 : vector<1x256xf32> to vector<8x256xf32>
    %125 = arith.addf %123, %124 : vector<8x256xf32>
    %126 = math.tanh %125 : vector<8x256xf32>
    %c0_48 = arith.constant 0 : index
    %c0_49 = arith.constant 0 : index
    %127 = vector.load %arg11[%c0_48, %c0_49] : memref<8x256xf32, #tpu.memory_space<vmem>>, vector<8x256xf32>
    tpu.vector_store %arg11[%c0_48, %c0_49], %126 {strides = array<i32>} : memref<8x256xf32, #tpu.memory_space<vmem>>, vector<8x256xf32>,
    return
  }
}

</mosaic_0001>

<bundles_post_ra>
// kernel: tpu_custom_call.1
= control target key start
LH: loop header
LB: loop body
LE: loop exit
PB: predicated region body
PF: predicated region fallthrough
CT: control target
= control target key end

     0   :  { %16 = vsyncpa [#allocation3], 0  ;;  %s5919_s0 = inlined_call_operand.hbm [shape: f32[8,32], index: 0, kind: input, shape index: {}]   ;;  %s5920_s1 = inlined_call_operand.hbm [shape: bf16[32,128], index: 1, kind: input, shape index: {}]   ;;  %s5921_s2 = inlined_call_operand.vmem [shape: f32[1,128], index: 2, kind: input, shape index: {}]   ;;  %s5922_s3 = inlined_call_operand.hbm [shape: bf16[128,256], index: 3, kind: input, shape index: {}]   ;;  %s5923_s4 = inlined_call_operand.hbm [shape: f32[3,256], index: 4, kind: input, shape index: {}]   ;;  %s5924_s5 = inlined_call_operand.hbm [shape: bf16[256,512], index: 5, kind: input, shape index: {}]   ;;  %s5925_s6 = inlined_call_operand.vmem [shape: f32[3,512], index: 6, kind: input, shape index: {}]   ;;  %s5926_s7 = inlined_call_operand.hbm [shape: bf16[512,1024], index: 7, kind: input, shape index: {}]   ;;  %s5927_s8 = inlined_call_operand.hbm [shape: f32[3,1024], index: 8, kind: input, shape index: {}]   ;;  %s5928_s9 = inlined_call_operand.hbm [shape: bf16[1024,256], index: 9, kind: input, shape index: {}]   ;;  %s5929_s10 = inlined_call_operand.vmem [shape: f32[1,256], index: 10, kind: input, shape index: {}]   ;;  %s5930_s11 = inlined_call_operand.hbm [shape: f32[8,256], index: 11, kind: output, shape index: {}]  }
   0x1   :  { %17 = vsyncpa [#allocation6], 0 }
   0x2   :  { %18 = vsyncpa [#allocation9], 0 }
   0x3   :  { %19 = vsyncpa [#allocation12], 0 }
   0x4   :  { %20 = vsyncpa [#allocation15], 0 }
   0x5   :  { %21 = vsyncpa [#allocation4], 0  ;;  %s5484_s17 = smov [#allocation5]   ;;  %s5274_s21 = scalar_lea.hbm %s5920_s1, 256 }
   0x6   :  { %s37_s18 = sshll.u32 %s5484_s17, 4  ;;  %p5275_p0 = scmp.ne.s32.totalorder %s5920_s1, %s5274_s21  ;;  %s38_s18 = int_to_ptr.vmem [resolvable:$true] %s37_s18 }
   0x7   :  { %p5278_p1 = scmp.lt.u32.totalorder %s5274_s21, %s5920_s1 }
   0x9   :  { %p5280_p2 = pnand %p5278_p1, %p5275_p0 }
   0xb   :  { %5283 = shalt.err (!%p5280_p2)
}
   0xc   :  { %s5284_s26 = scalar_lea.vmem %s38_s18, 256  ;;  %p5289_p4 = scmp.lt.s32.totalorder %s38_s18, %s38_s18 }
   0xd   :  { %p5285_p3 = scmp.ne.s32.totalorder %s38_s18, %s5284_s26  ;;  %p5290_p5 = scmp.lt.s32.totalorder %s5284_s26, %s5284_s26 }
   0xf   :  { %p5291_p6 = por %p5290_p5, %p5289_p4 }
  0x11   :  { %p5292_p7 = pnand %p5291_p6, %p5285_p3 }
  0x13   :  { %5295 = shalt.err (!%p5292_p7)
}
  0x14   :  { %s5485_s27 = smov 64   ;;  %s5486_s28 = smov 4  }
  0x15   :  { %43 = dma.hbm_to_vmem [thread:$0]  %s5920_s1, 256, %s38_s18, [#allocation6], %s5485_s27, %s5485_s27, %s5486_s28  }
  0x16   :  { %s5487_s12 = smov [#allocation8]   ;;  %s5488_s14 = smov [#allocation11]  }
  0x17   :  { %s64_s13 = sshll.u32 %s5487_s12, 4  ;;  %s87_s15 = sshll.u32 %s5488_s14, 4  ;;  %s65_s13 = int_to_ptr.vmem [resolvable:$true] %s64_s13  ;;  %s88_s15 = int_to_ptr.vmem [resolvable:$true] %s87_s15 }
  0x18   :  { %s5296_s19 = scalar_lea.hbm %s5923_s4, 128 }
  0x19   :  { %p5297_p8 = scmp.ne.s32.totalorder %s5923_s4, %s5296_s19  ;;  %p5300_p9 = scmp.lt.u32.totalorder %s5296_s19, %s5923_s4 }
  0x1b   :  { %p5302_p10 = pnand %p5300_p9, %p5297_p8 }
  0x1d   :  { %5305 = shalt.err (!%p5302_p10)
}
  0x1e   :  { %s5306_s1 = scalar_lea.vmem %s65_s13, 128  ;;  %p5311_p12 = scmp.lt.s32.totalorder %s65_s13, %s65_s13 }
  0x1f   :  { %p5307_p11 = scmp.ne.s32.totalorder %s65_s13, %s5306_s1  ;;  %p5312_p13 = scmp.lt.s32.totalorder %s5306_s1, %s5306_s1 }
  0x21   :  { %p5313_p0 = por %p5312_p13, %p5311_p12 }
  0x23   :  { %p5314_p1 = pnand %p5313_p0, %p5307_p11 }
  0x25   :  { %5317 = shalt.err (!%p5314_p1)
}
  0x26   :  { %67 = dma.hbm_to_vmem [thread:$0]  %s5923_s4, 128, %s65_s13, [#allocation9]  }
  0x27   :  { %s5318_s27 = scalar_lea.hbm %s5926_s7, 32768 }
  0x28   :  { %p5319_p2 = scmp.ne.s32.totalorder %s5926_s7, %s5318_s27  ;;  %p5322_p3 = scmp.lt.u32.totalorder %s5318_s27, %s5926_s7 }
  0x2a   :  { %p5324_p4 = pnand %p5322_p3, %p5319_p2 }
  0x2c   :  { %5327 = shalt.err (!%p5324_p4)
}
  0x2d   :  { %s5328_s14 = scalar_lea.vmem %s88_s15, 32768  ;;  %p5333_p6 = scmp.lt.s32.totalorder %s88_s15, %s88_s15 }
  0x2e   :  { %p5329_p5 = scmp.ne.s32.totalorder %s88_s15, %s5328_s14  ;;  %p5334_p7 = scmp.lt.s32.totalorder %s5328_s14, %s5328_s14 }
  0x30   :  { %p5335_p8 = por %p5334_p7, %p5333_p6 }
  0x32   :  { %p5336_p9 = pnand %p5335_p8, %p5329_p5 }
  0x34   :  { %5339 = shalt.err (!%p5336_p9)
}
  0x35   :  { %s5489_s4 = smov 512   ;;  %s5490_s13 = smov 32  }
  0x36   :  { %93 = dma.hbm_to_vmem [thread:$0]  %s5926_s7, 32768, %s88_s15, [#allocation12], %s5489_s4, %s5489_s4, %s5490_s13  }
  0x37   :  { %s5491_s19 = smov [#allocation2]   ;;  %s5492_s21 = smov [#allocation7]  }
  0x38   :  { %s28_s20 = sshll.u32 %s5491_s19, 4  ;;  %s51_s22 = sshll.u32 %s5492_s21, 4  ;;  %s29_s20 = int_to_ptr.vmem [resolvable:$true] %s28_s20  ;;  %s52_s22 = int_to_ptr.vmem [resolvable:$true] %s51_s22 }
  0x39   :  { %s5340_s18 = scalar_lea.hbm %s5919_s0, 128 }
  0x3a   :  { %p5341_p10 = scmp.ne.s32.totalorder %s5919_s0, %s5340_s18  ;;  %p5344_p11 = scmp.lt.u32.totalorder %s5340_s18, %s5919_s0 }
  0x3c   :  { %p5346_p12 = pnand %p5344_p11, %p5341_p10 }
  0x3e   :  { %5349 = shalt.err (!%p5346_p12)
}
  0x3f   :  { %s5350_s7 = scalar_lea.vmem %s29_s20, 128  ;;  %p5355_p0 = scmp.lt.s32.totalorder %s29_s20, %s29_s20 }
  0x40   :  { %p5351_p13 = scmp.ne.s32.totalorder %s29_s20, %s5350_s7  ;;  %p5356_p1 = scmp.lt.s32.totalorder %s5350_s7, %s5350_s7 }
  0x42   :  { %p5357_p2 = por %p5356_p1, %p5355_p0 }
  0x44   :  { %p5358_p3 = pnand %p5357_p2, %p5351_p13 }
  0x46   :  { %5361 = shalt.err (!%p5358_p3)
}
  0x47   :  { %31 = dma.hbm_to_vmem [thread:$0]  %s5919_s0, 128, %s29_s20, [#allocation3]  }
  0x48   :  { %s5362_s12 = scalar_lea.hbm %s5922_s3, 2048 }
  0x49   :  { %p5363_p4 = scmp.ne.s32.totalorder %s5922_s3, %s5362_s12  ;;  %p5366_p5 = scmp.lt.u32.totalorder %s5362_s12, %s5922_s3 }
  0x4b   :  { %p5368_p6 = pnand %p5366_p5, %p5363_p4 }
  0x4d   :  { %5371 = shalt.err (!%p5368_p6)
}
  0x4e   :  { %s5372_s17 = scalar_lea.vmem %s52_s22, 2048  ;;  %p5377_p8 = scmp.lt.s32.totalorder %s52_s22, %s52_s22 }
  0x4f   :  { %p5373_p7 = scmp.ne.s32.totalorder %s52_s22, %s5372_s17  ;;  %p5378_p9 = scmp.lt.s32.totalorder %s5372_s17, %s5372_s17 }
  0x51   :  { %p5379_p10 = por %p5378_p9, %p5377_p8 }
  0x53   :  { %p5380_p11 = pnand %p5379_p10, %p5373_p7 }
  0x55   :  { %5383 = shalt.err (!%p5380_p11)
}
  0x56   :  { %s5493_s0 = smov 128   ;;  %s5494_s19 = smov 8  }
  0x57   :  { %57 = dma.hbm_to_vmem [thread:$0]  %s5922_s3, 2048, %s52_s22, [#allocation6], %s5493_s0, %s5493_s0, %s5494_s19  }
  0x58   :  { %s5495_s23 = smov [#allocation10]   ;;  %s5384_s25 = scalar_lea.hbm %s5924_s5, 8192 }
  0x59   :  { %s73_s1 = sshll.u32 %s5495_s23, 4  ;;  %p5385_p12 = scmp.ne.s32.totalorder %s5924_s5, %s5384_s25  ;;  %s74_s1 = int_to_ptr.vmem [resolvable:$true] %s73_s1 }
  0x5a   :  { %p5388_p13 = scmp.lt.u32.totalorder %s5384_s25, %s5924_s5 }
  0x5c   :  { %p5390_p0 = pnand %p5388_p13, %p5385_p12 }
  0x5e   :  { %5393 = shalt.err (!%p5390_p0)
}
  0x5f   :  { %s5394_s28 = scalar_lea.vmem %s74_s1, 8192  ;;  %p5399_p2 = scmp.lt.s32.totalorder %s74_s1, %s74_s1 }
  0x60   :  { %p5395_p1 = scmp.ne.s32.totalorder %s74_s1, %s5394_s28  ;;  %p5400_p3 = scmp.lt.s32.totalorder %s5394_s28, %s5394_s28 }
  0x62   :  { %p5401_p4 = por %p5400_p3, %p5399_p2 }
  0x64   :  { %p5402_p5 = pnand %p5401_p4, %p5395_p1 }
  0x66   :  { %5405 = shalt.err (!%p5402_p5)
}
  0x67   :  { %s5496_s3 = smov 256   ;;  %s5497_s22 = smov 16  }
  0x68   :  { %79 = dma.hbm_to_vmem [thread:$0]  %s5924_s5, 8192, %s74_s1, [#allocation9], %s5496_s3, %s5496_s3, %s5497_s22  }
  0x69   :  { %s5498_s12 = smov [#allocation13]   ;;  %s5499_s4 = smov [#allocation14]  }
  0x6a   :  { %s100_s14 = sshll.u32 %s5498_s12, 4  ;;  %s109_s13 = sshll.u32 %s5499_s4, 4  ;;  %s101_s14 = int_to_ptr.vmem [resolvable:$true] %s100_s14  ;;  %s5639_s13 = int_to_ptr.vmem [resolvable:$true] %s109_s13 }
  0x6b   :  { %s5406_s20 = scalar_lea.hbm %s5927_s8, 512 }
  0x6c   :  { %p5407_p6 = scmp.ne.s32.totalorder %s5927_s8, %s5406_s20  ;;  %p5410_p7 = scmp.lt.u32.totalorder %s5406_s20, %s5927_s8 }
  0x6e   :  { %p5412_p8 = pnand %p5410_p7, %p5407_p6 }
  0x70   :  { %5415 = shalt.err (!%p5412_p8)
}
  0x71   :  { %s5416_s5 = scalar_lea.vmem %s101_s14, 512  ;;  %p5421_p10 = scmp.lt.s32.totalorder %s101_s14, %s101_s14 }
  0x72   :  { %p5417_p9 = scmp.ne.s32.totalorder %s101_s14, %s5416_s5  ;;  %p5422_p11 = scmp.lt.s32.totalorder %s5416_s5, %s5416_s5 }
  0x74   :  { %p5423_p12 = por %p5422_p11, %p5421_p10 }
  0x76   :  { %p5424_p13 = pnand %p5423_p12, %p5417_p9 }
  0x78   :  { %5427 = shalt.err (!%p5424_p13)
}
  0x79   :  { %103 = dma.hbm_to_vmem [thread:$0]  %s5927_s8, 512, %s101_s14, [#allocation12]  }
  0x7a   :  { %s5428_s7 = scalar_lea.hbm %s5928_s9, 16384 }
  0x7b   :  { %p5429_p0 = scmp.ne.s32.totalorder %s5928_s9, %s5428_s7  ;;  %p5432_p1 = scmp.lt.u32.totalorder %s5428_s7, %s5928_s9 }
  0x7d   :  { %p5434_p2 = pnand %p5432_p1, %p5429_p0 }
  0x7f   :  { %5437 = shalt.err (!%p5434_p2)
}
  0x80   :  { %s5438_s29 = scalar_lea.vmem %s5639_s13, 16384  ;;  %p5443_p4 = scmp.lt.s32.totalorder %s5639_s13, %s5639_s13 }
  0x81   :  { %p5439_p3 = scmp.ne.s32.totalorder %s5639_s13, %s5438_s29  ;;  %p5444_p5 = scmp.lt.s32.totalorder %s5438_s29, %s5438_s29 }
  0x83   :  { %p5445_p6 = por %p5444_p5, %p5443_p4 }
  0x85   :  { %p5446_p7 = pnand %p5445_p6, %p5439_p3 }
  0x87   :  { %5449 = shalt.err (!%p5446_p7)
}
  0x88   :  { %115 = dma.hbm_to_vmem [thread:$0]  %s5928_s9, 16384, %s5639_s13, [#allocation15], %s5493_s0, %s5493_s0, %s5494_s19  }
  0x89   :  { %5472 = dma.done.wait [#allocation3], 128  }
  0x8a   :  { %5473 = vsyncadd [#allocation3], 4294967168 }
  0x8b   :  { %5474 = dma.done.wait [#allocation6], 2304  }
  0x8c   :  { %5475 = vsyncadd [#allocation6], 4294964992 }
  0x8d   :  { %5476 = dma.done.wait [#allocation9], 8320  }
  0x8e   :  { %5477 = vsyncadd [#allocation9], 4294958976 }
  0x8f   :  { %5478 = dma.done.wait [#allocation12], 33280  }
  0x90   :  { %5479 = vsyncadd [#allocation12], 4294934016 }
  0x91   :  { %5480 = dma.done.wait [#allocation15], 16384  }
  0x92   :  { %5481 = vsyncadd [#allocation15], 4294950912  ;;  %v5500_v0 = vmov 0.0   ;;  %vm5501_vm0 = vmmov 0   ;;  %v4928_v1 = vld [vmem:[#allocation5] sm:$0xff]   ;;  %v4929_v2 = vld [vmem:[#allocation5 + $0x8] sm:$0xff]  }
  0x93   :  { %4864 = vmatprep.subr.bf16.mxu0 %v5500_v0  ;;  %4868 = vmatprep.mubr.msk.bf16.mxu0 %vm5501_vm0, %v5500_v0  ;;  %v143_v3 = vld [vmem:[#allocation2] sm:$0xff]  ;;  %v4933_v6 = vld [vmem:[#allocation7 + $0x14] ss:$8 sps:$4 sm:$0xff]   ;;  %vm168_vm1 = vcmask 261120   ;;  %v4935_v8 = vld [vmem:[#allocation7 + $0x10] ss:$8 sps:$4 sm:$0xff]  }
  0x94   :  { %4865 = vmatpush3.bf16.msra.mxu0 %v4928_v1  ;;  %v4930_v4 = vld [vmem:[#allocation7 + $0x4] ss:$8 sps:$4 sm:$0xff]   ;;  %v4932_v5 = vld [vmem:[#allocation7] ss:$8 sps:$4 sm:$0xff]   ;;  %v145_v7 = vpack.c.bf16 %v143_v3, %v143_v3  ;;  %v4939_v11 = vld [vmem:[#allocation7 + $0x34] ss:$8 sps:$4 sm:$0xff]  }
  0x95   :  { %4866 = vmatprep.subr.bf16.mxu0 %v5500_v0  ;;  %332 = vmatprep.subr.bf16.mxu1 %v4930_v4  ;;  %v4936_v9 = vld [vmem:[#allocation7 + $0x24] ss:$8 sps:$4 sm:$0xff]   ;;  %v4938_v10 = vld [vmem:[#allocation7 + $0x20] ss:$8 sps:$4 sm:$0xff]   ;;  %v4941_v12 = vld [vmem:[#allocation7 + $0x30] ss:$8 sps:$4 sm:$0xff]   ;;  %v234_v0 = vlaneseq }
  0x96   :  { %333 = vmatpush1.bf16.msra.mxu1 %v4932_v5  ;;  %v4942_v13 = vld [vmem:[#allocation7 + $0x44] ss:$8 sps:$4 sm:$0xff]   ;;  %v4944_v14 = vld [vmem:[#allocation7 + $0x40] ss:$8 sps:$4 sm:$0xff]   ;;  %v4945_v15 = vld [vmem:[#allocation7 + $0x54] ss:$8 sps:$4 sm:$0xff]  }
  0x97   :  { %334 = vmatprep.subr.bf16.mxu1 %v4933_v6  ;;  %v4947_v16 = vld [vmem:[#allocation7 + $0x50] ss:$8 sps:$4 sm:$0xff]   ;;  %v4948_v17 = vld [vmem:[#allocation7 + $0x64] ss:$8 sps:$4 sm:$0xff]   ;;  %v4950_v18 = vld [vmem:[#allocation7 + $0x60] ss:$8 sps:$4 sm:$0xff]  }
  0x98   :  { %4867 = vmatpush3.bf16.msra.mxu0 %v4929_v2  ;;  %v4951_v19 = vld [vmem:[#allocation7 + $0x74] ss:$8 sps:$4 sm:$0xff]   ;;  %v4953_v20 = vld [vmem:[#allocation7 + $0x70] ss:$8 sps:$4 sm:$0xff]   ;;  %v5502_v21 = vmov 0   ;;  %v235_v1 = vshrl.u32 %v234_v0, 7 }
  0x99   :  { %364 = vmatprep.mubr.bf16.mxu1 %v5502_v21  ;;  %v4956_v22 = vld [vmem:[#allocation10 + $0x4] ss:$16 sps:$4 sm:$0xff]   ;;  %v4393_v23 = vld [vmem:[%s5921_s2] ss:$0 sm:$0xff]  ;;  %v5004_v63 = vld [vmem:[#allocation10 + $0xc] ss:$16 sps:$4 sm:$0xff]  }
  0x9a   :  { %335 = vmatpush1.bf16.msra.mxu1 %v4935_v8  ;;  %v4954_v31 = vld [vmem:[#allocation10] ss:$16 sps:$4 sm:$0xff]   ;;  %v4959_v33 = vld [vmem:[#allocation10 + $0x24] ss:$16 sps:$4 sm:$0xff]   ;;  %v5676_v2 = vsub.s32 0, %v235_v1  ;;  %v5680_v4 = vsub.s32 4, %v235_v1 }
  0x9b   :  { %4869 = vmatmul.mubr.msk.bf16.vlgmr.msra.gmra.mrb[0].mxu0 %vm168_vm1, %v145_v7  ;;  %336 = vmatprep.subr.bf16.mxu1 %v4936_v9  ;;  %v4957_v34 = vld [vmem:[#allocation10 + $0x20] ss:$16 sps:$4 sm:$0xff]   ;;  %v4962_v35 = vld [vmem:[#allocation10 + $0x44] ss:$16 sps:$4 sm:$0xff]   ;;  %v5678_v3 = vld [vmem:[#allocation8] sm:$0x77] }
  0x9c   :  { %v4960_v36 = vld [vmem:[#allocation10 + $0x40] ss:$16 sps:$4 sm:$0xff]   ;;  %v4965_v37 = vld [vmem:[#allocation10 + $0x64] ss:$16 sps:$4 sm:$0xff]   ;;  %v237_v5 = vrot.slane %v5678_v3, %v5676_v2  ;;  %v241_v6 = vrot.slane %v5678_v3, %v5680_v4  ;;  %s5503_s13 = smov [#allocation16]  }
  0x9d   :  { %v4963_v38 = vld [vmem:[#allocation10 + $0x60] ss:$16 sps:$4 sm:$0xff]   ;;  %v4968_v39 = vld [vmem:[#allocation10 + $0x84] ss:$16 sps:$4 sm:$0xff]   ;;  %s4380_s16 = sshll.u32 %s5503_s13, 4  ;;  %s4381_s16 = int_to_ptr.vmem [resolvable:$true] %s4380_s16 }
  0x9e   :  { %337 = vmatpush1.bf16.msra.mxu1 %v4938_v10  ;;  %v4966_v40 = vld [vmem:[#allocation10 + $0x80] ss:$16 sps:$4 sm:$0xff]   ;;  %v4971_v41 = vld [vmem:[#allocation10 + $0xa4] ss:$16 sps:$4 sm:$0xff]   ;;  %v247_v7 = vrot.slane %v237_v5, %v5676_v2  ;;  %v251_v8 = vrot.slane %v241_v6, %v5676_v2  ;;  %p5455_p9 = scmp.lt.s32.totalorder %s4381_s16, %s4381_s16 }
  0x9f   :  { %338 = vmatprep.subr.bf16.mxu1 %v4939_v11  ;;  %v4969_v42 = vld [vmem:[#allocation10 + $0xa0] ss:$16 sps:$4 sm:$0xff]   ;;  %v4974_v43 = vld [vmem:[#allocation10 + $0xc4] ss:$16 sps:$4 sm:$0xff]  }
  0xa0   :  { %v4972_v44 = vld [vmem:[#allocation10 + $0xc0] ss:$16 sps:$4 sm:$0xff]   ;;  %v4977_v45 = vld [vmem:[#allocation10 + $0xe4] ss:$16 sps:$4 sm:$0xff]  }
  0xa1   :  { %v4975_v46 = vld [vmem:[#allocation10 + $0xe0] ss:$16 sps:$4 sm:$0xff]   ;;  %v4980_v47 = vld [vmem:[#allocation10 + $0x104] ss:$16 sps:$4 sm:$0xff]  }
  0xa2   :  { %339 = vmatpush1.bf16.msra.mxu1 %v4941_v12  ;;  %v4978_v48 = vld [vmem:[#allocation10 + $0x100] ss:$16 sps:$4 sm:$0xff]   ;;  %v4983_v49 = vld [vmem:[#allocation10 + $0x124] ss:$16 sps:$4 sm:$0xff]  }
  0xa3   :  { %340 = vmatprep.subr.bf16.mxu1 %v4942_v13  ;;  %v4981_v50 = vld [vmem:[#allocation10 + $0x120] ss:$16 sps:$4 sm:$0xff]   ;;  %v4986_v51 = vld [vmem:[#allocation10 + $0x144] ss:$16 sps:$4 sm:$0xff]  }
  0xa4   :  { %v4984_v52 = vld [vmem:[#allocation10 + $0x140] ss:$16 sps:$4 sm:$0xff]   ;;  %v4989_v53 = vld [vmem:[#allocation10 + $0x164] ss:$16 sps:$4 sm:$0xff]  }
  0xa5   :  { %v4987_v54 = vld [vmem:[#allocation10 + $0x160] ss:$16 sps:$4 sm:$0xff]   ;;  %v4992_v55 = vld [vmem:[#allocation10 + $0x184] ss:$16 sps:$4 sm:$0xff]  }
  0xa6   :  { %341 = vmatpush1.bf16.msra.mxu1 %v4944_v14  ;;  %v4990_v56 = vld [vmem:[#allocation10 + $0x180] ss:$16 sps:$4 sm:$0xff]   ;;  %v4995_v57 = vld [vmem:[#allocation10 + $0x1a4] ss:$16 sps:$4 sm:$0xff]  }
  0xa7   :  { %342 = vmatprep.subr.bf16.mxu1 %v4945_v15  ;;  %v4993_v58 = vld [vmem:[#allocation10 + $0x1a0] ss:$16 sps:$4 sm:$0xff]   ;;  %v4998_v59 = vld [vmem:[#allocation10 + $0x1c4] ss:$16 sps:$4 sm:$0xff]  }
  0xa8   :  { %v4996_v60 = vld [vmem:[#allocation10 + $0x1c0] ss:$16 sps:$4 sm:$0xff]   ;;  %v5001_v61 = vld [vmem:[#allocation10 + $0x1e4] ss:$16 sps:$4 sm:$0xff]  }
  0xa9   :  { %v4999_v62 = vld [vmem:[#allocation10 + $0x1e0] ss:$16 sps:$4 sm:$0xff]  }
  0xaa   :  { %343 = vmatpush1.bf16.msra.mxu1 %v4947_v16 }
  0xab   :  { %344 = vmatprep.subr.bf16.mxu1 %v4948_v17 }
  0xae   :  { %345 = vmatpush1.bf16.msra.mxu1 %v4950_v18 }
  0xaf   :  { %346 = vmatprep.subr.bf16.mxu1 %v4951_v19 }
  0xb2   :  { %347 = vmatpush1.bf16.msra.mxu1 %v4953_v20 }
  0xb3   :  { %884 = vmatprep.subr.bf16.mxu1 %v4956_v22 }
 0x16e   :  { %v206_v24 = vpop.f32.mrb[0].mxu0 }
 0x16f   :  { %v207_v25 = vadd.f32 %v4393_v23, %v206_v24  ;;  %v4870_v26 = vpop.f32.mrb[1].mxu0 }
 0x170   :  { %v209_v27 = vpop.f32.mrb[2].mxu0 }
 0x171   :  { %vm212_vm2 = vcmp.ge.f32.partialorder %v207_v25, 0.0  ;;  %v213_v28 = vmul.f32 0.2, %v207_v25  ;;  %v4871_v29 = vpop.f32.mrb[3].mxu0 }
 0x173   :  { %v214_v30 = vsel %vm212_vm2, %v207_v25, %v213_v28 }
 0x174   :  { %v216_v32 = vpack.c.bf16 %v214_v30, %v214_v30 }
 0x176   :  { %365 = vmatmul.mubr.bf16.vlgmr.msra.gmra.mrb[0].mxu1 %v216_v32 }
 0x177   :  { %885 = vmatpush1.bf16.msra.mxu1 %v4954_v31 }
 0x178   :  { %886 = vmatprep.subr.bf16.mxu1 %v4959_v33 }
 0x17b   :  { %887 = vmatpush1.bf16.msra.mxu1 %v4957_v34 }
 0x17c   :  { %888 = vmatprep.subr.bf16.mxu1 %v4962_v35 }
 0x17f   :  { %889 = vmatpush1.bf16.msra.mxu1 %v4960_v36 }
 0x180   :  { %890 = vmatprep.subr.bf16.mxu1 %v4965_v37 }
 0x183   :  { %891 = vmatpush1.bf16.msra.mxu1 %v4963_v38 }
 0x184   :  { %892 = vmatprep.subr.bf16.mxu1 %v4968_v39 }
 0x187   :  { %893 = vmatpush1.bf16.msra.mxu1 %v4966_v40 }
 0x188   :  { %894 = vmatprep.subr.bf16.mxu1 %v4971_v41 }
 0x18b   :  { %895 = vmatpush1.bf16.msra.mxu1 %v4969_v42 }
 0x18c   :  { %896 = vmatprep.subr.bf16.mxu1 %v4974_v43 }
 0x18f   :  { %897 = vmatpush1.bf16.msra.mxu1 %v4972_v44 }
 0x190   :  { %898 = vmatprep.subr.bf16.mxu1 %v4977_v45 }
 0x193   :  { %899 = vmatpush1.bf16.msra.mxu1 %v4975_v46 }
 0x194   :  { %900 = vmatprep.subr.bf16.mxu1 %v4980_v47 }
 0x197   :  { %901 = vmatpush1.bf16.msra.mxu1 %v4978_v48 }
 0x198   :  { %902 = vmatprep.subr.bf16.mxu1 %v4983_v49  ;;  %v5688_v49 = vsub.s32 1, %v235_v1 }
 0x19b   :  { %903 = vmatpush1.bf16.msra.mxu1 %v4981_v50  ;;  %v5690_v50 = vsub.s32 5, %v235_v1 }
 0x19c   :  { %904 = vmatprep.subr.bf16.mxu1 %v4986_v51  ;;  %v5692_v51 = vsub.s32 2, %v235_v1 }
 0x19f   :  { %905 = vmatpush1.bf16.msra.mxu1 %v4984_v52  ;;  %v5694_v52 = vsub.s32 6, %v235_v1 }
 0x1a0   :  { %906 = vmatprep.subr.bf16.mxu1 %v4989_v53  ;;  %v415_v53 = vrot.slane %v5678_v3, %v5688_v49 }
 0x1a3   :  { %907 = vmatpush1.bf16.msra.mxu1 %v4987_v54  ;;  %v419_v54 = vrot.slane %v5678_v3, %v5690_v50 }
 0x1a4   :  { %908 = vmatprep.subr.bf16.mxu1 %v4992_v55  ;;  %v435_v55 = vrot.slane %v5678_v3, %v5692_v51 }
 0x1a7   :  { %909 = vmatpush1.bf16.msra.mxu1 %v4990_v56  ;;  %v439_v56 = vrot.slane %v5678_v3, %v5694_v52 }
 0x1a8   :  { %910 = vmatprep.subr.bf16.mxu1 %v4995_v57  ;;  %v425_v57 = vrot.slane %v415_v53, %v5688_v49  ;;  %v1154_v53 = vld [vmem:[#allocation11 + $0x60] sm:$0xff] }
 0x1a9   :  { %v449_v0 = vrot.slane %v439_v56, %v5692_v51  ;;  %v1158_v56 = vld [vmem:[#allocation11 + $0x80] sm:$0xff] }
 0x1ab   :  { %911 = vmatpush1.bf16.msra.mxu1 %v4993_v58 }
 0x1ac   :  { %912 = vmatprep.subr.bf16.mxu1 %v4998_v59  ;;  %v429_v59 = vrot.slane %v419_v54, %v5688_v49 }
 0x1af   :  { %913 = vmatpush1.bf16.msra.mxu1 %v4996_v60 }
 0x1b0   :  { %914 = vmatprep.subr.bf16.mxu1 %v5001_v61 }
 0x1b3   :  { %915 = vmatpush1.bf16.msra.mxu1 %v4999_v62  ;;  %v445_v62 = vrot.slane %v435_v55, %v5692_v51 }
 0x1b4   :  { %925 = vmatprep.subr.bf16.mxu1 %v5004_v63 }
 0x249   :  { %v366_v9 = vpop.f32.mrb[0].mxu1 }
 0x24a   :  { %v367_v10 = vadd.f32 %v366_v9, %v247_v7  ;;  %v368_v11 = vpop.f32.mrb[1].mxu1 }
 0x24b   :  { %v369_v12 = vadd.f32 %v368_v11, %v251_v8  ;;  %v370_v13 = vpop.f32.mrb[2].mxu1 }
 0x24c   :  { %v373_v14 = vrot.slane %v367_v10, 4  ;;  %v371_v15 = vpop.f32.mrb[3].mxu1 }
 0x24d   :  { %v379_v16 = vrot.slane %v369_v12, 4  ;;  %v5005_v15 = vld [vmem:[#allocation10 + $0x28] ss:$16 sps:$4 sm:$0xff]  }
 0x24e   :  { %v374_v17 = vadd.f32 %v373_v14, %v367_v10  ;;  %v5007_v14 = vld [vmem:[#allocation10 + $0x2c] ss:$16 sps:$4 sm:$0xff]  }
 0x24f   :  { %v380_v18 = vadd.f32 %v379_v16, %v369_v12  ;;  %v5010_v16 = vld [vmem:[#allocation10 + $0x4c] ss:$16 sps:$4 sm:$0xff]  }
 0x250   :  { %v375_v19 = vrot.slane %v374_v17, 2 }
 0x251   :  { %v381_v20 = vrot.slane %v380_v18, 2 }
 0x252   :  { %v376_v21 = vadd.f32 %v375_v19, %v374_v17  ;;  %v5008_v17 = vld [vmem:[#allocation10 + $0x48] ss:$16 sps:$4 sm:$0xff]  }
 0x253   :  { %v382_v22 = vadd.f32 %v381_v20, %v380_v18  ;;  %v5013_v18 = vld [vmem:[#allocation10 + $0x6c] ss:$16 sps:$4 sm:$0xff]   ;;  %v5011_v19 = vld [vmem:[#allocation10 + $0x68] ss:$16 sps:$4 sm:$0xff]  }
 0x254   :  { %v377_v23 = vrot.slane %v376_v21, 1  ;;  %v5016_v20 = vld [vmem:[#allocation10 + $0x8c] ss:$16 sps:$4 sm:$0xff]  }
 0x255   :  { %v383_v24 = vrot.slane %v382_v22, 1 }
 0x256   :  { %v378_v25 = vadd.f32 %v377_v23, %v376_v21  ;;  %v5014_v21 = vld [vmem:[#allocation10 + $0x88] ss:$16 sps:$4 sm:$0xff]  }
 0x257   :  { %v384_v26 = vadd.f32 %v383_v24, %v382_v22  ;;  %v5019_v22 = vld [vmem:[#allocation10 + $0xac] ss:$16 sps:$4 sm:$0xff]   ;;  %v5017_v23 = vld [vmem:[#allocation10 + $0xa8] ss:$16 sps:$4 sm:$0xff]  }
 0x258   :  { %v386_v27 = vmul.f32 0.125, %v378_v25  ;;  %v5022_v24 = vld [vmem:[#allocation10 + $0xcc] ss:$16 sps:$4 sm:$0xff]   ;;  %v5020_v25 = vld [vmem:[#allocation10 + $0xc8] ss:$16 sps:$4 sm:$0xff]  }
 0x259   :  { %v387_v28 = vmul.f32 0.125, %v384_v26  ;;  %v5025_v26 = vld [vmem:[#allocation10 + $0xec] ss:$16 sps:$4 sm:$0xff]  }
 0x25a   :  { %v388_v29 = vsub.f32 %v367_v10, %v386_v27  ;;  %v5023_v27 = vld [vmem:[#allocation10 + $0xe8] ss:$16 sps:$4 sm:$0xff]  }
 0x25b   :  { %v389_v30 = vsub.f32 %v369_v12, %v387_v28  ;;  %v5002_v12 = vld [vmem:[#allocation10 + $0x8] ss:$16 sps:$4 sm:$0xff]   ;;  %v5028_v28 = vld [vmem:[#allocation10 + $0x10c] ss:$16 sps:$4 sm:$0xff]  }
 0x25c   :  { %v390_v31 = vmul.f32 %v388_v29, %v388_v29 }
 0x25d   :  { %v391_v32 = vmul.f32 %v389_v30, %v389_v30 }
 0x25e   :  { %v392_v33 = vrot.slane %v390_v31, 4 }
 0x25f   :  { %v398_v34 = vrot.slane %v391_v32, 4 }
 0x260   :  { %v393_v35 = vadd.f32 %v392_v33, %v390_v31  ;;  %v5029_v31 = vld [vmem:[#allocation10 + $0x128] ss:$16 sps:$4 sm:$0xff]  }
 0x261   :  { %v399_v36 = vadd.f32 %v398_v34, %v391_v32  ;;  %v5034_v32 = vld [vmem:[#allocation10 + $0x14c] ss:$16 sps:$4 sm:$0xff]   ;;  %v5032_v33 = vld [vmem:[#allocation10 + $0x148] ss:$16 sps:$4 sm:$0xff]  }
 0x262   :  { %v394_v37 = vrot.slane %v393_v35, 2  ;;  %v5037_v34 = vld [vmem:[#allocation10 + $0x16c] ss:$16 sps:$4 sm:$0xff]  }
 0x263   :  { %v400_v38 = vrot.slane %v399_v36, 2 }
 0x264   :  { %v395_v39 = vadd.f32 %v394_v37, %v393_v35  ;;  %v5035_v35 = vld [vmem:[#allocation10 + $0x168] ss:$16 sps:$4 sm:$0xff]  }
 0x265   :  { %v401_v40 = vadd.f32 %v400_v38, %v399_v36  ;;  %v5040_v36 = vld [vmem:[#allocation10 + $0x18c] ss:$16 sps:$4 sm:$0xff]   ;;  %v5038_v37 = vld [vmem:[#allocation10 + $0x188] ss:$16 sps:$4 sm:$0xff]  }
 0x266   :  { %v396_v41 = vrot.slane %v395_v39, 1  ;;  %v5043_v38 = vld [vmem:[#allocation10 + $0x1ac] ss:$16 sps:$4 sm:$0xff]  }
 0x267   :  { %v402_v42 = vrot.slane %v401_v40, 1 }
 0x268   :  { %v397_v43 = vadd.f32 %v396_v41, %v395_v39  ;;  %v5041_v39 = vld [vmem:[#allocation10 + $0x1a8] ss:$16 sps:$4 sm:$0xff]  }
 0x269   :  { %v403_v44 = vadd.f32 %v402_v42, %v401_v40  ;;  %v5046_v40 = vld [vmem:[#allocation10 + $0x1cc] ss:$16 sps:$4 sm:$0xff]   ;;  %v5044_v41 = vld [vmem:[#allocation10 + $0x1c8] ss:$16 sps:$4 sm:$0xff]  }
 0x26a   :  { %v404_v45 = vmul.f32 0.125, %v397_v43  ;;  %v5049_v42 = vld [vmem:[#allocation10 + $0x1ec] ss:$16 sps:$4 sm:$0xff]   ;;  %v1142_v43 = vld [vmem:[#allocation11] sm:$0xff] }
 0x26b   :  { %v405_v46 = vmul.f32 0.125, %v403_v44  ;;  %v1146_v44 = vld [vmem:[#allocation11 + $0x20] sm:$0xff] }
 0x26c   :  { %v406_v47 = vadd.f32 0.8, %v404_v45  ;;  %v5047_v45 = vld [vmem:[#allocation10 + $0x1e8] ss:$16 sps:$4 sm:$0xff]  }
 0x26d   :  { %v407_v48 = vadd.f32 0.8, %v405_v46  ;;  %v4478_v46 = vcombine.high %v1142_v43, %v1146_v44 }
 0x26e   :  { %5242 = vrsqrt.f32 %v406_v47  ;;  %v4477_v47 = vcombine.low %v1142_v43, %v1146_v44  ;;  %v1258_v43 = vld [vmem:[#allocation11 + $0x3a0] sm:$0xff] }
 0x26f   :  { %5244 = vrsqrt.f32 %v407_v48  ;;  %v1150_v48 = vld [vmem:[#allocation11 + $0x40] sm:$0xff] }
 0x270   :  { %v4486_v54 = vcombine.high %v1150_v48, %v1154_v53  ;;  %v4485_v55 = vcombine.low %v1150_v48, %v1154_v53  ;;  %v1270_v48 = vld [vmem:[#allocation11 + $0x400] sm:$0xff] }
 0x278   :  { %v5243_v58 = vpop.eup %5242 }
 0x279   :  { %v5245_v60 = vpop.eup %5244  ;;  %v410_v61 = vmul.f32 %v5243_v58, %v388_v29  ;;  %v5026_v29 = vld [vmem:[#allocation10 + $0x108] ss:$16 sps:$4 sm:$0xff]  }
 0x27a   :  { %v411_v63 = vmul.f32 %v5245_v60, %v389_v30  ;;  %v5031_v30 = vld [vmem:[#allocation10 + $0x12c] ss:$16 sps:$4 sm:$0xff]   ;;  %v1166_v60 = vld [vmem:[#allocation11 + $0xc0] sm:$0xff] }
 0x27b   :  { %v430_v1 = vmul.f32 %v425_v57, %v410_v61  ;;  %v1162_v57 = vld [vmem:[#allocation11 + $0xa0] sm:$0xff] }
 0x27c   :  { %v431_v5 = vmul.f32 %v429_v59, %v411_v63  ;;  %v4494_v58 = vcombine.high %v1158_v56, %v1162_v57  ;;  %v4493_v59 = vcombine.low %v1158_v56, %v1162_v57  ;;  %v1170_v61 = vld [vmem:[#allocation11 + $0xe0] sm:$0xff] }
 0x27d   :  { %v450_v6 = vadd.f32 %v445_v62, %v430_v1  ;;  %v4502_v62 = vcombine.high %v1166_v60, %v1170_v61  ;;  %v4501_v63 = vcombine.low %v1166_v60, %v1170_v61  ;;  %v1178_v1 = vld [vmem:[#allocation11 + $0x120] sm:$0xff] }
 0x27e   :  { %v451_v7 = vadd.f32 %v449_v0, %v431_v5  ;;  %v1174_v0 = vld [vmem:[#allocation11 + $0x100] sm:$0xff] }
 0x27f   :  { %vm452_vm3 = vcmp.ge.f32.partialorder %v450_v6, 0.0  ;;  %v454_v8 = vmul.f32 0.2, %v450_v6  ;;  %v4510_v5 = vcombine.high %v1174_v0, %v1178_v1 }
 0x280   :  { %vm453_vm4 = vcmp.ge.f32.partialorder %v451_v7, 0.0  ;;  %v455_v3 = vmul.f32 0.2, %v451_v7 }
 0x281   :  { %v456_v9 = vsel %vm452_vm3, %v450_v6, %v454_v8  ;;  %v4509_v6 = vcombine.low %v1174_v0, %v1178_v1  ;;  %v1186_v8 = vld [vmem:[#allocation11 + $0x160] sm:$0xff] }
 0x282   :  { %v457_v10 = vsel %vm453_vm4, %v451_v7, %v455_v3  ;;  %v5708_v13 = vpack.c.bf16 %v456_v9, %v456_v9  ;;  %v1182_v7 = vld [vmem:[#allocation11 + $0x140] sm:$0xff] }
 0x283   :  { %v461_v11 = vpack.c.bf16 %v457_v10, %v457_v10  ;;  %v4518_v3 = vcombine.high %v1182_v7, %v1186_v8  ;;  %v4517_v9 = vcombine.low %v1182_v7, %v1186_v8  ;;  %v1190_v10 = vld [vmem:[#allocation11 + $0x180] sm:$0xff] }
 0x285   :  { %916 = vmatprep.mubr.bf16.mxu1 %v461_v11 }
 0x286   :  { %917 = vmatmul.mubr.bf16.vlgmr.msra.gmra.mrb[4].mxu1 %v5708_v13 }
 0x287   :  { %926 = vmatpush1.bf16.msra.mxu1 %v5002_v12  ;;  %957 = vmatprep.mubr.bf16.mxu1 %v461_v11  ;;  %v1194_v11 = vld [vmem:[#allocation11 + $0x1a0] sm:$0xff] }
 0x288   :  { %927 = vmatprep.subr.bf16.mxu1 %v5007_v14  ;;  %v4526_v12 = vcombine.high %v1190_v10, %v1194_v11  ;;  %v1198_v14 = vld [vmem:[#allocation11 + $0x1c0] sm:$0xff] }
 0x28b   :  { %928 = vmatpush1.bf16.msra.mxu1 %v5005_v15  ;;  %v1202_v15 = vld [vmem:[#allocation11 + $0x1e0] sm:$0xff] }
 0x28c   :  { %929 = vmatprep.subr.bf16.mxu1 %v5010_v16  ;;  %v4534_v16 = vcombine.high %v1198_v14, %v1202_v15 }
 0x28f   :  { %930 = vmatpush1.bf16.msra.mxu1 %v5008_v17  ;;  %v4533_v17 = vcombine.low %v1198_v14, %v1202_v15 }
 0x290   :  { %931 = vmatprep.subr.bf16.mxu1 %v5013_v18  ;;  %v1206_v18 = vld [vmem:[#allocation11 + $0x200] sm:$0xff] }
 0x293   :  { %932 = vmatpush1.bf16.msra.mxu1 %v5011_v19  ;;  %v1210_v19 = vld [vmem:[#allocation11 + $0x220] sm:$0xff] }
 0x294   :  { %933 = vmatprep.subr.bf16.mxu1 %v5016_v20  ;;  %v4542_v20 = vcombine.high %v1206_v18, %v1210_v19 }
 0x297   :  { %934 = vmatpush1.bf16.msra.mxu1 %v5014_v21  ;;  %v4541_v21 = vcombine.low %v1206_v18, %v1210_v19 }
 0x298   :  { %935 = vmatprep.subr.bf16.mxu1 %v5019_v22  ;;  %v1214_v22 = vld [vmem:[#allocation11 + $0x240] sm:$0xff] }
 0x29b   :  { %936 = vmatpush1.bf16.msra.mxu1 %v5017_v23  ;;  %v1218_v23 = vld [vmem:[#allocation11 + $0x260] sm:$0xff] }
 0x29c   :  { %937 = vmatprep.subr.bf16.mxu1 %v5022_v24  ;;  %v4550_v24 = vcombine.high %v1214_v22, %v1218_v23 }
 0x29f   :  { %938 = vmatpush1.bf16.msra.mxu1 %v5020_v25  ;;  %v4549_v25 = vcombine.low %v1214_v22, %v1218_v23 }
 0x2a0   :  { %939 = vmatprep.subr.bf16.mxu1 %v5025_v26  ;;  %v1222_v26 = vld [vmem:[#allocation11 + $0x280] sm:$0xff] }
 0x2a3   :  { %940 = vmatpush1.bf16.msra.mxu1 %v5023_v27  ;;  %v1226_v27 = vld [vmem:[#allocation11 + $0x2a0] sm:$0xff] }
 0x2a4   :  { %941 = vmatprep.subr.bf16.mxu1 %v5028_v28  ;;  %v4558_v28 = vcombine.high %v1222_v26, %v1226_v27 }
 0x2a7   :  { %942 = vmatpush1.bf16.msra.mxu1 %v5026_v29  ;;  %v4557_v29 = vcombine.low %v1222_v26, %v1226_v27 }
 0x2a8   :  { %943 = vmatprep.subr.bf16.mxu1 %v5031_v30  ;;  %v1230_v30 = vld [vmem:[#allocation11 + $0x2c0] sm:$0xff] }
 0x2ab   :  { %944 = vmatpush1.bf16.msra.mxu1 %v5029_v31  ;;  %v1234_v31 = vld [vmem:[#allocation11 + $0x2e0] sm:$0xff] }
 0x2ac   :  { %945 = vmatprep.subr.bf16.mxu1 %v5034_v32  ;;  %v4566_v32 = vcombine.high %v1230_v30, %v1234_v31 }
 0x2af   :  { %946 = vmatpush1.bf16.msra.mxu1 %v5032_v33  ;;  %v4565_v33 = vcombine.low %v1230_v30, %v1234_v31 }
 0x2b0   :  { %947 = vmatprep.subr.bf16.mxu1 %v5037_v34  ;;  %v1238_v34 = vld [vmem:[#allocation11 + $0x300] sm:$0xff] }
 0x2b3   :  { %948 = vmatpush1.bf16.msra.mxu1 %v5035_v35  ;;  %v1242_v35 = vld [vmem:[#allocation11 + $0x320] sm:$0xff] }
 0x2b4   :  { %949 = vmatprep.subr.bf16.mxu1 %v5040_v36  ;;  %v4574_v36 = vcombine.high %v1238_v34, %v1242_v35 }
 0x2b7   :  { %950 = vmatpush1.bf16.msra.mxu1 %v5038_v37  ;;  %v4573_v37 = vcombine.low %v1238_v34, %v1242_v35 }
 0x2b8   :  { %951 = vmatprep.subr.bf16.mxu1 %v5043_v38  ;;  %v1246_v38 = vld [vmem:[#allocation11 + $0x340] sm:$0xff] }
 0x2bb   :  { %952 = vmatpush1.bf16.msra.mxu1 %v5041_v39  ;;  %v1250_v39 = vld [vmem:[#allocation11 + $0x360] sm:$0xff] }
 0x2bc   :  { %953 = vmatprep.subr.bf16.mxu1 %v5046_v40  ;;  %v4582_v40 = vcombine.high %v1246_v38, %v1250_v39 }
 0x2bf   :  { %954 = vmatpush1.bf16.msra.mxu1 %v5044_v41  ;;  %v4581_v41 = vcombine.low %v1246_v38, %v1250_v39 }
 0x2c0   :  { %955 = vmatprep.subr.bf16.mxu1 %v5049_v42  ;;  %v1254_v42 = vld [vmem:[#allocation11 + $0x380] sm:$0xff] }
 0x2c1   :  { %v4590_v44 = vcombine.high %v1254_v42, %v1258_v43 }
 0x2c3   :  { %956 = vmatpush1.bf16.msra.mxu1 %v5047_v45  ;;  %v4589_v45 = vcombine.low %v1254_v42, %v1258_v43 }
 0x2c4   :  { %2754 = vmatprep.subr.bf16.mxu1 %v4478_v46  ;;  %v1262_v46 = vld [vmem:[#allocation11 + $0x3c0] sm:$0xff] }
 0x2c6   :  { %958 = vmatmul.mubr.bf16.vlgmr.msra.gmra.mrb[8].mxu1 %v5708_v13  ;;  %v4525_v13 = vcombine.low %v1190_v10, %v1194_v11 }
 0x2c7   :  { %2755 = vmatpush1.bf16.msra.mxu1 %v4477_v47  ;;  %v1266_v47 = vld [vmem:[#allocation11 + $0x3e0] sm:$0xff] }
 0x2c8   :  { %2756 = vmatprep.subr.bf16.mxu1 %v4486_v54  ;;  %v4597_v53 = vcombine.low %v1262_v46, %v1266_v47  ;;  %v4598_v54 = vcombine.high %v1262_v46, %v1266_v47 }
 0x2cb   :  { %2757 = vmatpush1.bf16.msra.mxu1 %v4485_v55  ;;  %v1274_v55 = vld [vmem:[#allocation11 + $0x420] sm:$0xff] }
 0x2cc   :  { %2758 = vmatprep.subr.bf16.mxu1 %v4494_v58  ;;  %v4605_v56 = vcombine.low %v1270_v48, %v1274_v55  ;;  %v4606_v57 = vcombine.high %v1270_v48, %v1274_v55  ;;  %v5712_v58 = vld [vmem:[#allocation11 + $0x8] sm:$0xff]  ;;  %v1374_v48 = vld [vmem:[#allocation11 + $0x740] sm:$0xff] }
 0x2ce   :  { %2795 = vmatprep.subr.bf16.mxu0 %v4606_v57  ;;  %v1386_v57 = vld [vmem:[#allocation11 + $0x7a0] sm:$0xff] }
 0x2cf   :  { %2759 = vmatpush1.bf16.msra.mxu1 %v4493_v59  ;;  %2796 = vmatpush1.bf16.msra.mxu0 %v4605_v56  ;;  %v5714_v59 = vld [vmem:[#allocation11 + $0x28] sm:$0xff]  ;;  %v1382_v56 = vld [vmem:[#allocation11 + $0x780] sm:$0xff] }
 0x2d0   :  { %2760 = vmatprep.subr.bf16.mxu1 %v4502_v62  ;;  %v4480_v60 = vcombine.high %v5712_v58, %v5714_v59  ;;  %v4479_v61 = vcombine.low %v5712_v58, %v5714_v59  ;;  %v1278_v62 = vld [vmem:[#allocation11 + $0x440] sm:$0xff] }
 0x2d3   :  { %2761 = vmatpush1.bf16.msra.mxu1 %v4501_v63  ;;  %v1282_v63 = vld [vmem:[#allocation11 + $0x460] sm:$0xff] }
 0x2d4   :  { %2762 = vmatprep.subr.bf16.mxu1 %v4510_v5  ;;  %v4614_v0 = vcombine.high %v1278_v62, %v1282_v63  ;;  %v4613_v1 = vcombine.low %v1278_v62, %v1282_v63  ;;  %v1286_v5 = vld [vmem:[#allocation11 + $0x480] sm:$0xff]  ;;  %v4717_v62 = vcombine.low %v1382_v56, %v1386_v57 }
 0x2d5   :  { %v1390_v63 = vld [vmem:[#allocation11 + $0x7c0] sm:$0xff] }
 0x2d6   :  { %2797 = vmatprep.subr.bf16.mxu0 %v4614_v0  ;;  %v1394_v0 = vld [vmem:[#allocation11 + $0x7e0] sm:$0xff] }
 0x2d7   :  { %2763 = vmatpush1.bf16.msra.mxu1 %v4509_v6  ;;  %2798 = vmatpush1.bf16.msra.mxu0 %v4613_v1  ;;  %v1290_v6 = vld [vmem:[#allocation11 + $0x4a0] sm:$0xff]  ;;  %v5723_v1 = vld [vmem:[%s5925_s6] sm:$0x77] }
 0x2d8   :  { %2764 = vmatprep.subr.bf16.mxu1 %v4518_v3  ;;  %v4622_v7 = vcombine.high %v1286_v5, %v1290_v6  ;;  %v4621_v8 = vcombine.low %v1286_v5, %v1290_v6  ;;  %v1294_v3 = vld [vmem:[#allocation11 + $0x4c0] sm:$0xff]  ;;  %v4725_v5 = vcombine.low %v1390_v63, %v1394_v0  ;;  %v4726_v6 = vcombine.high %v1390_v63, %v1394_v0 }
 0x2d9   :  { %v1085_v63 = vrot.slane %v5723_v1, %v5692_v51  ;;  %v1089_v0 = vrot.slane %v5723_v1, %v5694_v52 }
 0x2da   :  { %2799 = vmatprep.subr.bf16.mxu0 %v4622_v7  ;;  %v531_v7 = vrot.slane %v5723_v1, %v5676_v2 }
 0x2db   :  { %2765 = vmatpush1.bf16.msra.mxu1 %v4517_v9  ;;  %2800 = vmatpush1.bf16.msra.mxu0 %v4621_v8  ;;  %v1298_v9 = vld [vmem:[#allocation11 + $0x4e0] sm:$0xff]  ;;  %v5727_v8 = vld [vmem:[#allocation11 + $0x10] sm:$0xff] }
 0x2dc   :  { %2766 = vmatprep.subr.bf16.mxu1 %v4526_v12  ;;  %v4630_v10 = vcombine.high %v1294_v3, %v1298_v9  ;;  %v4629_v11 = vcombine.low %v1294_v3, %v1298_v9  ;;  %v1302_v12 = vld [vmem:[#allocation11 + $0x500] sm:$0xff]  ;;  %v5729_v3 = vld [vmem:[#allocation11 + $0x30] sm:$0xff]  ;;  %v535_v9 = vrot.slane %v5723_v1, %v5680_v4 }
 0x2de   :  { %2801 = vmatprep.subr.bf16.mxu0 %v4630_v10  ;;  %v4482_v10 = vcombine.high %v5727_v8, %v5729_v3 }
 0x2df   :  { %2767 = vmatpush1.bf16.msra.mxu1 %v4525_v13  ;;  %2802 = vmatpush1.bf16.msra.mxu0 %v4629_v11  ;;  %v1306_v13 = vld [vmem:[#allocation11 + $0x520] sm:$0xff]  ;;  %v4481_v11 = vcombine.low %v5727_v8, %v5729_v3 }
 0x2e0   :  { %2768 = vmatprep.subr.bf16.mxu1 %v4534_v16  ;;  %v4638_v14 = vcombine.high %v1302_v12, %v1306_v13  ;;  %v4637_v15 = vcombine.low %v1302_v12, %v1306_v13  ;;  %v1310_v16 = vld [vmem:[#allocation11 + $0x540] sm:$0xff]  ;;  %v551_v12 = vrot.slane %v531_v7, %v5676_v2  ;;  %v555_v13 = vrot.slane %v535_v9, %v5676_v2 }
 0x2e2   :  { %2803 = vmatprep.subr.bf16.mxu0 %v4638_v14 }
 0x2e3   :  { %2769 = vmatpush1.bf16.msra.mxu1 %v4533_v17  ;;  %2804 = vmatpush1.bf16.msra.mxu0 %v4637_v15  ;;  %v1314_v17 = vld [vmem:[#allocation11 + $0x560] sm:$0xff] }
 0x2e4   :  { %2770 = vmatprep.subr.bf16.mxu1 %v4542_v20  ;;  %v4646_v18 = vcombine.high %v1310_v16, %v1314_v17  ;;  %v4645_v19 = vcombine.low %v1310_v16, %v1314_v17  ;;  %v1318_v20 = vld [vmem:[#allocation11 + $0x580] sm:$0xff] }
 0x2e6   :  { %2805 = vmatprep.subr.bf16.mxu0 %v4646_v18 }
 0x2e7   :  { %2771 = vmatpush1.bf16.msra.mxu1 %v4541_v21  ;;  %2806 = vmatpush1.bf16.msra.mxu0 %v4645_v19  ;;  %v1322_v21 = vld [vmem:[#allocation11 + $0x5a0] sm:$0xff] }
 0x2e8   :  { %2772 = vmatprep.subr.bf16.mxu1 %v4550_v24  ;;  %v4654_v22 = vcombine.high %v1318_v20, %v1322_v21  ;;  %v4653_v23 = vcombine.low %v1318_v20, %v1322_v21  ;;  %v1326_v24 = vld [vmem:[#allocation11 + $0x5c0] sm:$0xff] }
 0x2ea   :  { %2807 = vmatprep.subr.bf16.mxu0 %v4654_v22 }
 0x2eb   :  { %2773 = vmatpush1.bf16.msra.mxu1 %v4549_v25  ;;  %2808 = vmatpush1.bf16.msra.mxu0 %v4653_v23  ;;  %v1330_v25 = vld [vmem:[#allocation11 + $0x5e0] sm:$0xff] }
 0x2ec   :  { %2774 = vmatprep.subr.bf16.mxu1 %v4558_v28  ;;  %v4662_v26 = vcombine.high %v1326_v24, %v1330_v25  ;;  %v4661_v27 = vcombine.low %v1326_v24, %v1330_v25  ;;  %v1334_v28 = vld [vmem:[#allocation11 + $0x600] sm:$0xff] }
 0x2ee   :  { %2809 = vmatprep.subr.bf16.mxu0 %v4662_v26 }
 0x2ef   :  { %2775 = vmatpush1.bf16.msra.mxu1 %v4557_v29  ;;  %2810 = vmatpush1.bf16.msra.mxu0 %v4661_v27  ;;  %v1338_v29 = vld [vmem:[#allocation11 + $0x620] sm:$0xff] }
 0x2f0   :  { %2776 = vmatprep.subr.bf16.mxu1 %v4566_v32  ;;  %v4670_v30 = vcombine.high %v1334_v28, %v1338_v29  ;;  %v4669_v31 = vcombine.low %v1334_v28, %v1338_v29  ;;  %v1342_v32 = vld [vmem:[#allocation11 + $0x640] sm:$0xff] }
 0x2f2   :  { %2811 = vmatprep.subr.bf16.mxu0 %v4670_v30 }
 0x2f3   :  { %2777 = vmatpush1.bf16.msra.mxu1 %v4565_v33  ;;  %2812 = vmatpush1.bf16.msra.mxu0 %v4669_v31  ;;  %v1346_v33 = vld [vmem:[#allocation11 + $0x660] sm:$0xff] }
 0x2f4   :  { %2778 = vmatprep.subr.bf16.mxu1 %v4574_v36  ;;  %v4678_v34 = vcombine.high %v1342_v32, %v1346_v33  ;;  %v4677_v35 = vcombine.low %v1342_v32, %v1346_v33  ;;  %v1350_v36 = vld [vmem:[#allocation11 + $0x680] sm:$0xff] }
 0x2f6   :  { %2813 = vmatprep.subr.bf16.mxu0 %v4678_v34 }
 0x2f7   :  { %2779 = vmatpush1.bf16.msra.mxu1 %v4573_v37  ;;  %2814 = vmatpush1.bf16.msra.mxu0 %v4677_v35  ;;  %v1354_v37 = vld [vmem:[#allocation11 + $0x6a0] sm:$0xff] }
 0x2f8   :  { %2780 = vmatprep.subr.bf16.mxu1 %v4582_v40  ;;  %v4686_v38 = vcombine.high %v1350_v36, %v1354_v37  ;;  %v4685_v39 = vcombine.low %v1350_v36, %v1354_v37  ;;  %v1358_v40 = vld [vmem:[#allocation11 + $0x6c0] sm:$0xff] }
 0x2fa   :  { %2815 = vmatprep.subr.bf16.mxu0 %v4686_v38 }
 0x2fb   :  { %2781 = vmatpush1.bf16.msra.mxu1 %v4581_v41  ;;  %2816 = vmatpush1.bf16.msra.mxu0 %v4685_v39  ;;  %v1362_v41 = vld [vmem:[#allocation11 + $0x6e0] sm:$0xff] }
 0x2fc   :  { %2782 = vmatprep.subr.bf16.mxu1 %v4590_v44  ;;  %v4694_v42 = vcombine.high %v1358_v40, %v1362_v41  ;;  %v4693_v43 = vcombine.low %v1358_v40, %v1362_v41  ;;  %v1366_v44 = vld [vmem:[#allocation11 + $0x700] sm:$0xff] }
 0x2fe   :  { %2817 = vmatprep.subr.bf16.mxu0 %v4694_v42 }
 0x2ff   :  { %2783 = vmatpush1.bf16.msra.mxu1 %v4589_v45  ;;  %2818 = vmatpush1.bf16.msra.mxu0 %v4693_v43  ;;  %v1370_v45 = vld [vmem:[#allocation11 + $0x720] sm:$0xff] }
 0x300   :  { %2784 = vmatprep.subr.bf16.mxu1 %v4598_v54  ;;  %v4702_v46 = vcombine.high %v1366_v44, %v1370_v45  ;;  %v4701_v47 = vcombine.low %v1366_v44, %v1370_v45 }
 0x302   :  { %2819 = vmatprep.subr.bf16.mxu0 %v4702_v46 }
 0x303   :  { %2785 = vmatpush1.bf16.msra.mxu1 %v4597_v53  ;;  %2820 = vmatpush1.bf16.msra.mxu0 %v4701_v47  ;;  %v1378_v53 = vld [vmem:[#allocation11 + $0x760] sm:$0xff] }
 0x304   :  { %2836 = vmatprep.subr.bf16.mxu1 %v4480_v60  ;;  %v4710_v54 = vcombine.high %v1374_v48, %v1378_v53  ;;  %v4709_v55 = vcombine.low %v1374_v48, %v1378_v53  ;;  %v4718_v60 = vcombine.high %v1382_v56, %v1386_v57 }
 0x306   :  { %2821 = vmatprep.subr.bf16.mxu0 %v4710_v54 }
 0x307   :  { %2822 = vmatpush1.bf16.msra.mxu0 %v4709_v55 }
 0x308   :  { %2823 = vmatprep.subr.bf16.mxu0 %v4718_v60  ;;  %v1045_v60 = vrot.slane %v5723_v1, %v5688_v49 }
 0x30b   :  { %2824 = vmatpush1.bf16.msra.mxu0 %v4717_v62  ;;  %v1049_v62 = vrot.slane %v5723_v1, %v5690_v50  ;;  %v5754_v1 = vld [vmem:[%s5925_s6 + $0x8] sm:$0x77] }
 0x30c   :  { %2825 = vmatprep.subr.bf16.mxu0 %v4726_v6 }
 0x30d   :  { %v1069_v7 = vrot.slane %v1049_v62, %v5688_v49 }
 0x30f   :  { %2826 = vmatpush1.bf16.msra.mxu0 %v4725_v5  ;;  %v1065_v5 = vrot.slane %v1045_v60, %v5688_v49  ;;  %v1187_v60 = vld [vmem:[#allocation11 + $0x168] sm:$0xff] }
 0x310   :  { %2918 = vmatprep.subr.bf16.mxu0 %v4482_v10 }
 0x359   :  { %v918_v14 = vpop.f32.mrb[4].mxu1 }
 0x35a   :  { %v919_v15 = vadd.f32 %v918_v14, %v551_v12  ;;  %v920_v16 = vpop.f32.mrb[5].mxu1  ;;  %v1105_v12 = vrot.slane %v1085_v63, %v5692_v51  ;;  %v1109_v14 = vrot.slane %v1089_v0, %v5692_v51 }
 0x35b   :  { %v921_v17 = vadd.f32 %v920_v16, %v555_v13  ;;  %v922_v18 = vpop.f32.mrb[6].mxu1 }
 0x35c   :  { %v966_v19 = vrot.slane %v919_v15, 4  ;;  %v923_v20 = vpop.f32.mrb[7].mxu1 }
 0x35d   :  { %v972_v21 = vrot.slane %v921_v17, 4 }
 0x35e   :  { %v967_v22 = vadd.f32 %v966_v19, %v919_v15 }
 0x35f   :  { %v973_v23 = vadd.f32 %v972_v21, %v921_v17 }
 0x360   :  { %v968_v24 = vrot.slane %v967_v22, 2 }
 0x361   :  { %v974_v25 = vrot.slane %v973_v23, 2 }
 0x362   :  { %v969_v26 = vadd.f32 %v968_v24, %v967_v22  ;;  %v1151_v22 = vld [vmem:[#allocation11 + $0x48] sm:$0xff] }
 0x363   :  { %v975_v27 = vadd.f32 %v974_v25, %v973_v23  ;;  %v1155_v23 = vld [vmem:[#allocation11 + $0x68] sm:$0xff]  ;;  %v539_v25 = vrot.slane %v5754_v1, %v5676_v2 }
 0x364   :  { %v970_v28 = vrot.slane %v969_v26, 1 }
 0x365   :  { %v976_v29 = vrot.slane %v975_v27, 1 }
 0x366   :  { %v971_v30 = vadd.f32 %v970_v28, %v969_v26 }
 0x367   :  { %v977_v31 = vadd.f32 %v976_v29, %v975_v27  ;;  %v543_v27 = vrot.slane %v5754_v1, %v5680_v4  ;;  %v4488_v29 = vcombine.high %v1151_v22, %v1155_v23 }
 0x368   :  { %v990_v32 = vmul.f32 0.125, %v971_v30  ;;  %v1159_v30 = vld [vmem:[#allocation11 + $0x88] sm:$0xff] }
 0x369   :  { %v991_v33 = vmul.f32 0.125, %v977_v31  ;;  %v1163_v31 = vld [vmem:[#allocation11 + $0xa8] sm:$0xff] }
 0x36a   :  { %v994_v34 = vsub.f32 %v919_v15, %v990_v32  ;;  %v559_v32 = vrot.slane %v539_v25, %v5676_v2 }
 0x36b   :  { %v995_v35 = vsub.f32 %v921_v17, %v991_v33  ;;  %v563_v33 = vrot.slane %v543_v27, %v5676_v2  ;;  %v1207_v27 = vld [vmem:[#allocation11 + $0x208] sm:$0xff] }
 0x36c   :  { %v998_v36 = vmul.f32 %v994_v34, %v994_v34 }
 0x36d   :  { %v999_v37 = vmul.f32 %v995_v35, %v995_v35 }
 0x36e   :  { %v1002_v38 = vrot.slane %v998_v36, 4 }
 0x36f   :  { %v1008_v39 = vrot.slane %v999_v37, 4 }
 0x370   :  { %v1003_v40 = vadd.f32 %v1002_v38, %v998_v36  ;;  %v1171_v38 = vld [vmem:[#allocation11 + $0xe8] sm:$0xff] }
 0x371   :  { %v1009_v41 = vadd.f32 %v1008_v39, %v999_v37  ;;  %v1167_v37 = vld [vmem:[#allocation11 + $0xc8] sm:$0xff] }
 0x372   :  { %v1004_v42 = vrot.slane %v1003_v40, 2  ;;  %v4504_v58 = vcombine.high %v1167_v37, %v1171_v38 }
 0x373   :  { %v1010_v43 = vrot.slane %v1009_v41, 2 }
 0x374   :  { %v1005_v44 = vadd.f32 %v1004_v42, %v1003_v40 }
 0x375   :  { %v1011_v45 = vadd.f32 %v1010_v43, %v1009_v41  ;;  %v4495_v43 = vcombine.low %v1159_v30, %v1163_v31 }
 0x376   :  { %v1006_v46 = vrot.slane %v1005_v44, 1 }
 0x377   :  { %v1012_v47 = vrot.slane %v1011_v45, 1 }
 0x378   :  { %v1007_v48 = vadd.f32 %v1006_v46, %v1005_v44  ;;  %v1179_v46 = vld [vmem:[#allocation11 + $0x128] sm:$0xff] }
 0x379   :  { %v1013_v53 = vadd.f32 %v1012_v47, %v1011_v45 }
 0x37a   :  { %v1026_v54 = vmul.f32 0.125, %v1007_v48 }
 0x37b   :  { %v1027_v55 = vmul.f32 0.125, %v1013_v53  ;;  %v4503_v53 = vcombine.low %v1167_v37, %v1171_v38  ;;  %v1219_v37 = vld [vmem:[#allocation11 + $0x268] sm:$0xff] }
 0x37c   :  { %v1030_v56 = vadd.f32 0.8, %v1026_v54 }
 0x37d   :  { %v1031_v57 = vadd.f32 0.8, %v1027_v55 }
 0x37e   :  { %5246 = vrsqrt.f32 %v1030_v56 }
 0x37f   :  { %5248 = vrsqrt.f32 %v1031_v57  ;;  %v1183_v57 = vld [vmem:[#allocation11 + $0x148] sm:$0xff] }
 0x388   :  { %v5247_v6 = vpop.eup %5246 }
 0x389   :  { %v5249_v9 = vpop.eup %5248  ;;  %v1038_v10 = vmul.f32 %v5247_v6, %v994_v34  ;;  %v4487_v34 = vcombine.low %v1151_v22, %v1155_v23  ;;  %v4520_v6 = vcombine.high %v1183_v57, %v1187_v60 }
 0x38a   :  { %v1039_v13 = vmul.f32 %v5249_v9, %v995_v35  ;;  %v4496_v35 = vcombine.high %v1159_v30, %v1163_v31  ;;  %v1191_v9 = vld [vmem:[#allocation11 + $0x188] sm:$0xff] }
 0x38b   :  { %v1078_v15 = vmul.f32 %v1065_v5, %v1038_v10  ;;  %v1195_v10 = vld [vmem:[#allocation11 + $0x1a8] sm:$0xff] }
 0x38c   :  { %v1079_v16 = vmul.f32 %v1069_v7, %v1039_v13  ;;  %v4527_v22 = vcombine.low %v1191_v9, %v1195_v10 }
 0x38d   :  { %v1118_v17 = vadd.f32 %v1105_v12, %v1078_v15 }
 0x38e   :  { %v1119_v18 = vadd.f32 %v1109_v14, %v1079_v16  ;;  %v4519_v14 = vcombine.low %v1183_v57, %v1187_v60  ;;  %v4528_v16 = vcombine.high %v1191_v9, %v1195_v10  ;;  %v1247_v9 = vld [vmem:[#allocation11 + $0x348] sm:$0xff] }
 0x38f   :  { %vm1122_vm5 = vcmp.ge.f32.partialorder %v1118_v17, 0.0  ;;  %v1126_v19 = vmul.f32 0.2, %v1118_v17  ;;  %v1251_v10 = vld [vmem:[#allocation11 + $0x368] sm:$0xff] }
 0x390   :  { %vm1123_vm6 = vcmp.ge.f32.partialorder %v1119_v18, 0.0  ;;  %v1127_v20 = vmul.f32 0.2, %v1119_v18 }
 0x391   :  { %v1130_v21 = vsel %vm1122_vm5, %v1118_v17, %v1126_v19  ;;  %v1203_v19 = vld [vmem:[#allocation11 + $0x1e8] sm:$0xff] }
 0x392   :  { %v1131_v24 = vsel %vm1123_vm6, %v1119_v18, %v1127_v20  ;;  %v5762_v28 = vpack.c.bf16 %v1130_v21, %v1130_v21  ;;  %v1199_v18 = vld [vmem:[#allocation11 + $0x1c8] sm:$0xff] }
 0x393   :  { %v5758_v26 = vpack.c.bf16 %v1131_v24, %v1131_v24  ;;  %v4536_v24 = vcombine.high %v1199_v18, %v1203_v19 }
 0x395   :  { %2786 = vmatprep.mubr.bf16.mxu1 %v5758_v26 }
 0x396   :  { %2787 = vmatmul.mubr.bf16.vlgmr.msra.gmra.mrb[12].mxu1 %v5762_v28 }
 0x397   :  { %2837 = vmatpush1.bf16.msra.mxu1 %v4479_v61  ;;  %2868 = vmatprep.mubr.bf16.mxu1 %v5758_v26  ;;  %v1175_v61 = vld [vmem:[#allocation11 + $0x108] sm:$0xff] }
 0x398   :  { %2838 = vmatprep.subr.bf16.mxu1 %v4488_v29  ;;  %v4512_v55 = vcombine.high %v1175_v61, %v1179_v46  ;;  %v4511_v0 = vcombine.low %v1175_v61, %v1179_v46  ;;  %v1211_v29 = vld [vmem:[#allocation11 + $0x228] sm:$0xff] }
 0x399   :  { %v959_v36 = vpop.f32.mrb[8].mxu1 }
 0x39a   :  { %v960_v39 = vadd.f32 %v959_v36, %v559_v32  ;;  %v961_v40 = vpop.f32.mrb[9].mxu1  ;;  %v4535_v32 = vcombine.low %v1199_v18, %v1203_v19  ;;  %v1215_v36 = vld [vmem:[#allocation11 + $0x248] sm:$0xff]  ;;  %v1097_v19 = vrot.slane %v5754_v1, %v5694_v52 }
 0x39b   :  { %v962_v41 = vadd.f32 %v961_v40, %v563_v33  ;;  %v963_v42 = vpop.f32.mrb[10].mxu1  ;;  %2839 = vmatpush1.bf16.msra.mxu1 %v4487_v34  ;;  %v4544_v34 = vcombine.high %v1207_v27, %v1211_v29  ;;  %v4543_v40 = vcombine.low %v1207_v27, %v1211_v29  ;;  %v4551_v61 = vcombine.low %v1215_v36, %v1219_v37  ;;  %v1259_v18 = vld [vmem:[#allocation11 + $0x3a8] sm:$0xff] }
 0x39c   :  { %v978_v44 = vrot.slane %v960_v39, 4  ;;  %v964_v45 = vpop.f32.mrb[11].mxu1  ;;  %2840 = vmatprep.subr.bf16.mxu1 %v4496_v35  ;;  %v4552_v42 = vcombine.high %v1215_v36, %v1219_v37 }
 0x39d   :  { %v984_v59 = vrot.slane %v962_v41, 4  ;;  %v1227_v45 = vld [vmem:[#allocation11 + $0x2a8] sm:$0xff] }
 0x39e   :  { %v979_v47 = vadd.f32 %v978_v44, %v960_v39  ;;  %v1223_v44 = vld [vmem:[#allocation11 + $0x288] sm:$0xff] }
 0x39f   :  { %v985_v48 = vadd.f32 %v984_v59, %v962_v41  ;;  %2841 = vmatpush1.bf16.msra.mxu1 %v4495_v43  ;;  %v4559_v57 = vcombine.low %v1223_v44, %v1227_v45 }
 0x3a0   :  { %v980_v54 = vrot.slane %v979_v47, 2  ;;  %2842 = vmatprep.subr.bf16.mxu1 %v4504_v58 }
 0x3a1   :  { %v986_v56 = vrot.slane %v985_v48, 2 }
 0x3a2   :  { %v981_v62 = vadd.f32 %v980_v54, %v979_v47  ;;  %v4560_v47 = vcombine.high %v1223_v44, %v1227_v45  ;;  %v1235_v54 = vld [vmem:[#allocation11 + $0x2e8] sm:$0xff] }
 0x3a3   :  { %v987_v63 = vadd.f32 %v986_v56, %v985_v48  ;;  %2843 = vmatpush1.bf16.msra.mxu1 %v4503_v53  ;;  %v1231_v53 = vld [vmem:[#allocation11 + $0x2c8] sm:$0xff] }
 0x3a4   :  { %v982_v5 = vrot.slane %v981_v62, 1  ;;  %2844 = vmatprep.subr.bf16.mxu1 %v4512_v55 }
 0x3a5   :  { %v988_v7 = vrot.slane %v987_v63, 1 }
 0x3a6   :  { %v983_v12 = vadd.f32 %v982_v5, %v981_v62  ;;  %v4568_v62 = vcombine.high %v1231_v53, %v1235_v54  ;;  %v1243_v5 = vld [vmem:[#allocation11 + $0x328] sm:$0xff] }
 0x3a7   :  { %v989_v13 = vadd.f32 %v988_v7, %v987_v63  ;;  %2845 = vmatpush1.bf16.msra.mxu1 %v4511_v0  ;;  %v1239_v0 = vld [vmem:[#allocation11 + $0x308] sm:$0xff] }
 0x3a8   :  { %v992_v15 = vmul.f32 0.125, %v983_v12  ;;  %2846 = vmatprep.subr.bf16.mxu1 %v4520_v6  ;;  %v4567_v6 = vcombine.low %v1231_v53, %v1235_v54  ;;  %v4576_v7 = vcombine.high %v1239_v0, %v1243_v5  ;;  %v1053_v12 = vrot.slane %v5754_v1, %v5688_v49 }
 0x3a9   :  { %v993_v17 = vmul.f32 0.125, %v989_v13  ;;  %v4575_v13 = vcombine.low %v1239_v0, %v1243_v5 }
 0x3aa   :  { %v5772_v20 = vsub.f32 %v960_v39, %v992_v15  ;;  %v4584_v15 = vcombine.high %v1247_v9, %v1251_v10 }
 0x3ab   :  { %v5774_v21 = vsub.f32 %v962_v41, %v993_v17  ;;  %2847 = vmatpush1.bf16.msra.mxu1 %v4519_v14  ;;  %v1057_v14 = vrot.slane %v5754_v1, %v5690_v50  ;;  %v1255_v17 = vld [vmem:[#allocation11 + $0x388] sm:$0xff] }
 0x3ac   :  { %v1000_v23 = vmul.f32 %v5772_v20, %v5772_v20  ;;  %2848 = vmatprep.subr.bf16.mxu1 %v4528_v16  ;;  %v1093_v16 = vrot.slane %v5754_v1, %v5692_v51  ;;  %v4592_v27 = vcombine.high %v1255_v17, %v1259_v18  ;;  %v1117_v1 = vrot.slane %v1097_v19, %v5692_v51 }
 0x3ad   :  { %v1001_v25 = vmul.f32 %v5774_v21, %v5774_v21  ;;  %v4591_v36 = vcombine.low %v1255_v17, %v1259_v18  ;;  %v1303_v17 = vld [vmem:[#allocation11 + $0x508] sm:$0xff] }
 0x3ae   :  { %v1014_v30 = vrot.slane %v1000_v23, 4  ;;  %v1307_v18 = vld [vmem:[#allocation11 + $0x528] sm:$0xff] }
 0x3af   :  { %v1020_v31 = vrot.slane %v1001_v25, 4  ;;  %2849 = vmatpush1.bf16.msra.mxu1 %v4527_v22  ;;  %v1073_v22 = vrot.slane %v1053_v12, %v5688_v49  ;;  %v1295_v12 = vld [vmem:[#allocation11 + $0x4c8] sm:$0xff] }
 0x3b0   :  { %v1015_v33 = vadd.f32 %v1014_v30, %v1000_v23  ;;  %2850 = vmatprep.subr.bf16.mxu1 %v4536_v24  ;;  %v4583_v23 = vcombine.low %v1247_v9, %v1251_v10  ;;  %v1168_v9 = vld [vmem:[#allocation11 + $0xd0] sm:$0xff] }
 0x3b1   :  { %v1021_v35 = vadd.f32 %v1020_v31, %v1001_v25  ;;  %v1077_v25 = vrot.slane %v1057_v14, %v5688_v49  ;;  %v1113_v31 = vrot.slane %v1093_v16, %v5692_v51  ;;  %v1172_v10 = vld [vmem:[#allocation11 + $0xf0] sm:$0xff] }
 0x3b2   :  { %v1016_v38 = vrot.slane %v1015_v33, 2  ;;  %v4506_v3 = vcombine.high %v1168_v9, %v1172_v10  ;;  %v1180_v16 = vld [vmem:[#allocation11 + $0x130] sm:$0xff]  ;;  %v4505_v19 = vcombine.low %v1168_v9, %v1172_v10 }
 0x3b3   :  { %v1022_v39 = vrot.slane %v1021_v35, 2  ;;  %2851 = vmatpush1.bf16.msra.mxu1 %v4535_v32  ;;  %v1263_v32 = vld [vmem:[#allocation11 + $0x3c8] sm:$0xff] }
 0x3b4   :  { %v1017_v41 = vadd.f32 %v1016_v38, %v1015_v33  ;;  %2852 = vmatprep.subr.bf16.mxu1 %v4544_v34  ;;  %v1267_v33 = vld [vmem:[#allocation11 + $0x3e8] sm:$0xff] }
 0x3b5   :  { %v1023_v43 = vadd.f32 %v1022_v39, %v1021_v35  ;;  %v4600_v38 = vcombine.high %v1263_v32, %v1267_v33 }
 0x3b6   :  { %v1018_v58 = vrot.slane %v1017_v41, 1 }
 0x3b7   :  { %v1024_v59 = vrot.slane %v1023_v43, 1  ;;  %2853 = vmatpush1.bf16.msra.mxu1 %v4543_v40  ;;  %v1271_v40 = vld [vmem:[#allocation11 + $0x408] sm:$0xff] }
 0x3b8   :  { %v1019_v46 = vadd.f32 %v1018_v58, %v1017_v41  ;;  %2854 = vmatprep.subr.bf16.mxu1 %v4552_v42  ;;  %v1275_v41 = vld [vmem:[#allocation11 + $0x428] sm:$0xff]  ;;  %v1152_v58 = vld [vmem:[#allocation11 + $0x50] sm:$0xff] }
 0x3b9   :  { %v1025_v48 = vadd.f32 %v1024_v59, %v1023_v43  ;;  %v4607_v53 = vcombine.low %v1271_v40, %v1275_v41 }
 0x3ba   :  { %v1028_v55 = vmul.f32 0.125, %v1019_v46  ;;  %v1279_v46 = vld [vmem:[#allocation11 + $0x448] sm:$0xff] }
 0x3bb   :  { %v1029_v56 = vmul.f32 0.125, %v1025_v48  ;;  %2855 = vmatpush1.bf16.msra.mxu1 %v4551_v61  ;;  %v1156_v61 = vld [vmem:[#allocation11 + $0x70] sm:$0xff] }
 0x3bc   :  { %v1032_v60 = vadd.f32 0.8, %v1028_v55  ;;  %2856 = vmatprep.subr.bf16.mxu1 %v4560_v47  ;;  %v1283_v47 = vld [vmem:[#allocation11 + $0x468] sm:$0xff]  ;;  %v1160_v55 = vld [vmem:[#allocation11 + $0x90] sm:$0xff]  ;;  %v4489_v0 = vcombine.low %v1152_v58, %v1156_v61 }
 0x3bd   :  { %v1033_v63 = vadd.f32 0.8, %v1029_v56  ;;  %v4490_v56 = vcombine.high %v1152_v58, %v1156_v61  ;;  %v4615_v5 = vcombine.low %v1279_v46, %v1283_v47  ;;  %v1208_v61 = vld [vmem:[#allocation11 + $0x210] sm:$0xff] }
 0x3be   :  { %5250 = vrsqrt.f32 %v1032_v60  ;;  %v1164_v60 = vld [vmem:[#allocation11 + $0xb0] sm:$0xff] }
 0x3bf   :  { %5252 = vrsqrt.f32 %v1033_v63  ;;  %2857 = vmatpush1.bf16.msra.mxu1 %v4559_v57  ;;  %v4616_v57 = vcombine.high %v1279_v46, %v1283_v47  ;;  %v1291_v63 = vld [vmem:[#allocation11 + $0x4a8] sm:$0xff]  ;;  %v4497_v14 = vcombine.low %v1160_v55, %v1164_v60  ;;  %v1212_v46 = vld [vmem:[#allocation11 + $0x230] sm:$0xff] }
 0x3c0   :  { %2858 = vmatprep.subr.bf16.mxu1 %v4568_v62  ;;  %v1287_v62 = vld [vmem:[#allocation11 + $0x488] sm:$0xff] }
 0x3c1   :  { %v4623_v8 = vcombine.low %v1287_v62, %v1291_v63  ;;  %v1335_v47 = vld [vmem:[#allocation11 + $0x608] sm:$0xff] }
 0x3c3   :  { %2859 = vmatpush1.bf16.msra.mxu1 %v4567_v6  ;;  %v4498_v6 = vcombine.high %v1160_v55, %v1164_v60 }
 0x3c4   :  { %2860 = vmatprep.subr.bf16.mxu1 %v4576_v7  ;;  %v4624_v7 = vcombine.high %v1287_v62, %v1291_v63  ;;  %v1216_v62 = vld [vmem:[#allocation11 + $0x250] sm:$0xff] }
 0x3c5   :  { %v1220_v63 = vld [vmem:[#allocation11 + $0x270] sm:$0xff] }
 0x3c6   :  { %v4554_v9 = vcombine.high %v1216_v62, %v1220_v63 }
 0x3c7   :  { %2861 = vmatpush1.bf16.msra.mxu1 %v4575_v13  ;;  %v1299_v13 = vld [vmem:[#allocation11 + $0x4e8] sm:$0xff] }
 0x3c8   :  { %v5251_v24 = vpop.eup %5250  ;;  %2862 = vmatprep.subr.bf16.mxu1 %v4584_v15  ;;  %v1176_v15 = vld [vmem:[#allocation11 + $0x110] sm:$0xff] }
 0x3c9   :  { %v5253_v29 = vpop.eup %5252  ;;  %v1040_v30 = vmul.f32 %v5251_v24, %v5772_v20  ;;  %v4599_v20 = vcombine.low %v1263_v32, %v1267_v33  ;;  %v4640_v24 = vcombine.high %v1303_v17, %v1307_v18  ;;  %v4639_v32 = vcombine.low %v1303_v17, %v1307_v18  ;;  %v1232_v17 = vld [vmem:[#allocation11 + $0x2d0] sm:$0xff] }
 0x3ca   :  { %v1041_v34 = vmul.f32 %v5253_v29, %v5774_v21  ;;  %v4608_v21 = vcombine.high %v1271_v40, %v1275_v41  ;;  %v1311_v29 = vld [vmem:[#allocation11 + $0x548] sm:$0xff]  ;;  %v1236_v18 = vld [vmem:[#allocation11 + $0x2f0] sm:$0xff] }
 0x3cb   :  { %v1080_v35 = vmul.f32 %v1073_v22, %v1040_v30  ;;  %2863 = vmatpush1.bf16.msra.mxu1 %v4583_v23  ;;  %v4631_v22 = vcombine.low %v1295_v12, %v1299_v13  ;;  %v4514_v23 = vcombine.high %v1176_v15, %v1180_v16  ;;  %v1315_v30 = vld [vmem:[#allocation11 + $0x568] sm:$0xff] }
 0x3cc   :  { %v1081_v37 = vmul.f32 %v1077_v25, %v1041_v34  ;;  %2864 = vmatprep.subr.bf16.mxu1 %v4592_v27  ;;  %v1184_v25 = vld [vmem:[#allocation11 + $0x150] sm:$0xff]  ;;  %v4648_v34 = vcombine.high %v1311_v29, %v1315_v30 }
 0x3cd   :  { %v1120_v39 = vadd.f32 %v1113_v31, %v1080_v35  ;;  %v1188_v27 = vld [vmem:[#allocation11 + $0x170] sm:$0xff]  ;;  %v4513_v31 = vcombine.low %v1176_v15, %v1180_v16 }
 0x3ce   :  { %v1121_v42 = vadd.f32 %v1117_v1, %v1081_v37  ;;  %v4522_v33 = vcombine.high %v1184_v25, %v1188_v27  ;;  %v1192_v1 = vld [vmem:[#allocation11 + $0x190] sm:$0xff]  ;;  %v1323_v37 = vld [vmem:[#allocation11 + $0x5a8] sm:$0xff] }
 0x3cf   :  { %2865 = vmatpush1.bf16.msra.mxu1 %v4591_v36  ;;  %vm1124_vm7 = vcmp.ge.f32.partialorder %v1120_v39, 0.0  ;;  %v1128_v43 = vmul.f32 0.2, %v1120_v39  ;;  %v1196_v35 = vld [vmem:[#allocation11 + $0x1b0] sm:$0xff]  ;;  %v1319_v36 = vld [vmem:[#allocation11 + $0x588] sm:$0xff] }
 0x3d0   :  { %2866 = vmatprep.subr.bf16.mxu1 %v4600_v38  ;;  %vm1125_vm8 = vcmp.ge.f32.partialorder %v1121_v42, 0.0  ;;  %v1129_v44 = vmul.f32 0.2, %v1121_v42  ;;  %v4521_v38 = vcombine.low %v1184_v25, %v1188_v27  ;;  %v4530_v40 = vcombine.high %v1192_v1, %v1196_v35 }
 0x3d1   :  { %v1132_v45 = vsel %vm1124_vm7, %v1120_v39, %v1128_v43  ;;  %v4647_v39 = vcombine.low %v1311_v29, %v1315_v30  ;;  %v4656_v41 = vcombine.high %v1319_v36, %v1323_v37  ;;  %v1327_v43 = vld [vmem:[#allocation11 + $0x5c8] sm:$0xff]  ;;  %v4570_v25 = vcombine.high %v1232_v17, %v1236_v18  ;;  %v1240_v29 = vld [vmem:[#allocation11 + $0x310] sm:$0xff] }
 0x3d2   :  { %v1133_v59 = vsel %vm1125_vm8, %v1121_v42, %v1129_v44  ;;  %v5796_v54 = vpack.c.bf16 %v1132_v45, %v1132_v45  ;;  %v1200_v42 = vld [vmem:[#allocation11 + $0x1d0] sm:$0xff]  ;;  %v1331_v44 = vld [vmem:[#allocation11 + $0x5e8] sm:$0xff]  ;;  %v4655_v45 = vcombine.low %v1319_v36, %v1323_v37 }
 0x3d3   :  { %2867 = vmatpush1.bf16.msra.mxu1 %v4599_v20  ;;  %v5794_v48 = vpack.c.bf16 %v1133_v59, %v1133_v59  ;;  %v1204_v20 = vld [vmem:[#allocation11 + $0x1f0] sm:$0xff]  ;;  %v4664_v59 = vcombine.high %v1327_v43, %v1331_v44 }
 0x3d4   :  { %2877 = vmatprep.subr.bf16.mxu1 %v4608_v21  ;;  %v4529_v21 = vcombine.low %v1192_v1, %v1196_v35  ;;  %v4538_v58 = vcombine.high %v1200_v42, %v1204_v20  ;;  %v4537_v55 = vcombine.low %v1200_v42, %v1204_v20  ;;  %v1244_v30 = vld [vmem:[#allocation11 + $0x330] sm:$0xff] }
 0x3d5   :  { %2827 = vmatprep.mubr.bf16.mxu0 %v5794_v48  ;;  %v4578_v1 = vcombine.high %v1240_v29, %v1244_v30  ;;  %v1248_v36 = vld [vmem:[#allocation11 + $0x350] sm:$0xff] }
 0x3d6   :  { %2828 = vmatmul.mubr.bf16.vlgmr.msra.gmra.mrb[4].mxu0 %v5796_v54  ;;  %2869 = vmatmul.mubr.bf16.vlgmr.msra.gmra.mrb[16].mxu1 %v5762_v28  ;;  %v1252_v37 = vld [vmem:[#allocation11 + $0x370] sm:$0xff] }
 0x3d7   :  { %2919 = vmatpush1.bf16.msra.mxu0 %v4481_v11  ;;  %2878 = vmatpush1.bf16.msra.mxu1 %v4607_v53  ;;  %v4632_v11 = vcombine.high %v1295_v12, %v1299_v13  ;;  %v1339_v53 = vld [vmem:[#allocation11 + $0x628] sm:$0xff]  ;;  %v1224_v12 = vld [vmem:[#allocation11 + $0x290] sm:$0xff]  ;;  %v4586_v42 = vcombine.high %v1248_v36, %v1252_v37 }
 0x3d8   :  { %2909 = vmatprep.mubr.bf16.mxu1 %v5794_v48  ;;  %2950 = vmatprep.mubr.bf16.mxu0 %v5758_v26  ;;  %v4672_v60 = vcombine.high %v1335_v47, %v1339_v53  ;;  %v1228_v13 = vld [vmem:[#allocation11 + $0x2b0] sm:$0xff] }
 0x3d9   :  { %2920 = vmatprep.subr.bf16.mxu0 %v4490_v56  ;;  %2879 = vmatprep.subr.bf16.mxu1 %v4616_v57  ;;  %v4663_v56 = vcombine.low %v1327_v43, %v1331_v44  ;;  %v4546_v57 = vcombine.high %v1208_v61, %v1212_v46  ;;  %v4562_v15 = vcombine.high %v1224_v12, %v1228_v13  ;;  %v1256_v43 = vld [vmem:[#allocation11 + $0x390] sm:$0xff] }
 0x3da   :  { %v1260_v44 = vld [vmem:[#allocation11 + $0x3b0] sm:$0xff] }
 0x3db   :  { %2921 = vmatpush1.bf16.msra.mxu0 %v4489_v0  ;;  %2880 = vmatpush1.bf16.msra.mxu1 %v4615_v5  ;;  %v1343_v0 = vld [vmem:[#allocation11 + $0x648] sm:$0xff] }
 0x3dc   :  { %2922 = vmatprep.subr.bf16.mxu0 %v4498_v6  ;;  %2881 = vmatprep.subr.bf16.mxu1 %v4624_v7  ;;  %v1347_v5 = vld [vmem:[#allocation11 + $0x668] sm:$0xff]  ;;  %v4545_v6 = vcombine.low %v1208_v61, %v1212_v46  ;;  %v4671_v7 = vcombine.low %v1335_v47, %v1339_v53  ;;  %v4594_v61 = vcombine.high %v1256_v43, %v1260_v44  ;;  %v1264_v47 = vld [vmem:[#allocation11 + $0x3d0] sm:$0xff] }
 0x3dd   :  { %v4680_v10 = vcombine.high %v1343_v0, %v1347_v5  ;;  %v1268_v53 = vld [vmem:[#allocation11 + $0x3f0] sm:$0xff] }
 0x3df   :  { %2923 = vmatpush1.bf16.msra.mxu0 %v4497_v14  ;;  %2882 = vmatpush1.bf16.msra.mxu1 %v4623_v8  ;;  %v1351_v14 = vld [vmem:[#allocation11 + $0x688] sm:$0xff] }
 0x3e0   :  { %2924 = vmatprep.subr.bf16.mxu0 %v4506_v3  ;;  %2883 = vmatprep.subr.bf16.mxu1 %v4632_v11  ;;  %v1355_v8 = vld [vmem:[#allocation11 + $0x6a8] sm:$0xff]  ;;  %v4553_v3 = vcombine.low %v1216_v62, %v1220_v63  ;;  %v4679_v11 = vcombine.low %v1343_v0, %v1347_v5  ;;  %v4602_v62 = vcombine.high %v1264_v47, %v1268_v53  ;;  %v1272_v0 = vld [vmem:[#allocation11 + $0x410] sm:$0xff] }
 0x3e1   :  { %v4688_v16 = vcombine.high %v1351_v14, %v1355_v8  ;;  %v1276_v5 = vld [vmem:[#allocation11 + $0x430] sm:$0xff] }
 0x3e3   :  { %2925 = vmatpush1.bf16.msra.mxu0 %v4505_v19  ;;  %2884 = vmatpush1.bf16.msra.mxu1 %v4631_v22  ;;  %v1359_v19 = vld [vmem:[#allocation11 + $0x6c8] sm:$0xff] }
 0x3e4   :  { %2926 = vmatprep.subr.bf16.mxu0 %v4514_v23  ;;  %2885 = vmatprep.subr.bf16.mxu1 %v4640_v24  ;;  %v1363_v22 = vld [vmem:[#allocation11 + $0x6e8] sm:$0xff]  ;;  %v4561_v23 = vcombine.low %v1224_v12, %v1228_v13  ;;  %v4687_v24 = vcombine.low %v1351_v14, %v1355_v8  ;;  %v4610_v12 = vcombine.high %v1272_v0, %v1276_v5  ;;  %v1280_v14 = vld [vmem:[#allocation11 + $0x450] sm:$0xff] }
 0x3e5   :  { %v4696_v27 = vcombine.high %v1359_v19, %v1363_v22  ;;  %v1284_v8 = vld [vmem:[#allocation11 + $0x470] sm:$0xff] }
 0x3e7   :  { %2927 = vmatpush1.bf16.msra.mxu0 %v4513_v31  ;;  %2886 = vmatpush1.bf16.msra.mxu1 %v4639_v32  ;;  %v1367_v31 = vld [vmem:[#allocation11 + $0x708] sm:$0xff] }
 0x3e8   :  { %2928 = vmatprep.subr.bf16.mxu0 %v4522_v33  ;;  %2887 = vmatprep.subr.bf16.mxu1 %v4648_v34  ;;  %v1371_v32 = vld [vmem:[#allocation11 + $0x728] sm:$0xff]  ;;  %v4569_v33 = vcombine.low %v1232_v17, %v1236_v18  ;;  %v4695_v34 = vcombine.low %v1359_v19, %v1363_v22  ;;  %v4618_v17 = vcombine.high %v1280_v14, %v1284_v8  ;;  %v1288_v19 = vld [vmem:[#allocation11 + $0x490] sm:$0xff] }
 0x3e9   :  { %v4704_v35 = vcombine.high %v1367_v31, %v1371_v32  ;;  %v1292_v22 = vld [vmem:[#allocation11 + $0x4b0] sm:$0xff] }
 0x3eb   :  { %2929 = vmatpush1.bf16.msra.mxu0 %v4521_v38  ;;  %2888 = vmatpush1.bf16.msra.mxu1 %v4647_v39  ;;  %v1375_v38 = vld [vmem:[#allocation11 + $0x748] sm:$0xff] }
 0x3ec   :  { %2930 = vmatprep.subr.bf16.mxu0 %v4530_v40  ;;  %2889 = vmatprep.subr.bf16.mxu1 %v4656_v41  ;;  %v1379_v39 = vld [vmem:[#allocation11 + $0x768] sm:$0xff]  ;;  %v4577_v40 = vcombine.low %v1240_v29, %v1244_v30  ;;  %v4703_v41 = vcombine.low %v1367_v31, %v1371_v32  ;;  %v4626_v29 = vcombine.high %v1288_v19, %v1292_v22  ;;  %v1296_v31 = vld [vmem:[#allocation11 + $0x4d0] sm:$0xff] }
 0x3ed   :  { %v4712_v20 = vcombine.high %v1375_v38, %v1379_v39  ;;  %v1300_v32 = vld [vmem:[#allocation11 + $0x4f0] sm:$0xff] }
 0x3ef   :  { %2931 = vmatpush1.bf16.msra.mxu0 %v4529_v21  ;;  %2890 = vmatpush1.bf16.msra.mxu1 %v4655_v45  ;;  %v1383_v21 = vld [vmem:[#allocation11 + $0x788] sm:$0xff] }
 0x3f0   :  { %2932 = vmatprep.subr.bf16.mxu0 %v4538_v58  ;;  %2891 = vmatprep.subr.bf16.mxu1 %v4664_v59  ;;  %v1387_v45 = vld [vmem:[#allocation11 + $0x7a8] sm:$0xff]  ;;  %v4585_v58 = vcombine.low %v1248_v36, %v1252_v37  ;;  %v4711_v59 = vcombine.low %v1375_v38, %v1379_v39  ;;  %v4634_v36 = vcombine.high %v1296_v31, %v1300_v32  ;;  %v1304_v38 = vld [vmem:[#allocation11 + $0x510] sm:$0xff] }
 0x3f1   :  { %v4720_v46 = vcombine.high %v1383_v21, %v1387_v45  ;;  %v1308_v39 = vld [vmem:[#allocation11 + $0x530] sm:$0xff] }
 0x3f3   :  { %2933 = vmatpush1.bf16.msra.mxu0 %v4537_v55  ;;  %2892 = vmatpush1.bf16.msra.mxu1 %v4663_v56  ;;  %v1391_v55 = vld [vmem:[#allocation11 + $0x7c8] sm:$0xff] }
 0x3f4   :  { %2934 = vmatprep.subr.bf16.mxu0 %v4546_v57  ;;  %2893 = vmatprep.subr.bf16.mxu1 %v4672_v60  ;;  %v1395_v56 = vld [vmem:[#allocation11 + $0x7e8] sm:$0xff]  ;;  %v4593_v57 = vcombine.low %v1256_v43, %v1260_v44  ;;  %v4719_v60 = vcombine.low %v1383_v21, %v1387_v45  ;;  %v1312_v44 = vld [vmem:[#allocation11 + $0x550] sm:$0xff]  ;;  %v1185_v45 = vld [vmem:[#allocation11 + $0x158] sm:$0xff] }
 0x3f5   :  { %v4728_v63 = vcombine.high %v1391_v55, %v1395_v56  ;;  %v1316_v21 = vld [vmem:[#allocation11 + $0x570] sm:$0xff] }
 0x3f7   :  { %2935 = vmatpush1.bf16.msra.mxu0 %v4545_v6  ;;  %2894 = vmatpush1.bf16.msra.mxu1 %v4671_v7  ;;  %v1145_v6 = vld [vmem:[#allocation11 + $0x18] sm:$0xff] }
 0x3f8   :  { %2936 = vmatprep.subr.bf16.mxu0 %v4554_v9  ;;  %2895 = vmatprep.subr.bf16.mxu1 %v4680_v10  ;;  %v1149_v7 = vld [vmem:[#allocation11 + $0x38] sm:$0xff]  ;;  %v4601_v9 = vcombine.low %v1264_v47, %v1268_v53  ;;  %v4727_v10 = vcombine.low %v1391_v55, %v1395_v56  ;;  %v1320_v53 = vld [vmem:[#allocation11 + $0x590] sm:$0xff] }
 0x3f9   :  { %v4484_v13 = vcombine.high %v1145_v6, %v1149_v7  ;;  %v1324_v55 = vld [vmem:[#allocation11 + $0x5b0] sm:$0xff]  ;;  %v1193_v56 = vld [vmem:[#allocation11 + $0x198] sm:$0xff] }
 0x3fb   :  { %2937 = vmatpush1.bf16.msra.mxu0 %v4553_v3  ;;  %2896 = vmatpush1.bf16.msra.mxu1 %v4679_v11  ;;  %v1153_v3 = vld [vmem:[#allocation11 + $0x58] sm:$0xff] }
 0x3fc   :  { %2938 = vmatprep.subr.bf16.mxu0 %v4562_v15  ;;  %2897 = vmatprep.subr.bf16.mxu1 %v4688_v16  ;;  %v1157_v11 = vld [vmem:[#allocation11 + $0x78] sm:$0xff]  ;;  %v4609_v15 = vcombine.low %v1272_v0, %v1276_v5  ;;  %v4483_v16 = vcombine.low %v1145_v6, %v1149_v7  ;;  %v1328_v5 = vld [vmem:[#allocation11 + $0x5d0] sm:$0xff] }
 0x3fd   :  { %v4492_v18 = vcombine.high %v1153_v3, %v1157_v11  ;;  %v1332_v6 = vld [vmem:[#allocation11 + $0x5f0] sm:$0xff]  ;;  %v1201_v7 = vld [vmem:[#allocation11 + $0x1d8] sm:$0xff] }
 0x3ff   :  { %2939 = vmatpush1.bf16.msra.mxu0 %v4561_v23  ;;  %2898 = vmatpush1.bf16.msra.mxu1 %v4687_v24  ;;  %v1161_v23 = vld [vmem:[#allocation11 + $0x98] sm:$0xff] }
 0x400   :  { %2940 = vmatprep.subr.bf16.mxu0 %v4570_v25  ;;  %2899 = vmatprep.subr.bf16.mxu1 %v4696_v27  ;;  %v1165_v24 = vld [vmem:[#allocation11 + $0xb8] sm:$0xff]  ;;  %v4617_v25 = vcombine.low %v1280_v14, %v1284_v8  ;;  %v4491_v27 = vcombine.low %v1153_v3, %v1157_v11  ;;  %v1336_v8 = vld [vmem:[#allocation11 + $0x610] sm:$0xff] }
 0x401   :  { %v4500_v30 = vcombine.high %v1161_v23, %v1165_v24  ;;  %v1340_v3 = vld [vmem:[#allocation11 + $0x630] sm:$0xff]  ;;  %v1209_v11 = vld [vmem:[#allocation11 + $0x218] sm:$0xff] }
 0x403   :  { %2941 = vmatpush1.bf16.msra.mxu0 %v4569_v33  ;;  %2900 = vmatpush1.bf16.msra.mxu1 %v4695_v34  ;;  %v1169_v33 = vld [vmem:[#allocation11 + $0xd8] sm:$0xff] }
 0x404   :  { %2942 = vmatprep.subr.bf16.mxu0 %v4578_v1  ;;  %2901 = vmatprep.subr.bf16.mxu1 %v4704_v35  ;;  %v1173_v34 = vld [vmem:[#allocation11 + $0xf8] sm:$0xff]  ;;  %v4625_v1 = vcombine.low %v1288_v19, %v1292_v22  ;;  %v4499_v35 = vcombine.low %v1161_v23, %v1165_v24  ;;  %v1344_v22 = vld [vmem:[#allocation11 + $0x650] sm:$0xff] }
 0x405   :  { %v4508_v37 = vcombine.high %v1169_v33, %v1173_v34  ;;  %v1348_v23 = vld [vmem:[#allocation11 + $0x670] sm:$0xff]  ;;  %v1217_v24 = vld [vmem:[#allocation11 + $0x258] sm:$0xff] }
 0x407   :  { %2943 = vmatpush1.bf16.msra.mxu0 %v4577_v40  ;;  %2902 = vmatpush1.bf16.msra.mxu1 %v4703_v41  ;;  %v1181_v40 = vld [vmem:[#allocation11 + $0x138] sm:$0xff]  ;;  %v4633_v41 = vcombine.low %v1296_v31, %v1300_v32  ;;  %v1352_v32 = vld [vmem:[#allocation11 + $0x690] sm:$0xff] }
 0x408   :  { %2944 = vmatprep.subr.bf16.mxu0 %v4586_v42  ;;  %2903 = vmatprep.subr.bf16.mxu1 %v4712_v20  ;;  %v4507_v42 = vcombine.low %v1169_v33, %v1173_v34  ;;  %v4642_v20 = vcombine.high %v1304_v38, %v1308_v39  ;;  %v1356_v33 = vld [vmem:[#allocation11 + $0x6b0] sm:$0xff]  ;;  %v1225_v34 = vld [vmem:[#allocation11 + $0x298] sm:$0xff] }
 0x40b   :  { %2945 = vmatpush1.bf16.msra.mxu0 %v4585_v58  ;;  %2904 = vmatpush1.bf16.msra.mxu1 %v4711_v59  ;;  %v1189_v58 = vld [vmem:[#allocation11 + $0x178] sm:$0xff]  ;;  %v4641_v59 = vcombine.low %v1304_v38, %v1308_v39  ;;  %v1360_v39 = vld [vmem:[#allocation11 + $0x6d0] sm:$0xff] }
 0x40c   :  { %2946 = vmatprep.subr.bf16.mxu0 %v4594_v61  ;;  %2905 = vmatprep.subr.bf16.mxu1 %v4720_v46  ;;  %v4650_v46 = vcombine.high %v1312_v44, %v1316_v21  ;;  %v4524_v47 = vcombine.high %v1185_v45, %v1189_v58 }
 0x40f   :  { %2947 = vmatpush1.bf16.msra.mxu0 %v4593_v57  ;;  %2906 = vmatpush1.bf16.msra.mxu1 %v4719_v60  ;;  %v1197_v57 = vld [vmem:[#allocation11 + $0x1b8] sm:$0xff]  ;;  %v4649_v60 = vcombine.low %v1312_v44, %v1316_v21  ;;  %v1368_v21 = vld [vmem:[#allocation11 + $0x710] sm:$0xff] }
 0x410   :  { %2948 = vmatprep.subr.bf16.mxu0 %v4602_v62  ;;  %2907 = vmatprep.subr.bf16.mxu1 %v4728_v63  ;;  %v4523_v62 = vcombine.low %v1185_v45, %v1189_v58  ;;  %v4658_v63 = vcombine.high %v1320_v53, %v1324_v55  ;;  %v4532_v0 = vcombine.high %v1193_v56, %v1197_v57  ;;  %v1372_v45 = vld [vmem:[#allocation11 + $0x730] sm:$0xff]  ;;  %v1241_v58 = vld [vmem:[#allocation11 + $0x318] sm:$0xff] }
 0x413   :  { %2949 = vmatpush1.bf16.msra.mxu0 %v4601_v9  ;;  %2908 = vmatpush1.bf16.msra.mxu1 %v4727_v10  ;;  %v1205_v9 = vld [vmem:[#allocation11 + $0x1f8] sm:$0xff]  ;;  %v4657_v10 = vcombine.low %v1320_v53, %v1324_v55  ;;  %v1376_v55 = vld [vmem:[#allocation11 + $0x750] sm:$0xff] }
 0x414   :  { %2959 = vmatprep.subr.bf16.mxu0 %v4610_v12  ;;  %3000 = vmatprep.subr.bf16.mxu1 %v4484_v13  ;;  %v4531_v12 = vcombine.low %v1193_v56, %v1197_v57  ;;  %v4666_v13 = vcombine.high %v1328_v5, %v1332_v6  ;;  %v4540_v14 = vcombine.high %v1201_v7, %v1205_v9  ;;  %v1380_v56 = vld [vmem:[#allocation11 + $0x770] sm:$0xff]  ;;  %v1249_v57 = vld [vmem:[#allocation11 + $0x358] sm:$0xff] }
 0x416   :  { %2951 = vmatmul.mubr.bf16.vlgmr.msra.gmra.mrb[8].mxu0 %v5762_v28  ;;  %2910 = vmatmul.mubr.bf16.vlgmr.msra.gmra.mrb[16].mxu1 %v5796_v54 }
 0x417   :  { %2960 = vmatpush1.bf16.msra.mxu0 %v4609_v15  ;;  %2991 = vmatprep.mubr.bf16.mxu0 %v5794_v48  ;;  %v1213_v15 = vld [vmem:[#allocation11 + $0x238] sm:$0xff] }
 0x418   :  { %3001 = vmatpush1.bf16.msra.mxu1 %v4483_v16  ;;  %3032 = vmatprep.mubr.bf16.mxu1 %v5758_v26  ;;  %v1177_v26 = vld [vmem:[#allocation11 + $0x118] sm:$0xff]  ;;  %v4665_v16 = vcombine.low %v1328_v5, %v1332_v6  ;;  %v4548_v19 = vcombine.high %v1209_v11, %v1213_v15  ;;  %v1384_v6 = vld [vmem:[#allocation11 + $0x790] sm:$0xff] }
 0x419   :  { %2961 = vmatprep.subr.bf16.mxu0 %v4618_v17  ;;  %3002 = vmatprep.subr.bf16.mxu1 %v4492_v18  ;;  %v4516_v43 = vcombine.high %v1177_v26, %v1181_v40  ;;  %v4515_v61 = vcombine.low %v1177_v26, %v1181_v40  ;;  %v4539_v17 = vcombine.low %v1201_v7, %v1205_v9  ;;  %v1364_v26 = vld [vmem:[#allocation11 + $0x6f0] sm:$0xff]  ;;  %v1233_v40 = vld [vmem:[#allocation11 + $0x2d8] sm:$0xff] }
 0x41a   :  { %v4674_v18 = vcombine.high %v1336_v8, %v1340_v3  ;;  %v1388_v7 = vld [vmem:[#allocation11 + $0x7b0] sm:$0xff]  ;;  %v1257_v9 = vld [vmem:[#allocation11 + $0x398] sm:$0xff] }
 0x41b   :  { %2962 = vmatpush1.bf16.msra.mxu0 %v4617_v25  ;;  %v1221_v25 = vld [vmem:[#allocation11 + $0x278] sm:$0xff] }
 0x41c   :  { %3003 = vmatpush1.bf16.msra.mxu1 %v4491_v27  ;;  %2963 = vmatprep.subr.bf16.mxu0 %v4626_v29  ;;  %v4673_v27 = vcombine.low %v1336_v8, %v1340_v3  ;;  %v4547_v29 = vcombine.low %v1209_v11, %v1213_v15  ;;  %v4556_v31 = vcombine.high %v1217_v24, %v1221_v25  ;;  %v1392_v3 = vld [vmem:[#allocation11 + $0x7d0] sm:$0xff]  ;;  %v1265_v15 = vld [vmem:[#allocation11 + $0x3d8] sm:$0xff] }
 0x41d   :  { %3004 = vmatprep.subr.bf16.mxu1 %v4500_v30  ;;  %v4682_v30 = vcombine.high %v1344_v22, %v1348_v23  ;;  %v1396_v11 = vld [vmem:[#allocation11 + $0x7f0] sm:$0xff] }
 0x41f   :  { %2964 = vmatpush1.bf16.msra.mxu0 %v4625_v1  ;;  %v1229_v1 = vld [vmem:[#allocation11 + $0x2b8] sm:$0xff] }
 0x420   :  { %3005 = vmatpush1.bf16.msra.mxu1 %v4499_v35  ;;  %2965 = vmatprep.subr.bf16.mxu0 %v4634_v36  ;;  %v4681_v35 = vcombine.low %v1344_v22, %v1348_v23  ;;  %v4555_v36 = vcombine.low %v1217_v24, %v1221_v25  ;;  %v4564_v38 = vcombine.high %v1225_v34, %v1229_v1  ;;  %v1273_v23 = vld [vmem:[#allocation11 + $0x418] sm:$0xff] }
 0x421   :  { %3006 = vmatprep.subr.bf16.mxu1 %v4508_v37  ;;  %v4690_v37 = vcombine.high %v1352_v32, %v1356_v33  ;;  %v1277_v24 = vld [vmem:[#allocation11 + $0x438] sm:$0xff]  ;;  %v4729_v25 = vcombine.low %v1392_v3, %v1396_v11 }
 0x423   :  { %2966 = vmatpush1.bf16.msra.mxu0 %v4633_v41  ;;  %v1237_v41 = vld [vmem:[#allocation11 + $0x2f8] sm:$0xff] }
 0x424   :  { %3007 = vmatpush1.bf16.msra.mxu1 %v4507_v42  ;;  %2967 = vmatprep.subr.bf16.mxu0 %v4642_v20  ;;  %v4689_v42 = vcombine.low %v1352_v32, %v1356_v33  ;;  %v4563_v20 = vcombine.low %v1225_v34, %v1229_v1  ;;  %v4572_v44 = vcombine.high %v1233_v40, %v1237_v41  ;;  %v1285_v32 = vld [vmem:[#allocation11 + $0x478] sm:$0xff]  ;;  %v5050_v33 = vld [vmem:[#allocation14] ss:$8 sps:$4 sm:$0xff]  }
 0x425   :  { %3008 = vmatprep.subr.bf16.mxu1 %v4516_v43  ;;  %v4698_v43 = vcombine.high %v1360_v39, %v1364_v26  ;;  %v4611_v34 = vcombine.low %v1273_v23, %v1277_v24 }
 0x427   :  { %2968 = vmatpush1.bf16.msra.mxu0 %v4641_v59  ;;  %v1245_v59 = vld [vmem:[#allocation11 + $0x338] sm:$0xff] }
 0x428   :  { %3009 = vmatpush1.bf16.msra.mxu1 %v4515_v61  ;;  %2969 = vmatprep.subr.bf16.mxu0 %v4650_v46  ;;  %v4697_v61 = vcombine.low %v1360_v39, %v1364_v26  ;;  %v4571_v46 = vcombine.low %v1233_v40, %v1237_v41  ;;  %v4580_v53 = vcombine.high %v1241_v58, %v1245_v59  ;;  %v5058_v26 = vld [vmem:[#allocation14 + $0x24] ss:$8 sps:$4 sm:$0xff]   ;;  %v1297_v41 = vld [vmem:[#allocation11 + $0x4d8] sm:$0xff] }
 0x429   :  { %3010 = vmatprep.subr.bf16.mxu1 %v4524_v47  ;;  %v4706_v47 = vcombine.high %v1368_v21, %v1372_v45 }
 0x42b   :  { %2970 = vmatpush1.bf16.msra.mxu0 %v4649_v60  ;;  %v1253_v60 = vld [vmem:[#allocation11 + $0x378] sm:$0xff] }
 0x42c   :  { %3011 = vmatpush1.bf16.msra.mxu1 %v4523_v62  ;;  %2971 = vmatprep.subr.bf16.mxu0 %v4658_v63  ;;  %v4705_v62 = vcombine.low %v1368_v21, %v1372_v45  ;;  %v4579_v63 = vcombine.low %v1241_v58, %v1245_v59  ;;  %v4588_v5 = vcombine.high %v1249_v57, %v1253_v60  ;;  %v1305_v21 = vld [vmem:[#allocation11 + $0x518] sm:$0xff]  ;;  %v5064_v59 = vld [vmem:[#allocation14 + $0x44] ss:$8 sps:$4 sm:$0xff]  }
 0x42d   :  { %3012 = vmatprep.subr.bf16.mxu1 %v4532_v0  ;;  %v4714_v0 = vcombine.high %v1376_v55, %v1380_v56  ;;  %v1309_v45 = vld [vmem:[#allocation11 + $0x538] sm:$0xff] }
 0x42e   :  { %v5059_v58 = vld [vmem:[#allocation14 + $0x30] ss:$8 sps:$4 sm:$0xff]  }
 0x42f   :  { %2972 = vmatpush1.bf16.msra.mxu0 %v4657_v10  ;;  %v1261_v10 = vld [vmem:[#allocation11 + $0x3b8] sm:$0xff] }
 0x430   :  { %3013 = vmatpush1.bf16.msra.mxu1 %v4531_v12  ;;  %2973 = vmatprep.subr.bf16.mxu0 %v4666_v13  ;;  %v4713_v12 = vcombine.low %v1376_v55, %v1380_v56  ;;  %v4587_v13 = vcombine.low %v1249_v57, %v1253_v60  ;;  %v4596_v8 = vcombine.high %v1257_v9, %v1261_v10  ;;  %v5067_v56 = vld [vmem:[#allocation14 + $0x54] ss:$8 sps:$4 sm:$0xff]  }
 0x431   :  { %3014 = vmatprep.subr.bf16.mxu1 %v4540_v14  ;;  %v4722_v14 = vcombine.high %v1384_v6, %v1388_v7  ;;  %v4643_v55 = vcombine.low %v1305_v21, %v1309_v45  ;;  %v1321_v60 = vld [vmem:[#allocation11 + $0x598] sm:$0xff] }
 0x433   :  { %2974 = vmatpush1.bf16.msra.mxu0 %v4665_v16  ;;  %v1269_v16 = vld [vmem:[#allocation11 + $0x3f8] sm:$0xff] }
 0x434   :  { %3015 = vmatpush1.bf16.msra.mxu1 %v4539_v17  ;;  %2975 = vmatprep.subr.bf16.mxu0 %v4674_v18  ;;  %v4721_v17 = vcombine.low %v1384_v6, %v1388_v7  ;;  %v4595_v18 = vcombine.low %v1257_v9, %v1261_v10  ;;  %v4604_v22 = vcombine.high %v1265_v15, %v1269_v16  ;;  %v1329_v10 = vld [vmem:[#allocation11 + $0x5d8] sm:$0xff] }
 0x435   :  { %3016 = vmatprep.subr.bf16.mxu1 %v4548_v19  ;;  %v4730_v19 = vcombine.high %v1392_v3, %v1396_v11  ;;  %v5073_v11 = vld [vmem:[#allocation14 + $0x74] ss:$8 sps:$4 sm:$0xff]  }
 0x437   :  { %2976 = vmatpush1.bf16.msra.mxu0 %v4673_v27  ;;  %v4603_v27 = vcombine.low %v1265_v15, %v1269_v16  ;;  %v1337_v16 = vld [vmem:[#allocation11 + $0x618] sm:$0xff] }
 0x438   :  { %3017 = vmatpush1.bf16.msra.mxu1 %v4547_v29  ;;  %2977 = vmatprep.subr.bf16.mxu0 %v4682_v30  ;;  %v5052_v29 = vld [vmem:[#allocation14 + $0x4] ss:$8 sps:$4 sm:$0xff]   ;;  %v4612_v30 = vcombine.high %v1273_v23, %v1277_v24  ;;  %v1345_v24 = vld [vmem:[#allocation11 + $0x658] sm:$0xff] }
 0x439   :  { %3018 = vmatprep.subr.bf16.mxu1 %v4556_v31  ;;  %v1281_v31 = vld [vmem:[#allocation11 + $0x458] sm:$0xff] }
 0x43a   :  { %v4620_v1 = vcombine.high %v1281_v31, %v1285_v32  ;;  %v4619_v39 = vcombine.low %v1281_v31, %v1285_v32  ;;  %v1353_v32 = vld [vmem:[#allocation11 + $0x698] sm:$0xff] }
 0x43b   :  { %2978 = vmatpush1.bf16.msra.mxu0 %v4681_v35  ;;  %v5055_v35 = vld [vmem:[#allocation14 + $0x14] ss:$8 sps:$4 sm:$0xff]  }
 0x43c   :  { %3019 = vmatpush1.bf16.msra.mxu1 %v4555_v36  ;;  %2979 = vmatprep.subr.bf16.mxu0 %v4690_v37  ;;  %v1289_v36 = vld [vmem:[#allocation11 + $0x498] sm:$0xff] }
 0x43d   :  { %3020 = vmatprep.subr.bf16.mxu1 %v4564_v38  ;;  %v1293_v37 = vld [vmem:[#allocation11 + $0x4b8] sm:$0xff] }
 0x43e   :  { %v5053_v38 = vld [vmem:[#allocation14 + $0x10] ss:$8 sps:$4 sm:$0xff]   ;;  %v4628_v40 = vcombine.high %v1289_v36, %v1293_v37 }
 0x43f   :  { %2980 = vmatpush1.bf16.msra.mxu0 %v4689_v42  ;;  %v1301_v42 = vld [vmem:[#allocation11 + $0x4f8] sm:$0xff] }
 0x440   :  { %3021 = vmatpush1.bf16.msra.mxu1 %v4563_v20  ;;  %2981 = vmatprep.subr.bf16.mxu0 %v4698_v43  ;;  %v5056_v20 = vld [vmem:[#allocation14 + $0x20] ss:$8 sps:$4 sm:$0xff]   ;;  %v4627_v43 = vcombine.low %v1289_v36, %v1293_v37  ;;  %v1361_v37 = vld [vmem:[#allocation11 + $0x6d8] sm:$0xff] }
 0x441   :  { %3022 = vmatprep.subr.bf16.mxu1 %v4572_v44  ;;  %v5061_v44 = vld [vmem:[#allocation14 + $0x34] ss:$8 sps:$4 sm:$0xff]  }
 0x443   :  { %2982 = vmatpush1.bf16.msra.mxu0 %v4697_v61  ;;  %v4644_v61 = vcombine.high %v1305_v21, %v1309_v45  ;;  %v1377_v45 = vld [vmem:[#allocation11 + $0x758] sm:$0xff] }
 0x444   :  { %3023 = vmatpush1.bf16.msra.mxu1 %v4571_v46  ;;  %2983 = vmatprep.subr.bf16.mxu0 %v4706_v47  ;;  %v1313_v46 = vld [vmem:[#allocation11 + $0x558] sm:$0xff] }
 0x445   :  { %3024 = vmatprep.subr.bf16.mxu1 %v4580_v53  ;;  %v1317_v47 = vld [vmem:[#allocation11 + $0x578] sm:$0xff]  ;;  %v5062_v53 = vld [vmem:[#allocation14 + $0x40] ss:$8 sps:$4 sm:$0xff]  }
 0x446   :  { %v4652_v57 = vcombine.high %v1313_v46, %v1317_v47 }
 0x447   :  { %2984 = vmatpush1.bf16.msra.mxu0 %v4705_v62  ;;  %v1325_v62 = vld [vmem:[#allocation11 + $0x5b8] sm:$0xff] }
 0x448   :  { %3025 = vmatpush1.bf16.msra.mxu1 %v4579_v63  ;;  %2985 = vmatprep.subr.bf16.mxu0 %v4714_v0  ;;  %v5065_v63 = vld [vmem:[#allocation14 + $0x50] ss:$8 sps:$4 sm:$0xff]   ;;  %v4651_v0 = vcombine.low %v1313_v46, %v1317_v47  ;;  %v4660_v7 = vcombine.high %v1321_v60, %v1325_v62  ;;  %v4659_v3 = vcombine.low %v1321_v60, %v1325_v62 }
 0x449   :  { %3026 = vmatprep.subr.bf16.mxu1 %v4588_v5  ;;  %v5070_v5 = vld [vmem:[#allocation14 + $0x64] ss:$8 sps:$4 sm:$0xff]   ;;  %v1385_v47 = vld [vmem:[#allocation11 + $0x798] sm:$0xff] }
 0x44a   :  { %v1393_v62 = vld [vmem:[#allocation11 + $0x7d8] sm:$0xff] }
 0x44b   :  { %2986 = vmatpush1.bf16.msra.mxu0 %v4713_v12  ;;  %v1333_v12 = vld [vmem:[#allocation11 + $0x5f8] sm:$0xff] }
 0x44c   :  { %3027 = vmatpush1.bf16.msra.mxu1 %v4587_v13  ;;  %2987 = vmatprep.subr.bf16.mxu0 %v4722_v14  ;;  %v5068_v14 = vld [vmem:[#allocation14 + $0x60] ss:$8 sps:$4 sm:$0xff]   ;;  %v4668_v15 = vcombine.high %v1329_v10, %v1333_v12 }
 0x44d   :  { %3028 = vmatprep.subr.bf16.mxu1 %v4596_v8 }
 0x44f   :  { %2988 = vmatpush1.bf16.msra.mxu0 %v4721_v17  ;;  %v1341_v17 = vld [vmem:[#allocation11 + $0x638] sm:$0xff] }
 0x450   :  { %3029 = vmatpush1.bf16.msra.mxu1 %v4595_v18  ;;  %2989 = vmatprep.subr.bf16.mxu0 %v4730_v19  ;;  %v5071_v18 = vld [vmem:[#allocation14 + $0x70] ss:$8 sps:$4 sm:$0xff]   ;;  %v4667_v19 = vcombine.low %v1329_v10, %v1333_v12  ;;  %v4676_v23 = vcombine.high %v1337_v16, %v1341_v17 }
 0x451   :  { %3030 = vmatprep.subr.bf16.mxu1 %v4604_v22  ;;  %v5076_v22 = vld [vmem:[#allocation14 + $0x84] ss:$8 sps:$4 sm:$0xff]   ;;  %v5095_v12 = vld [vmem:[#allocation14 + $0xf0] ss:$8 sps:$4 sm:$0xff]  }
 0x453   :  { %2990 = vmatpush1.bf16.msra.mxu0 %v4729_v25  ;;  %v1349_v25 = vld [vmem:[#allocation11 + $0x678] sm:$0xff] }
 0x454   :  { %3031 = vmatpush1.bf16.msra.mxu1 %v4603_v27  ;;  %4206 = vmatprep.subr.bf16.mxu0 %v5052_v29  ;;  %v5074_v27 = vld [vmem:[#allocation14 + $0x80] ss:$8 sps:$4 sm:$0xff]   ;;  %v4675_v29 = vcombine.low %v1337_v16, %v1341_v17  ;;  %v4684_v31 = vcombine.high %v1345_v24, %v1349_v25 }
 0x455   :  { %3041 = vmatprep.subr.bf16.mxu1 %v4612_v30  ;;  %v5079_v30 = vld [vmem:[#allocation14 + $0x94] ss:$8 sps:$4 sm:$0xff]  }
 0x456   :  { %2992 = vmatmul.mubr.bf16.vlgmr.msra.gmra.mrb[8].mxu0 %v5796_v54 }
 0x457   :  { %3033 = vmatmul.mubr.bf16.vlgmr.msra.gmra.mrb[20].mxu1 %v5762_v28  ;;  %4207 = vmatpush1.bf16.msra.mxu0 %v5050_v33  ;;  %v4636_v28 = vcombine.high %v1297_v41, %v1301_v42  ;;  %v1357_v33 = vld [vmem:[#allocation11 + $0x6b8] sm:$0xff] }
 0x458   :  { %3042 = vmatpush1.bf16.msra.mxu1 %v4611_v34  ;;  %3073 = vmatprep.mubr.bf16.mxu1 %v5794_v48  ;;  %v4635_v48 = vcombine.low %v1297_v41, %v1301_v42  ;;  %v5077_v34 = vld [vmem:[#allocation14 + $0x90] ss:$8 sps:$4 sm:$0xff]   ;;  %v4692_v36 = vcombine.high %v1353_v32, %v1357_v33 }
 0x459   :  { %3043 = vmatprep.subr.bf16.mxu1 %v4620_v1  ;;  %4208 = vmatprep.subr.bf16.mxu0 %v5055_v35  ;;  %v4683_v1 = vcombine.low %v1345_v24, %v1349_v25  ;;  %v5082_v35 = vld [vmem:[#allocation14 + $0xa4] ss:$8 sps:$4 sm:$0xff]   ;;  %v1369_v42 = vld [vmem:[#allocation11 + $0x718] sm:$0xff] }
 0x45b   :  { %4209 = vmatpush1.bf16.msra.mxu0 %v5053_v38  ;;  %v1365_v38 = vld [vmem:[#allocation11 + $0x6f8] sm:$0xff] }
 0x45c   :  { %3044 = vmatpush1.bf16.msra.mxu1 %v4619_v39  ;;  %4210 = vmatprep.subr.bf16.mxu0 %v5058_v26  ;;  %v5080_v39 = vld [vmem:[#allocation14 + $0xa0] ss:$8 sps:$4 sm:$0xff]   ;;  %v4691_v26 = vcombine.low %v1353_v32, %v1357_v33  ;;  %v4700_v41 = vcombine.high %v1361_v37, %v1365_v38 }
 0x45d   :  { %3045 = vmatprep.subr.bf16.mxu1 %v4628_v40  ;;  %v5085_v40 = vld [vmem:[#allocation14 + $0xb4] ss:$8 sps:$4 sm:$0xff]  }
 0x45f   :  { %4211 = vmatpush1.bf16.msra.mxu0 %v5056_v20  ;;  %v1373_v20 = vld [vmem:[#allocation11 + $0x738] sm:$0xff] }
 0x460   :  { %3046 = vmatpush1.bf16.msra.mxu1 %v4627_v43  ;;  %4212 = vmatprep.subr.bf16.mxu0 %v5061_v44  ;;  %v5083_v43 = vld [vmem:[#allocation14 + $0xb0] ss:$8 sps:$4 sm:$0xff]   ;;  %v4699_v44 = vcombine.low %v1361_v37, %v1365_v38  ;;  %v4708_v21 = vcombine.high %v1369_v42, %v1373_v20 }
 0x461   :  { %3047 = vmatprep.subr.bf16.mxu1 %v4636_v28  ;;  %v5088_v28 = vld [vmem:[#allocation14 + $0xc4] ss:$8 sps:$4 sm:$0xff]  }
 0x463   :  { %4213 = vmatpush1.bf16.msra.mxu0 %v5059_v58  ;;  %v1381_v58 = vld [vmem:[#allocation11 + $0x778] sm:$0xff] }
 0x464   :  { %3048 = vmatpush1.bf16.msra.mxu1 %v4635_v48  ;;  %4214 = vmatprep.subr.bf16.mxu0 %v5064_v59  ;;  %v5086_v48 = vld [vmem:[#allocation14 + $0xc0] ss:$8 sps:$4 sm:$0xff]   ;;  %v4707_v59 = vcombine.low %v1369_v42, %v1373_v20  ;;  %v4716_v46 = vcombine.high %v1377_v45, %v1381_v58 }
 0x465   :  { %3049 = vmatprep.subr.bf16.mxu1 %v4644_v61  ;;  %v5091_v61 = vld [vmem:[#allocation14 + $0xd4] ss:$8 sps:$4 sm:$0xff]  }
 0x467   :  { %4215 = vmatpush1.bf16.msra.mxu0 %v5062_v53  ;;  %v1389_v53 = vld [vmem:[#allocation11 + $0x7b8] sm:$0xff] }
 0x468   :  { %3050 = vmatpush1.bf16.msra.mxu1 %v4643_v55  ;;  %4216 = vmatprep.subr.bf16.mxu0 %v5067_v56  ;;  %v5089_v55 = vld [vmem:[#allocation14 + $0xd0] ss:$8 sps:$4 sm:$0xff]   ;;  %v4715_v56 = vcombine.low %v1377_v45, %v1381_v58  ;;  %v4724_v60 = vcombine.high %v1385_v47, %v1389_v53 }
 0x469   :  { %v5813_v6 = vpop.f32.mrb[12].mxu1  ;;  %3051 = vmatprep.subr.bf16.mxu1 %v4652_v57  ;;  %v5094_v57 = vld [vmem:[#allocation14 + $0xe4] ss:$8 sps:$4 sm:$0xff]  }
 0x46a   :  { %v5815_v9 = vpop.f32.mrb[13].mxu1 }
 0x46b   :  { %v2792_v13 = vpop.f32.mrb[14].mxu1  ;;  %4217 = vmatpush1.bf16.msra.mxu0 %v5065_v63  ;;  %v1397_v63 = vld [vmem:[#allocation11 + $0x7f8] sm:$0xff] }
 0x46c   :  { %3052 = vmatpush1.bf16.msra.mxu1 %v4651_v0  ;;  %v2793_v8 = vpop.f32.mrb[15].mxu1  ;;  %4218 = vmatprep.subr.bf16.mxu0 %v5070_v5  ;;  %v5092_v0 = vld [vmem:[#allocation14 + $0xe0] ss:$8 sps:$4 sm:$0xff]   ;;  %v4723_v5 = vcombine.low %v1385_v47, %v1389_v53  ;;  %v4732_v10 = vcombine.high %v1393_v62, %v1397_v63  ;;  %v4731_v13 = vcombine.low %v1393_v62, %v1397_v63 }
 0x46d   :  { %3053 = vmatprep.subr.bf16.mxu1 %v4660_v7  ;;  %v5097_v7 = vld [vmem:[#allocation14 + $0xf4] ss:$8 sps:$4 sm:$0xff]   ;;  %v1134_v8 = vld [vmem:[#allocation13] sm:$0x77] }
 0x46e   :  { %v3317_v62 = vrot.slane %v1134_v8, %v5692_v51  ;;  %v3321_v63 = vrot.slane %v1134_v8, %v5694_v52 }
 0x46f   :  { %4219 = vmatpush1.bf16.msra.mxu0 %v5068_v14  ;;  %v5100_v14 = vld [vmem:[#allocation14 + $0x104] ss:$8 sps:$4 sm:$0xff]  }
 0x470   :  { %3054 = vmatpush1.bf16.msra.mxu1 %v4659_v3  ;;  %4220 = vmatprep.subr.bf16.mxu0 %v5073_v11  ;;  %v1405_v3 = vrot.slane %v1134_v8, %v5676_v2  ;;  %v1409_v11 = vrot.slane %v1134_v8, %v5680_v4 }
 0x471   :  { %3055 = vmatprep.subr.bf16.mxu1 %v4668_v15 }
 0x472   :  { %v1445_v15 = vrot.slane %v1405_v3, %v5676_v2  ;;  %v1449_v16 = vrot.slane %v1409_v11, %v5676_v2  ;;  %v3361_v3 = vrot.slane %v3321_v63, %v5692_v51  ;;  %v5116_v63 = vld [vmem:[#allocation14 + $0x160] ss:$8 sps:$4 sm:$0xff]  }
 0x473   :  { %4221 = vmatpush1.bf16.msra.mxu0 %v5071_v18 }
 0x474   :  { %3056 = vmatpush1.bf16.msra.mxu1 %v4667_v19  ;;  %4222 = vmatprep.subr.bf16.mxu0 %v5076_v22  ;;  %v2789_v17 = vadd.f32 %v5813_v6, %v1445_v15  ;;  %v2791_v18 = vadd.f32 %v5815_v9, %v1449_v16 }
 0x475   :  { %3057 = vmatprep.subr.bf16.mxu1 %v4676_v23 }
 0x477   :  { %4223 = vmatpush1.bf16.msra.mxu0 %v5074_v27 }
 0x478   :  { %3058 = vmatpush1.bf16.msra.mxu1 %v4675_v29  ;;  %4224 = vmatprep.subr.bf16.mxu0 %v5079_v30 }
 0x479   :  { %3059 = vmatprep.subr.bf16.mxu1 %v4684_v31 }
 0x47b   :  { %4225 = vmatpush1.bf16.msra.mxu0 %v5077_v34 }
 0x47c   :  { %3060 = vmatpush1.bf16.msra.mxu1 %v4683_v1  ;;  %4226 = vmatprep.subr.bf16.mxu0 %v5082_v35 }
 0x47d   :  { %3061 = vmatprep.subr.bf16.mxu1 %v4692_v36 }
 0x47f   :  { %4227 = vmatpush1.bf16.msra.mxu0 %v5080_v39 }
 0x480   :  { %3062 = vmatpush1.bf16.msra.mxu1 %v4691_v26  ;;  %4228 = vmatprep.subr.bf16.mxu0 %v5085_v40 }
 0x481   :  { %3063 = vmatprep.subr.bf16.mxu1 %v4700_v41 }
 0x483   :  { %4229 = vmatpush1.bf16.msra.mxu0 %v5083_v43 }
 0x484   :  { %3064 = vmatpush1.bf16.msra.mxu1 %v4699_v44  ;;  %4230 = vmatprep.subr.bf16.mxu0 %v5088_v28 }
 0x485   :  { %3065 = vmatprep.subr.bf16.mxu1 %v4708_v21 }
 0x487   :  { %4231 = vmatpush1.bf16.msra.mxu0 %v5086_v48 }
 0x488   :  { %3066 = vmatpush1.bf16.msra.mxu1 %v4707_v59  ;;  %4232 = vmatprep.subr.bf16.mxu0 %v5091_v61 }
 0x489   :  { %3067 = vmatprep.subr.bf16.mxu1 %v4716_v46 }
 0x48b   :  { %4233 = vmatpush1.bf16.msra.mxu0 %v5089_v55 }
 0x48c   :  { %3068 = vmatpush1.bf16.msra.mxu1 %v4715_v56  ;;  %4234 = vmatprep.subr.bf16.mxu0 %v5094_v57  ;;  %v3237_v57 = vrot.slane %v1134_v8, %v5688_v49 }
 0x48d   :  { %3069 = vmatprep.subr.bf16.mxu1 %v4724_v60  ;;  %v3241_v60 = vrot.slane %v1134_v8, %v5690_v50 }
 0x48f   :  { %4235 = vmatpush1.bf16.msra.mxu0 %v5092_v0  ;;  %v3277_v0 = vrot.slane %v3237_v57, %v5688_v49 }
 0x490   :  { %3070 = vmatpush1.bf16.msra.mxu1 %v4723_v5  ;;  %4236 = vmatprep.subr.bf16.mxu0 %v5097_v7  ;;  %v3281_v7 = vrot.slane %v3241_v60, %v5688_v49 }
 0x491   :  { %3071 = vmatprep.subr.bf16.mxu1 %v4732_v10 }
 0x493   :  { %4237 = vmatpush1.bf16.msra.mxu0 %v5095_v12 }
 0x494   :  { %3072 = vmatpush1.bf16.msra.mxu1 %v4731_v13  ;;  %4247 = vmatprep.subr.bf16.mxu0 %v5100_v14  ;;  %v3357_v13 = vrot.slane %v3317_v62, %v5692_v51 }
 0x497   :  { %3074 = vmatmul.mubr.bf16.vlgmr.msra.gmra.mrb[20].mxu1 %v5796_v54 }
 0x4a9   :  { %v2829_v19 = vpop.f32.mrb[4].mxu0 }
 0x4aa   :  { %v2830_v22 = vadd.f32 %v2829_v19, %v2789_v17  ;;  %v2831_v23 = vpop.f32.mrb[5].mxu0  ;;  %v5832_v19 = vld [vmem:[#allocation13 + $0x8] sm:$0x77] }
 0x4ab   :  { %v2832_v24 = vadd.f32 %v2831_v23, %v2791_v18  ;;  %v2833_v25 = vpop.f32.mrb[6].mxu0 }
 0x4ac   :  { %v3082_v27 = vrot.slane %v2830_v22, 4  ;;  %v2834_v54 = vpop.f32.mrb[7].mxu0 }
 0x4ad   :  { %v3088_v29 = vrot.slane %v2832_v24, 4  ;;  %v1417_v54 = vrot.slane %v5832_v19, %v5680_v4 }
 0x4ae   :  { %v3083_v30 = vadd.f32 %v3082_v27, %v2830_v22  ;;  %v5098_v27 = vld [vmem:[#allocation14 + $0x100] ss:$8 sps:$4 sm:$0xff]  }
 0x4af   :  { %v3089_v31 = vadd.f32 %v3088_v29, %v2832_v24 }
 0x4b0   :  { %v3084_v32 = vrot.slane %v3083_v30, 2 }
 0x4b1   :  { %v3090_v33 = vrot.slane %v3089_v31, 2 }
 0x4b2   :  { %v3085_v34 = vadd.f32 %v3084_v32, %v3083_v30  ;;  %v5103_v30 = vld [vmem:[#allocation14 + $0x114] ss:$8 sps:$4 sm:$0xff]   ;;  %v5101_v32 = vld [vmem:[#allocation14 + $0x110] ss:$8 sps:$4 sm:$0xff]  }
 0x4b3   :  { %v3091_v1 = vadd.f32 %v3090_v33, %v3089_v31  ;;  %v1457_v33 = vrot.slane %v1417_v54, %v5676_v2  ;;  %v5130_v54 = vld [vmem:[#allocation14 + $0x1a4] ss:$8 sps:$4 sm:$0xff]  }
 0x4b4   :  { %v3086_v35 = vrot.slane %v3085_v34, 1 }
 0x4b5   :  { %v3092_v36 = vrot.slane %v3091_v1, 1 }
 0x4b6   :  { %v3087_v37 = vadd.f32 %v3086_v35, %v3085_v34  ;;  %v5106_v34 = vld [vmem:[#allocation14 + $0x124] ss:$8 sps:$4 sm:$0xff]  }
 0x4b7   :  { %v3093_v6 = vadd.f32 %v3092_v36, %v3091_v1 }
 0x4b8   :  { %v3130_v38 = vmul.f32 0.125, %v3087_v37 }
 0x4b9   :  { %v3131_v9 = vmul.f32 0.125, %v3093_v6 }
 0x4ba   :  { %v3138_v39 = vsub.f32 %v2830_v22, %v3130_v38  ;;  %v5104_v38 = vld [vmem:[#allocation14 + $0x120] ss:$8 sps:$4 sm:$0xff]  }
 0x4bb   :  { %v3139_v26 = vsub.f32 %v2832_v24, %v3131_v9  ;;  %v1413_v24 = vrot.slane %v5832_v19, %v5676_v2 }
 0x4bc   :  { %v3146_v40 = vmul.f32 %v3138_v39, %v3138_v39 }
 0x4bd   :  { %v3147_v41 = vmul.f32 %v3139_v26, %v3139_v26  ;;  %v1453_v31 = vrot.slane %v1413_v24, %v5676_v2 }
 0x4be   :  { %v3154_v42 = vrot.slane %v3146_v40, 4 }
 0x4bf   :  { %v3160_v20 = vrot.slane %v3147_v41, 4 }
 0x4c0   :  { %v3155_v43 = vadd.f32 %v3154_v42, %v3146_v40 }
 0x4c1   :  { %v3161_v44 = vadd.f32 %v3160_v20, %v3147_v41  ;;  %v5107_v20 = vld [vmem:[#allocation14 + $0x130] ss:$8 sps:$4 sm:$0xff]  }
 0x4c2   :  { %v3156_v28 = vrot.slane %v3155_v43, 2 }
 0x4c3   :  { %v3162_v21 = vrot.slane %v3161_v44, 2 }
 0x4c4   :  { %v3157_v45 = vadd.f32 %v3156_v28, %v3155_v43 }
 0x4c5   :  { %v3163_v58 = vadd.f32 %v3162_v21, %v3161_v44  ;;  %v5112_v44 = vld [vmem:[#allocation14 + $0x144] ss:$8 sps:$4 sm:$0xff]  }
 0x4c6   :  { %v3158_v48 = vrot.slane %v3157_v45, 1 }
 0x4c7   :  { %v3164_v59 = vrot.slane %v3163_v58, 1 }
 0x4c8   :  { %v3159_v61 = vadd.f32 %v3158_v48, %v3157_v45 }
 0x4c9   :  { %v3165_v46 = vadd.f32 %v3164_v59, %v3163_v58  ;;  %v5110_v58 = vld [vmem:[#allocation14 + $0x140] ss:$8 sps:$4 sm:$0xff]   ;;  %v5115_v59 = vld [vmem:[#allocation14 + $0x154] ss:$8 sps:$4 sm:$0xff]  }
 0x4ca   :  { %v3202_v47 = vmul.f32 0.125, %v3159_v61 }
 0x4cb   :  { %v3203_v53 = vmul.f32 0.125, %v3165_v46 }
 0x4cc   :  { %v3210_v55 = vadd.f32 0.8, %v3202_v47 }
 0x4cd   :  { %v3211_v56 = vadd.f32 0.8, %v3203_v53  ;;  %v5113_v53 = vld [vmem:[#allocation14 + $0x150] ss:$8 sps:$4 sm:$0xff]  }
 0x4ce   :  { %5254 = vrsqrt.f32 %v3210_v55 }
 0x4cf   :  { %5256 = vrsqrt.f32 %v3211_v56  ;;  %v5118_v56 = vld [vmem:[#allocation14 + $0x164] ss:$8 sps:$4 sm:$0xff]  }
 0x4d8   :  { %v5255_v5 = vpop.eup %5254 }
 0x4d9   :  { %v5257_v10 = vpop.eup %5256  ;;  %v3226_v12 = vmul.f32 %v5255_v5, %v3138_v39  ;;  %v5121_v5 = vld [vmem:[#allocation14 + $0x174] ss:$8 sps:$4 sm:$0xff]  }
 0x4da   :  { %v3227_v14 = vmul.f32 %v5257_v10, %v3139_v26  ;;  %v5109_v26 = vld [vmem:[#allocation14 + $0x134] ss:$8 sps:$4 sm:$0xff]  }
 0x4db   :  { %v3306_v11 = vmul.f32 %v3277_v0, %v3226_v12 }
 0x4dc   :  { %v3307_v15 = vmul.f32 %v3281_v7, %v3227_v14 }
 0x4dd   :  { %v3386_v16 = vadd.f32 %v3357_v13, %v3306_v11  ;;  %v5119_v13 = vld [vmem:[#allocation14 + $0x170] ss:$8 sps:$4 sm:$0xff]  }
 0x4de   :  { %v3387_v17 = vadd.f32 %v3361_v3, %v3307_v15  ;;  %v5124_v3 = vld [vmem:[#allocation14 + $0x184] ss:$8 sps:$4 sm:$0xff]  }
 0x4df   :  { %vm3394_vm9 = vcmp.ge.f32.partialorder %v3386_v16, 0.0  ;;  %v3402_v18 = vmul.f32 0.2, %v3386_v16 }
 0x4e0   :  { %vm3395_vm10 = vcmp.ge.f32.partialorder %v3387_v17, 0.0  ;;  %v3403_v8 = vmul.f32 0.2, %v3387_v17 }
 0x4e1   :  { %v3410_v22 = vsel %vm3394_vm9, %v3386_v16, %v3402_v18 }
 0x4e2   :  { %v3411_v23 = vsel %vm3395_vm10, %v3387_v17, %v3403_v8  ;;  %v3419_v29 = vpack.c.bf16 %v3410_v22, %v3410_v22  ;;  %v5122_v17 = vld [vmem:[#allocation14 + $0x180] ss:$8 sps:$4 sm:$0xff]   ;;  %v5127_v8 = vld [vmem:[#allocation14 + $0x194] ss:$8 sps:$4 sm:$0xff]  }
 0x4e3   :  { %v3420_v25 = vpack.c.bf16 %v3411_v23, %v3411_v23 }
 0x4e5   :  { %4238 = vmatprep.mubr.bf16.mxu0 %v3420_v25  ;;  %v5125_v25 = vld [vmem:[#allocation14 + $0x190] ss:$8 sps:$4 sm:$0xff]  }
 0x4e6   :  { %4239 = vmatmul.mubr.bf16.vlgmr.msra.gmra.mrb[12].mxu0 %v3419_v29 }
 0x4e7   :  { %4248 = vmatpush1.bf16.msra.mxu0 %v5098_v27 }
 0x4e8   :  { %4249 = vmatprep.subr.bf16.mxu0 %v5103_v30 }
 0x4e9   :  { %v2911_v1 = vpop.f32.mrb[16].mxu1 }
 0x4ea   :  { %v4876_v35 = vadd.f32 %v2911_v1, %v1453_v31  ;;  %v2913_v36 = vpop.f32.mrb[17].mxu1 }
 0x4eb   :  { %v4877_v37 = vadd.f32 %v2913_v36, %v1457_v33  ;;  %4250 = vmatpush1.bf16.msra.mxu0 %v5101_v32  ;;  %v2915_v6 = vpop.f32.mrb[18].mxu1  ;;  %v5128_v32 = vld [vmem:[#allocation14 + $0x1a0] ss:$8 sps:$4 sm:$0xff]   ;;  %v5136_v36 = vld [vmem:[#allocation14 + $0x1c4] ss:$8 sps:$4 sm:$0xff]  }
 0x4ec   :  { %v3094_v9 = vrot.slane %v4876_v35, 4  ;;  %v2916_v39 = vpop.f32.mrb[19].mxu1  ;;  %4251 = vmatprep.subr.bf16.mxu0 %v5106_v34  ;;  %v5133_v34 = vld [vmem:[#allocation14 + $0x1b4] ss:$8 sps:$4 sm:$0xff]   ;;  %v5134_v6 = vld [vmem:[#allocation14 + $0x1c0] ss:$8 sps:$4 sm:$0xff]  }
 0x4ed   :  { %v3100_v40 = vrot.slane %v4877_v37, 4  ;;  %v3325_v39 = vrot.slane %v5832_v19, %v5692_v51 }
 0x4ee   :  { %v3095_v41 = vadd.f32 %v4876_v35, %v3094_v9  ;;  %v5139_v9 = vld [vmem:[#allocation14 + $0x1d4] ss:$8 sps:$4 sm:$0xff]  }
 0x4ef   :  { %v3101_v42 = vadd.f32 %v4877_v37, %v3100_v40  ;;  %4252 = vmatpush1.bf16.msra.mxu0 %v5104_v38  ;;  %v3249_v38 = vrot.slane %v5832_v19, %v5690_v50 }
 0x4f0   :  { %v3096_v43 = vrot.slane %v3095_v41, 2  ;;  %4253 = vmatprep.subr.bf16.mxu0 %v5109_v26  ;;  %v3329_v26 = vrot.slane %v5832_v19, %v5694_v52 }
 0x4f1   :  { %v3102_v28 = vrot.slane %v3101_v42, 2 }
 0x4f2   :  { %v3097_v21 = vadd.f32 %v3096_v43, %v3095_v41  ;;  %v5137_v41 = vld [vmem:[#allocation14 + $0x1d0] ss:$8 sps:$4 sm:$0xff]   ;;  %v5142_v43 = vld [vmem:[#allocation14 + $0x1e4] ss:$8 sps:$4 sm:$0xff]  }
 0x4f3   :  { %v3103_v45 = vadd.f32 %v3102_v28, %v3101_v42  ;;  %4254 = vmatpush1.bf16.msra.mxu0 %v5107_v20  ;;  %v3289_v20 = vrot.slane %v3249_v38, %v5688_v49 }
 0x4f4   :  { %v3098_v48 = vrot.slane %v3097_v21, 1  ;;  %4255 = vmatprep.subr.bf16.mxu0 %v5112_v44 }
 0x4f5   :  { %v3104_v61 = vrot.slane %v3103_v45, 1 }
 0x4f6   :  { %v3099_v46 = vadd.f32 %v3098_v48, %v3097_v21  ;;  %v3365_v21 = vrot.slane %v3325_v39, %v5692_v51 }
 0x4f7   :  { %v3105_v47 = vadd.f32 %v3104_v61, %v3103_v45  ;;  %4256 = vmatpush1.bf16.msra.mxu0 %v5110_v58  ;;  %v3369_v58 = vrot.slane %v3329_v26, %v5692_v51  ;;  %v5145_v61 = vld [vmem:[#allocation14 + $0x1f4] ss:$8 sps:$4 sm:$0xff]   ;;  %v5161_v26 = vld [vmem:[#allocation14 + $0x250] ss:$8 sps:$4 sm:$0xff]  }
 0x4f8   :  { %v3132_v55 = vmul.f32 0.125, %v3099_v46  ;;  %4257 = vmatprep.subr.bf16.mxu0 %v5115_v59 }
 0x4f9   :  { %v3133_v57 = vmul.f32 0.125, %v3105_v47  ;;  %v5143_v47 = vld [vmem:[#allocation14 + $0x1f0] ss:$8 sps:$4 sm:$0xff]  }
 0x4fa   :  { %v3140_v60 = vsub.f32 %v4876_v35, %v3132_v55  ;;  %v5131_v35 = vld [vmem:[#allocation14 + $0x1b0] ss:$8 sps:$4 sm:$0xff]  }
 0x4fb   :  { %v5840_v62 = vsub.f32 %v4877_v37, %v3133_v57  ;;  %4258 = vmatpush1.bf16.msra.mxu0 %v5113_v53  ;;  %v3245_v37 = vrot.slane %v5832_v19, %v5688_v49  ;;  %v5140_v19 = vld [vmem:[#allocation14 + $0x1e0] ss:$8 sps:$4 sm:$0xff]  }
 0x4fc   :  { %v3148_v0 = vmul.f32 %v3140_v60, %v3140_v60  ;;  %4259 = vmatprep.subr.bf16.mxu0 %v5118_v56  ;;  %v5857_v56 = vld [vmem:[#allocation13 + $0x10] sm:$0x77] }
 0x4fd   :  { %v3149_v7 = vmul.f32 %v5840_v62, %v5840_v62  ;;  %v3285_v40 = vrot.slane %v3245_v37, %v5688_v49 }
 0x4fe   :  { %v3166_v10 = vrot.slane %v3148_v0, 4 }
 0x4ff   :  { %v3172_v12 = vrot.slane %v3149_v7, 4  ;;  %4260 = vmatpush1.bf16.msra.mxu0 %v5116_v63 }
 0x500   :  { %v3167_v14 = vadd.f32 %v3166_v10, %v3148_v0  ;;  %4261 = vmatprep.subr.bf16.mxu0 %v5121_v5  ;;  %v1421_v0 = vrot.slane %v5857_v56, %v5676_v2  ;;  %v1425_v10 = vrot.slane %v5857_v56, %v5680_v4 }
 0x501   :  { %v3173_v11 = vadd.f32 %v3172_v12, %v3149_v7  ;;  %v5146_v7 = vld [vmem:[#allocation14 + $0x200] ss:$8 sps:$4 sm:$0xff]  }
 0x502   :  { %v3168_v15 = vrot.slane %v3167_v14, 2 }
 0x503   :  { %v3174_v16 = vrot.slane %v3173_v11, 2  ;;  %4262 = vmatpush1.bf16.msra.mxu0 %v5119_v13  ;;  %v5151_v13 = vld [vmem:[#allocation14 + $0x214] ss:$8 sps:$4 sm:$0xff]  }
 0x504   :  { %v3169_v18 = vadd.f32 %v3168_v15, %v3167_v14  ;;  %4263 = vmatprep.subr.bf16.mxu0 %v5124_v3  ;;  %v1461_v14 = vrot.slane %v1421_v0, %v5676_v2  ;;  %v1465_v3 = vrot.slane %v1425_v10, %v5676_v2  ;;  %v5154_v15 = vld [vmem:[#allocation14 + $0x224] ss:$8 sps:$4 sm:$0xff]  }
 0x505   :  { %v3175_v22 = vadd.f32 %v3174_v16, %v3173_v11  ;;  %v5149_v11 = vld [vmem:[#allocation14 + $0x210] ss:$8 sps:$4 sm:$0xff]   ;;  %v5178_v10 = vld [vmem:[#allocation14 + $0x2a4] ss:$8 sps:$4 sm:$0xff]  }
 0x506   :  { %v3170_v23 = vrot.slane %v3169_v18, 1 }
 0x507   :  { %v3176_v24 = vrot.slane %v3175_v22, 1  ;;  %4264 = vmatpush1.bf16.msra.mxu0 %v5122_v17 }
 0x508   :  { %v3171_v27 = vadd.f32 %v3170_v23, %v3169_v18  ;;  %4265 = vmatprep.subr.bf16.mxu0 %v5127_v8  ;;  %v5152_v23 = vld [vmem:[#allocation14 + $0x220] ss:$8 sps:$4 sm:$0xff]  }
 0x509   :  { %v3177_v29 = vadd.f32 %v3176_v24, %v3175_v22 }
 0x50a   :  { %v3204_v30 = vmul.f32 0.125, %v3171_v27  ;;  %v5157_v27 = vld [vmem:[#allocation14 + $0x234] ss:$8 sps:$4 sm:$0xff]  }
 0x50b   :  { %v3205_v31 = vmul.f32 0.125, %v3177_v29  ;;  %4266 = vmatpush1.bf16.msra.mxu0 %v5125_v25 }
 0x50c   :  { %v3212_v33 = vadd.f32 0.8, %v3204_v30  ;;  %4267 = vmatprep.subr.bf16.mxu0 %v5130_v54 }
 0x50d   :  { %v3213_v1 = vadd.f32 0.8, %v3205_v31  ;;  %v5155_v31 = vld [vmem:[#allocation14 + $0x230] ss:$8 sps:$4 sm:$0xff]  }
 0x50e   :  { %5258 = vrsqrt.f32 %v3212_v33  ;;  %v5160_v33 = vld [vmem:[#allocation14 + $0x244] ss:$8 sps:$4 sm:$0xff]  }
 0x50f   :  { %5260 = vrsqrt.f32 %v3213_v1  ;;  %4268 = vmatpush1.bf16.msra.mxu0 %v5128_v32 }
 0x510   :  { %4269 = vmatprep.subr.bf16.mxu0 %v5133_v34 }
 0x513   :  { %4270 = vmatpush1.bf16.msra.mxu0 %v5131_v35 }
 0x514   :  { %4271 = vmatprep.subr.bf16.mxu0 %v5136_v36  ;;  %v5158_v36 = vld [vmem:[#allocation14 + $0x240] ss:$8 sps:$4 sm:$0xff]  }
 0x517   :  { %4272 = vmatpush1.bf16.msra.mxu0 %v5134_v6  ;;  %v5163_v6 = vld [vmem:[#allocation14 + $0x254] ss:$8 sps:$4 sm:$0xff]  }
 0x518   :  { %v5259_v42 = vpop.eup %5258  ;;  %4273 = vmatprep.subr.bf16.mxu0 %v5139_v9 }
 0x519   :  { %v5261_v44 = vpop.eup %5260  ;;  %v3228_v28 = vmul.f32 %v5259_v42, %v3140_v60  ;;  %v5148_v60 = vld [vmem:[#allocation14 + $0x204] ss:$8 sps:$4 sm:$0xff]  }
 0x51a   :  { %v3229_v45 = vmul.f32 %v5261_v44, %v5840_v62  ;;  %v5164_v44 = vld [vmem:[#allocation14 + $0x260] ss:$8 sps:$4 sm:$0xff]  }
 0x51b   :  { %v3308_v48 = vmul.f32 %v3285_v40, %v3228_v28  ;;  %4274 = vmatpush1.bf16.msra.mxu0 %v5137_v41  ;;  %v5166_v41 = vld [vmem:[#allocation14 + $0x264] ss:$8 sps:$4 sm:$0xff]  }
 0x51c   :  { %v3309_v59 = vmul.f32 %v3289_v20, %v3229_v45  ;;  %4275 = vmatprep.subr.bf16.mxu0 %v5142_v43 }
 0x51d   :  { %v3388_v46 = vadd.f32 %v3365_v21, %v3308_v48  ;;  %v5169_v21 = vld [vmem:[#allocation14 + $0x274] ss:$8 sps:$4 sm:$0xff]  }
 0x51e   :  { %v3389_v53 = vadd.f32 %v3369_v58, %v3309_v59 }
 0x51f   :  { %4276 = vmatpush1.bf16.msra.mxu0 %v5140_v19  ;;  %vm3396_vm11 = vcmp.ge.f32.partialorder %v3388_v46, 0.0  ;;  %v3404_v55 = vmul.f32 0.2, %v3388_v46  ;;  %v5167_v19 = vld [vmem:[#allocation14 + $0x270] ss:$8 sps:$4 sm:$0xff]  }
 0x520   :  { %4277 = vmatprep.subr.bf16.mxu0 %v5145_v61  ;;  %vm3397_vm12 = vcmp.ge.f32.partialorder %v3389_v53, 0.0  ;;  %v3405_v57 = vmul.f32 0.2, %v3389_v53  ;;  %v5172_v61 = vld [vmem:[#allocation14 + $0x284] ss:$8 sps:$4 sm:$0xff]  }
 0x521   :  { %v3412_v62 = vsel %vm3396_vm11, %v3388_v46, %v3404_v55  ;;  %v5170_v55 = vld [vmem:[#allocation14 + $0x280] ss:$8 sps:$4 sm:$0xff]  }
 0x522   :  { %v3413_v63 = vsel %vm3397_vm12, %v3389_v53, %v3405_v57  ;;  %v3421_v12 = vpack.c.bf16 %v3412_v62, %v3412_v62 }
 0x523   :  { %4278 = vmatpush1.bf16.msra.mxu0 %v5143_v47  ;;  %v3422_v5 = vpack.c.bf16 %v3413_v63, %v3413_v63 }
 0x524   :  { %4288 = vmatprep.subr.bf16.mxu0 %v5148_v60  ;;  %v5175_v60 = vld [vmem:[#allocation14 + $0x294] ss:$8 sps:$4 sm:$0xff]  }
 0x525   :  { %4279 = vmatprep.mubr.bf16.mxu0 %v3422_v5  ;;  %v5173_v5 = vld [vmem:[#allocation14 + $0x290] ss:$8 sps:$4 sm:$0xff]  }
 0x526   :  { %4280 = vmatmul.mubr.bf16.vlgmr.msra.gmra.mrb[12].mxu0 %v3421_v12 }
 0x527   :  { %4289 = vmatpush1.bf16.msra.mxu0 %v5146_v7 }
 0x528   :  { %4290 = vmatprep.subr.bf16.mxu0 %v5151_v13 }
 0x529   :  { %v2993_v16 = vpop.f32.mrb[8].mxu0 }
 0x52a   :  { %v4878_v17 = vadd.f32 %v2993_v16, %v1461_v14  ;;  %v2995_v18 = vpop.f32.mrb[9].mxu0 }
 0x52b   :  { %v4879_v8 = vadd.f32 %v2995_v18, %v1465_v3  ;;  %v2997_v22 = vpop.f32.mrb[10].mxu0  ;;  %4291 = vmatpush1.bf16.msra.mxu0 %v5149_v11  ;;  %v5176_v3 = vld [vmem:[#allocation14 + $0x2a0] ss:$8 sps:$4 sm:$0xff]   ;;  %v5184_v18 = vld [vmem:[#allocation14 + $0x2c4] ss:$8 sps:$4 sm:$0xff]  }
 0x52c   :  { %v3106_v24 = vrot.slane %v4878_v17, 4  ;;  %v2998_v25 = vpop.f32.mrb[11].mxu0  ;;  %4292 = vmatprep.subr.bf16.mxu0 %v5154_v15  ;;  %v5181_v15 = vld [vmem:[#allocation14 + $0x2b4] ss:$8 sps:$4 sm:$0xff]   ;;  %v5182_v22 = vld [vmem:[#allocation14 + $0x2c0] ss:$8 sps:$4 sm:$0xff]  }
 0x52d   :  { %v3112_v54 = vrot.slane %v4879_v8, 4  ;;  %v3333_v25 = vrot.slane %v5857_v56, %v5692_v51 }
 0x52e   :  { %v3107_v29 = vadd.f32 %v4878_v17, %v3106_v24  ;;  %v5187_v24 = vld [vmem:[#allocation14 + $0x2d4] ss:$8 sps:$4 sm:$0xff]  }
 0x52f   :  { %v3113_v30 = vadd.f32 %v4879_v8, %v3112_v54  ;;  %4293 = vmatpush1.bf16.msra.mxu0 %v5152_v23  ;;  %v3257_v23 = vrot.slane %v5857_v56, %v5690_v50 }
 0x530   :  { %v3108_v32 = vrot.slane %v3107_v29, 2  ;;  %4294 = vmatprep.subr.bf16.mxu0 %v5157_v27  ;;  %v3337_v27 = vrot.slane %v5857_v56, %v5694_v52 }
 0x531   :  { %v3114_v34 = vrot.slane %v3113_v30, 2 }
 0x532   :  { %v3109_v1 = vadd.f32 %v3108_v32, %v3107_v29  ;;  %v5185_v29 = vld [vmem:[#allocation14 + $0x2d0] ss:$8 sps:$4 sm:$0xff]   ;;  %v5190_v32 = vld [vmem:[#allocation14 + $0x2e4] ss:$8 sps:$4 sm:$0xff]  }
 0x533   :  { %v3115_v35 = vadd.f32 %v3114_v34, %v3113_v30  ;;  %4295 = vmatpush1.bf16.msra.mxu0 %v5155_v31  ;;  %v3297_v31 = vrot.slane %v3257_v23, %v5688_v49 }
 0x534   :  { %v3110_v37 = vrot.slane %v3109_v1, 1  ;;  %4296 = vmatprep.subr.bf16.mxu0 %v5160_v33 }
 0x535   :  { %v3116_v38 = vrot.slane %v3115_v35, 1 }
 0x536   :  { %v3111_v9 = vadd.f32 %v3110_v37, %v3109_v1  ;;  %v3373_v1 = vrot.slane %v3333_v25, %v5692_v51 }
 0x537   :  { %v3117_v39 = vadd.f32 %v3116_v38, %v3115_v35  ;;  %4297 = vmatpush1.bf16.msra.mxu0 %v5158_v36  ;;  %v3377_v36 = vrot.slane %v3337_v27, %v5692_v51  ;;  %v5193_v38 = vld [vmem:[#allocation14 + $0x2f4] ss:$8 sps:$4 sm:$0xff]   ;;  %v5214_v27 = vld [vmem:[#allocation14 + $0x364] ss:$8 sps:$4 sm:$0xff]  }
 0x538   :  { %v3134_v40 = vmul.f32 0.125, %v3111_v9  ;;  %4298 = vmatprep.subr.bf16.mxu0 %v5163_v6 }
 0x539   :  { %v3135_v42 = vmul.f32 0.125, %v3117_v39  ;;  %v5191_v39 = vld [vmem:[#allocation14 + $0x2f0] ss:$8 sps:$4 sm:$0xff]  }
 0x53a   :  { %v3142_v20 = vsub.f32 %v4878_v17, %v3134_v40  ;;  %v5179_v17 = vld [vmem:[#allocation14 + $0x2b0] ss:$8 sps:$4 sm:$0xff]  }
 0x53b   :  { %v5865_v43 = vsub.f32 %v4879_v8, %v3135_v42  ;;  %4299 = vmatpush1.bf16.msra.mxu0 %v5161_v26  ;;  %v3253_v8 = vrot.slane %v5857_v56, %v5688_v49  ;;  %v5188_v56 = vld [vmem:[#allocation14 + $0x2e0] ss:$8 sps:$4 sm:$0xff]  }
 0x53c   :  { %v3150_v28 = vmul.f32 %v3142_v20, %v3142_v20  ;;  %4300 = vmatprep.subr.bf16.mxu0 %v5166_v41  ;;  %v5196_v41 = vld [vmem:[#allocation14 + $0x304] ss:$8 sps:$4 sm:$0xff]  }
 0x53d   :  { %v3151_v45 = vmul.f32 %v5865_v43, %v5865_v43  ;;  %v3293_v54 = vrot.slane %v3253_v8, %v5688_v49 }
 0x53e   :  { %v3178_v58 = vrot.slane %v3150_v28, 4 }
 0x53f   :  { %v3184_v48 = vrot.slane %v3151_v45, 4  ;;  %4301 = vmatpush1.bf16.msra.mxu0 %v5164_v44 }
 0x540   :  { %v3179_v59 = vadd.f32 %v3178_v58, %v3150_v28  ;;  %4302 = vmatprep.subr.bf16.mxu0 %v5169_v21  ;;  %v5194_v21 = vld [vmem:[#allocation14 + $0x300] ss:$8 sps:$4 sm:$0xff]  }
 0x541   :  { %v3185_v46 = vadd.f32 %v3184_v48, %v3151_v45 }
 0x542   :  { %v3180_v47 = vrot.slane %v3179_v59, 2 }
 0x543   :  { %v3186_v53 = vrot.slane %v3185_v46, 2  ;;  %4303 = vmatpush1.bf16.msra.mxu0 %v5167_v19  ;;  %v5199_v19 = vld [vmem:[#allocation14 + $0x314] ss:$8 sps:$4 sm:$0xff]  }
 0x544   :  { %v3181_v57 = vadd.f32 %v3180_v47, %v3179_v59  ;;  %4304 = vmatprep.subr.bf16.mxu0 %v5172_v61  ;;  %v5197_v61 = vld [vmem:[#allocation14 + $0x310] ss:$8 sps:$4 sm:$0xff]   ;;  %v5202_v47 = vld [vmem:[#allocation14 + $0x324] ss:$8 sps:$4 sm:$0xff]  }
 0x545   :  { %v3187_v62 = vadd.f32 %v3186_v53, %v3185_v46 }
 0x546   :  { %v3182_v63 = vrot.slane %v3181_v57, 1 }
 0x547   :  { %v3188_v0 = vrot.slane %v3187_v62, 1  ;;  %4305 = vmatpush1.bf16.msra.mxu0 %v5170_v55 }
 0x548   :  { %v3183_v7 = vadd.f32 %v3182_v63, %v3181_v57  ;;  %4306 = vmatprep.subr.bf16.mxu0 %v5175_v60  ;;  %v5200_v60 = vld [vmem:[#allocation14 + $0x320] ss:$8 sps:$4 sm:$0xff]  }
 0x549   :  { %v3189_v12 = vadd.f32 %v3188_v0, %v3187_v62 }
 0x54a   :  { %v3206_v13 = vmul.f32 0.125, %v3183_v7 }
 0x54b   :  { %v3207_v14 = vmul.f32 0.125, %v3189_v12  ;;  %4307 = vmatpush1.bf16.msra.mxu0 %v5173_v5  ;;  %v5203_v12 = vld [vmem:[#allocation14 + $0x330] ss:$8 sps:$4 sm:$0xff]  }
 0x54c   :  { %v3214_v11 = vadd.f32 0.8, %v3206_v13  ;;  %4308 = vmatprep.subr.bf16.mxu0 %v5178_v10 }
 0x54d   :  { %v3215_v16 = vadd.f32 0.8, %v3207_v14  ;;  %v5208_v14 = vld [vmem:[#allocation14 + $0x344] ss:$8 sps:$4 sm:$0xff]  }
 0x54e   :  { %5262 = vrsqrt.f32 %v3214_v11 }
 0x54f   :  { %5264 = vrsqrt.f32 %v3215_v16  ;;  %4309 = vmatpush1.bf16.msra.mxu0 %v5176_v3  ;;  %v5206_v16 = vld [vmem:[#allocation14 + $0x340] ss:$8 sps:$4 sm:$0xff]  }
 0x550   :  { %4310 = vmatprep.subr.bf16.mxu0 %v5181_v15 }
 0x553   :  { %4311 = vmatpush1.bf16.msra.mxu0 %v5179_v17 }
 0x554   :  { %4312 = vmatprep.subr.bf16.mxu0 %v5184_v18  ;;  %v5211_v18 = vld [vmem:[#allocation14 + $0x354] ss:$8 sps:$4 sm:$0xff]  }
 0x557   :  { %4313 = vmatpush1.bf16.msra.mxu0 %v5182_v22 }
 0x558   :  { %v5263_v30 = vpop.eup %5262  ;;  %4314 = vmatprep.subr.bf16.mxu0 %v5187_v24  ;;  %v5209_v24 = vld [vmem:[#allocation14 + $0x350] ss:$8 sps:$4 sm:$0xff]  }
 0x559   :  { %v5265_v33 = vpop.eup %5264  ;;  %v3230_v34 = vmul.f32 %v5263_v30, %v3142_v20  ;;  %v5882_v20 = vld [vmem:[#allocation13 + $0x18] sm:$0x77] }
 0x55a   :  { %v3231_v35 = vmul.f32 %v5265_v33, %v5865_v43  ;;  %v1429_v45 = vrot.slane %v5882_v20, %v5676_v2  ;;  %v1433_v48 = vrot.slane %v5882_v20, %v5680_v4  ;;  %v5205_v4 = vld [vmem:[#allocation14 + $0x334] ss:$8 sps:$4 sm:$0xff]  }
 0x55b   :  { %v3310_v37 = vmul.f32 %v3293_v54, %v3230_v34  ;;  %4315 = vmatpush1.bf16.msra.mxu0 %v5185_v29  ;;  %v5217_v33 = vld [vmem:[#allocation14 + $0x374] ss:$8 sps:$4 sm:$0xff]  }
 0x55c   :  { %v3311_v6 = vmul.f32 %v3297_v31, %v3231_v35  ;;  %4316 = vmatprep.subr.bf16.mxu0 %v5190_v32  ;;  %v1469_v59 = vrot.slane %v1429_v45, %v5676_v2  ;;  %v1473_v46 = vrot.slane %v1433_v48, %v5676_v2  ;;  %v5212_v31 = vld [vmem:[#allocation14 + $0x360] ss:$8 sps:$4 sm:$0xff]  }
 0x55d   :  { %v3390_v9 = vadd.f32 %v3373_v1, %v3310_v37 }
 0x55e   :  { %v3391_v26 = vadd.f32 %v3377_v36, %v3311_v6  ;;  %v5215_v36 = vld [vmem:[#allocation14 + $0x370] ss:$8 sps:$4 sm:$0xff]  }
 0x55f   :  { %4317 = vmatpush1.bf16.msra.mxu0 %v5188_v56  ;;  %vm3398_vm13 = vcmp.ge.f32.partialorder %v3390_v9, 0.0  ;;  %v3406_v40 = vmul.f32 0.2, %v3390_v9  ;;  %v5220_v56 = vld [vmem:[#allocation14 + $0x384] ss:$8 sps:$4 sm:$0xff]  }
 0x560   :  { %4318 = vmatprep.subr.bf16.mxu0 %v5193_v38  ;;  %vm3399_vm14 = vcmp.ge.f32.partialorder %v3391_v26, 0.0  ;;  %v3407_v42 = vmul.f32 0.2, %v3391_v26 }
 0x561   :  { %v3414_v43 = vsel %vm3398_vm13, %v3390_v9, %v3406_v40  ;;  %v5223_v40 = vld [vmem:[#allocation14 + $0x394] ss:$8 sps:$4 sm:$0xff]  }
 0x562   :  { %v3415_v44 = vsel %vm3399_vm14, %v3391_v26, %v3407_v42  ;;  %v3423_v58 = vpack.c.bf16 %v3414_v43, %v3414_v43 }
 0x563   :  { %4319 = vmatpush1.bf16.msra.mxu0 %v5191_v39  ;;  %v3424_v28 = vpack.c.bf16 %v3415_v44, %v3415_v44  ;;  %v5218_v39 = vld [vmem:[#allocation14 + $0x380] ss:$8 sps:$4 sm:$0xff]   ;;  %v5221_v44 = vld [vmem:[#allocation14 + $0x390] ss:$8 sps:$4 sm:$0xff]  }
 0x564   :  { %4329 = vmatprep.subr.bf16.mxu0 %v5196_v41 }
 0x565   :  { %4320 = vmatprep.mubr.bf16.mxu0 %v3424_v28 }
 0x566   :  { %4321 = vmatmul.mubr.bf16.vlgmr.msra.gmra.mrb[12].mxu0 %v3423_v58 }
 0x567   :  { %4330 = vmatpush1.bf16.msra.mxu0 %v5194_v21  ;;  %v5226_v21 = vld [vmem:[#allocation14 + $0x3a4] ss:$8 sps:$4 sm:$0xff]  }
 0x568   :  { %4331 = vmatprep.subr.bf16.mxu0 %v5199_v19  ;;  %v5224_v19 = vld [vmem:[#allocation14 + $0x3a0] ss:$8 sps:$4 sm:$0xff]  }
 0x56a   :  { %v3075_v53 = vpop.f32.mrb[20].mxu1 }
 0x56b   :  { %v4880_v55 = vadd.f32 %v3075_v53, %v1469_v59  ;;  %v3077_v57 = vpop.f32.mrb[21].mxu1  ;;  %4332 = vmatpush1.bf16.msra.mxu0 %v5197_v61  ;;  %v5229_v61 = vld [vmem:[#allocation14 + $0x3b4] ss:$8 sps:$4 sm:$0xff]   ;;  %v5227_v53 = vld [vmem:[#allocation14 + $0x3b0] ss:$8 sps:$4 sm:$0xff]  }
 0x56c   :  { %v4881_v62 = vadd.f32 %v3077_v57, %v1473_v46  ;;  %v3079_v63 = vpop.f32.mrb[22].mxu1  ;;  %4333 = vmatprep.subr.bf16.mxu0 %v5202_v47  ;;  %v5230_v57 = vld [vmem:[#allocation14 + $0x3c0] ss:$8 sps:$4 sm:$0xff]  }
 0x56d   :  { %v3118_v0 = vrot.slane %v4880_v55, 4  ;;  %v3080_v5 = vpop.f32.mrb[23].mxu1  ;;  %v3265_v63 = vrot.slane %v5882_v20, %v5690_v50 }
 0x56e   :  { %v3124_v7 = vrot.slane %v4881_v62, 4  ;;  %v3345_v5 = vrot.slane %v5882_v20, %v5694_v52 }
 0x56f   :  { %v3119_v10 = vadd.f32 %v4880_v55, %v3118_v0  ;;  %4334 = vmatpush1.bf16.msra.mxu0 %v5200_v60  ;;  %v3261_v60 = vrot.slane %v5882_v20, %v5688_v49  ;;  %v5233_v0 = vld [vmem:[#allocation14 + $0x3d0] ss:$8 sps:$4 sm:$0xff]  }
 0x570   :  { %v3125_v13 = vadd.f32 %v4881_v62, %v3124_v7  ;;  %4335 = vmatprep.subr.bf16.mxu0 %v5205_v4  ;;  %v3341_v4 = vrot.slane %v5882_v20, %v5692_v51 }
 0x571   :  { %v3120_v3 = vrot.slane %v3119_v10, 2  ;;  %v3301_v7 = vrot.slane %v3261_v60, %v5688_v49 }
 0x572   :  { %v3126_v11 = vrot.slane %v3125_v13, 2 }
 0x573   :  { %v3121_v15 = vadd.f32 %v3120_v3, %v3119_v10  ;;  %4336 = vmatpush1.bf16.msra.mxu0 %v5203_v12  ;;  %v5238_v10 = vld [vmem:[#allocation14 + $0x3e4] ss:$8 sps:$4 sm:$0xff]  }
 0x574   :  { %v3127_v17 = vadd.f32 %v3126_v11, %v3125_v13  ;;  %4337 = vmatprep.subr.bf16.mxu0 %v5208_v14  ;;  %v3305_v13 = vrot.slane %v3265_v63, %v5688_v49  ;;  %v3381_v11 = vrot.slane %v3341_v4, %v5692_v51 }
 0x575   :  { %v3122_v8 = vrot.slane %v3121_v15, 1 }
 0x576   :  { %v3128_v22 = vrot.slane %v3127_v17, 1 }
 0x577   :  { %v3123_v23 = vadd.f32 %v3122_v8, %v3121_v15  ;;  %4338 = vmatpush1.bf16.msra.mxu0 %v5206_v16  ;;  %v5236_v15 = vld [vmem:[#allocation14 + $0x3e0] ss:$8 sps:$4 sm:$0xff]   ;;  %v3385_v16 = vrot.slane %v3345_v5, %v5692_v51  ;;  %v5239_v8 = vld [vmem:[#allocation14 + $0x3f0] ss:$8 sps:$4 sm:$0xff]  }
 0x578   :  { %v3129_v25 = vadd.f32 %v3128_v22, %v3127_v17  ;;  %4339 = vmatprep.subr.bf16.mxu0 %v5211_v18  ;;  %v5241_v18 = vld [vmem:[#allocation14 + $0x3f4] ss:$8 sps:$4 sm:$0xff]   ;;  %v3418_v51 = vld [vmem:[%s5929_s10] sm:$0x3]  ;;  %s5450_s10 = scalar_lea.vmem %s4381_s16, 256 }
 0x579   :  { %v3136_v54 = vmul.f32 0.125, %v3123_v23  ;;  %p5451_p8 = scmp.ne.s32.totalorder %s4381_s16, %s5450_s10  ;;  %p5456_p10 = scmp.lt.s32.totalorder %s5450_s10, %s5450_s10 }
 0x57a   :  { %v3137_v29 = vmul.f32 0.125, %v3129_v25 }
 0x57b   :  { %v3144_v30 = vsub.f32 %v4880_v55, %v3136_v54  ;;  %4340 = vmatpush1.bf16.msra.mxu0 %v5209_v24  ;;  %v5232_v55 = vld [vmem:[#allocation14 + $0x3c4] ss:$8 sps:$4 sm:$0xff]   ;;  %p5457_p11 = por %p5456_p10, %p5455_p9 }
 0x57c   :  { %v3145_v32 = vsub.f32 %v4881_v62, %v3137_v29  ;;  %4341 = vmatprep.subr.bf16.mxu0 %v5214_v27  ;;  %v5235_v62 = vld [vmem:[#allocation14 + $0x3d4] ss:$8 sps:$4 sm:$0xff]  }
 0x57d   :  { %v3152_v34 = vmul.f32 %v3144_v30, %v3144_v30  ;;  %p5458_p12 = pnand %p5457_p11, %p5451_p8 }
 0x57e   :  { %v3153_v1 = vmul.f32 %v3145_v32, %v3145_v32 }
 0x57f   :  { %v3190_v35 = vrot.slane %v3152_v34, 4  ;;  %4342 = vmatpush1.bf16.msra.mxu0 %v5212_v31  ;;  %v3563_v31 = vrot.slane %v3418_v51, %v5688_v49 }
 0x580   :  { %v3196_v37 = vrot.slane %v3153_v1, 4  ;;  %4343 = vmatprep.subr.bf16.mxu0 %v5217_v33 }
 0x581   :  { %v3191_v6 = vadd.f32 %v3190_v35, %v3152_v34 }
 0x582   :  { %v3197_v38 = vadd.f32 %v3196_v37, %v3153_v1 }
 0x583   :  { %v3192_v9 = vrot.slane %v3191_v6, 2  ;;  %4344 = vmatpush1.bf16.msra.mxu0 %v5215_v36 }
 0x584   :  { %v3198_v26 = vrot.slane %v3197_v38, 2  ;;  %4345 = vmatprep.subr.bf16.mxu0 %v5220_v56 }
 0x585   :  { %v3193_v41 = vadd.f32 %v3192_v9, %v3191_v6 }
 0x586   :  { %v3199_v42 = vadd.f32 %v3198_v26, %v3197_v38 }
 0x587   :  { %v3194_v43 = vrot.slane %v3193_v41, 1  ;;  %4346 = vmatpush1.bf16.msra.mxu0 %v5218_v39 }
 0x588   :  { %v3200_v28 = vrot.slane %v3199_v42, 1  ;;  %4347 = vmatprep.subr.bf16.mxu0 %v5223_v40 }
 0x589   :  { %v3195_v45 = vadd.f32 %v3194_v43, %v3193_v41 }
 0x58a   :  { %v3201_v58 = vadd.f32 %v3200_v28, %v3199_v42 }
 0x58b   :  { %v3208_v48 = vmul.f32 0.125, %v3195_v45  ;;  %4348 = vmatpush1.bf16.msra.mxu0 %v5221_v44 }
 0x58c   :  { %v3209_v59 = vmul.f32 0.125, %v3201_v58  ;;  %4349 = vmatprep.subr.bf16.mxu0 %v5226_v21 }
 0x58d   :  { %v3216_v46 = vadd.f32 0.8, %v3208_v48 }
 0x58e   :  { %v3217_v47 = vadd.f32 0.8, %v3209_v59 }
 0x58f   :  { %5266 = vrsqrt.f32 %v3216_v46  ;;  %4350 = vmatpush1.bf16.msra.mxu0 %v5224_v19 }
 0x590   :  { %5268 = vrsqrt.f32 %v3217_v47  ;;  %4351 = vmatprep.subr.bf16.mxu0 %v5229_v61 }
 0x593   :  { %4352 = vmatpush1.bf16.msra.mxu0 %v5227_v53 }
 0x594   :  { %4353 = vmatprep.subr.bf16.mxu0 %v5232_v55 }
 0x597   :  { %4354 = vmatpush1.bf16.msra.mxu0 %v5230_v57 }
 0x598   :  { %4355 = vmatprep.subr.bf16.mxu0 %v5235_v62 }
 0x599   :  { %v5267_v12 = vpop.eup %5266 }
 0x59a   :  { %v5269_v14 = vpop.eup %5268  ;;  %v3232_v3 = vmul.f32 %v5267_v12, %v3144_v30  ;;  %v3559_v30 = vrot.slane %v3418_v51, %v5676_v2 }
 0x59b   :  { %v3233_v50 = vmul.f32 %v5269_v14, %v3145_v32  ;;  %4356 = vmatpush1.bf16.msra.mxu0 %v5233_v0 }
 0x59c   :  { %v3312_v17 = vmul.f32 %v3301_v7, %v3232_v3  ;;  %4357 = vmatprep.subr.bf16.mxu0 %v5238_v10 }
 0x59d   :  { %v3313_v52 = vmul.f32 %v3305_v13, %v3233_v50 }
 0x59e   :  { %v3392_v20 = vadd.f32 %v3381_v11, %v3312_v17 }
 0x59f   :  { %4358 = vmatpush1.bf16.msra.mxu0 %v5236_v15  ;;  %v3393_v22 = vadd.f32 %v3385_v16, %v3313_v52 }
 0x5a0   :  { %4359 = vmatprep.subr.bf16.mxu0 %v5241_v18  ;;  %vm3400_vm15 = vcmp.ge.f32.partialorder %v3392_v20, 0.0  ;;  %v3408_v23 = vmul.f32 0.2, %v3392_v20 }
 0x5a1   :  { %vm3401_vm0 = vcmp.ge.f32.partialorder %v3393_v22, 0.0  ;;  %v3409_v24 = vmul.f32 0.2, %v3393_v22 }
 0x5a2   :  { %v3416_v25 = vsel %vm3400_vm15, %v3392_v20, %v3408_v23 }
 0x5a3   :  { %4360 = vmatpush1.bf16.msra.mxu0 %v5239_v8  ;;  %v3417_v27 = vsel %vm3401_vm0, %v3393_v22, %v3409_v24  ;;  %v3425_v29 = vpack.c.bf16 %v3416_v25, %v3416_v25 }
 0x5a4   :  { %v3426_v54 = vpack.c.bf16 %v3417_v27, %v3417_v27 }
 0x5a6   :  { %4361 = vmatprep.mubr.bf16.mxu0 %v3426_v54 }
 0x5a7   :  { %4362 = vmatmul.mubr.bf16.vlgmr.msra.gmra.mrb[12].mxu0 %v3425_v29 }
 0x67a   :  { %v4363_v32 = vpop.f32.mrb[12].mxu0 }
 0x67b   :  { %v4882_v33 = vadd.f32 %v4363_v32, %v3559_v30  ;;  %v4365_v34 = vpop.f32.mrb[13].mxu0 }
 0x67c   :  { %v4883_v1 = vadd.f32 %v4365_v34, %v3563_v31  ;;  %v4367_v35 = vpop.f32.mrb[14].mxu0 }
 0x67d   :  { %5270 = vtanh.f32 %v4882_v33  ;;  %v4368_v36 = vpop.f32.mrb[15].mxu0 }
 0x67e   :  { %5272 = vtanh.f32 %v4883_v1 }
 0x687   :  { %v5271_v37 = vpop.eup %5270 }
 0x688   :  { %v5273_v56 = vpop.eup %5272  ;;  %4372 = vst [vmem:[#allocation16] sm:$0xff] %v5271_v37 }
 0x689   :  { %4373 = vst [vmem:[#allocation16 + $0x8] sm:$0xff] %v5273_v56 }
 0x68a   :  { %5461 = shalt.err (!%p5458_p12)
}
 0x68b   :  { %s5462_s21 = scalar_lea.hbm %s5930_s11, 256 }
 0x68c   :  { %p5463_p13 = scmp.ne.s32.totalorder %s5930_s11, %s5462_s21  ;;  %p5466_p0 = scmp.lt.u32.totalorder %s5462_s21, %s5930_s11 }
 0x68e   :  { %p5468_p1 = pnand %p5466_p0, %p5463_p13 }
 0x690   :  { %5471 = shalt.err (!%p5468_p1)
}
 0x691   :  { %4383 = dma.vmem_to_hbm [thread:$0]  %s4381_s16, 256, %s5930_s11, [#allocation4]  }
 0x692   :  { %5482 = dma.done.wait [#allocation4], 256  }
 0x693   :  { %5483 = vsyncadd [#allocation4], 4294967040 }
 0x694   :  { %4387 = vsyncpa [#allocation3], 1 }
 0x695   :  { %4388 = vsyncpa [#allocation6], 1 }
 0x696   :  { %4389 = vsyncpa [#allocation9], 1 }
 0x697   :  { %4390 = vsyncpa [#allocation12], 1 }
 0x698   :  { %4391 = vsyncpa [#allocation15], 1 }
 0x699   :  { %4392 = vsyncpa [#allocation4], 1 }

</bundles_post_ra>
